<compile_context>
chip_gen: v7x
topology: tpu7x:2x2x1
jax: 0.10.0
libtpu: 0.0.40
codegen_flags: <defaults>
</compile_context>

<pallas_src>
import functools

import jax
import jax.numpy as jnp
from jax import lax
from jax.experimental import pallas as pl
from jax.experimental.pallas import tpu as pltpu


def _round_up(x, m):
    return (x + m - 1) // m * m


def _mhsa_kernel(x_ref, wq_ref, wk_ref, wv_ref, wp_ref, b_ref, o_ref,
                 k_scratch, v_scratch, *,
                 num_heads, head_dim, batch_block, n_pad, n_valid, q_tile,
                 n_q_tiles):
    """One (batch_block, query_tile) grid point.

    x_ref : (BB, N_pad, D)  padded inputs of the current batch block (compute dtype)
    wq_ref: (D, AH)         Wq^T with the attention scale pre-folded (VMEM resident)
    wk_ref: (D, AH)         Wk^T (resident)
    wv_ref: (D, AH)         Wv^T (resident)
    wp_ref: (AH, D)         Wproj^T (resident)
    b_ref : (1, D)          proj bias (f32, resident)
    o_ref : (BB, TQ, D)     output tile
    k_scratch / v_scratch : (BB*N_pad, AH) compute-dtype K/V cache for the block
    """
    H, hd, BB = num_heads, head_dim, batch_block
    D = x_ref.shape[-1]
    cdt = x_ref.dtype                      # matmul operand dtype (bf16 by default)
    t = pl.program_id(1)

    # Key-padding mask (static shape info): padded key columns must not get
    # softmax mass. Built once per kernel invocation, broadcast over queries.
    if n_valid < n_pad:
        col = lax.broadcasted_iota(jnp.int32, (1, n_pad), 1)
        key_bias = jnp.where(col < n_valid, 0.0, -1e30).astype(jnp.float32)
    else:
        key_bias = None

    if n_q_tiles == 1:
        # Single query tile: project Q/K/V for the whole flattened block at
        # once (fills the MXU rows when batch_block > 1).
        x_flat = x_ref[...].reshape(BB * n_pad, D)
        k_scratch[...] = jnp.dot(x_flat, wk_ref[...], preferred_element_type=cdt)
        v_scratch[...] = jnp.dot(x_flat, wv_ref[...], preferred_element_type=cdt)
        q_all = jnp.dot(x_flat, wq_ref[...], preferred_element_type=cdt)
    else:
        # K/V are computed once per batch block and reused across query tiles
        # (the t axis is "arbitrary", so t == 0 always runs first per block).
        @pl.when(t == 0)
        def _():
            x_flat = x_ref[...].reshape(BB * n_pad, D)
            k_scratch[...] = jnp.dot(x_flat, wk_ref[...], preferred_element_type=cdt)
            v_scratch[...] = jnp.dot(x_flat, wv_ref[...], preferred_element_type=cdt)
        q_all = None

    q_start = pl.multiple_of(t * q_tile, q_tile)

    for b_img in range(BB):
        row0 = b_img * n_pad
        if q_all is not None:
            q = q_all[row0:row0 + q_tile, :]                        # (TQ, AH)
        else:
            xq = x_ref[b_img, pl.ds(q_start, q_tile), :]            # (TQ, D)
            q = jnp.dot(xq, wq_ref[...], preferred_element_type=cdt)

        acc = jnp.zeros((q_tile, D), jnp.float32)
        for h in range(H):
            lo, hi = h * hd, (h + 1) * hd
            q_h = q[:, lo:hi]                                       # (TQ, hd)
            k_h = k_scratch[row0:row0 + n_pad, lo:hi]               # (N_pad, hd)
            v_h = v_scratch[row0:row0 + n_pad, lo:hi]               # (N_pad, hd)
            # q_h @ k_h^T without an explicit transpose (contract the hd axes);
            # the attention scale is pre-folded into Wq.
            s = lax.dot_general(q_h, k_h, (((1,), (1,)), ((), ())),
                                preferred_element_type=jnp.float32)  # (TQ, N_pad)
            if key_bias is not None:
                s = s + key_bias
            m = jnp.max(s, axis=-1, keepdims=True)
            p = jnp.exp(s - m)
            l = jnp.sum(p, axis=-1, keepdims=True)
            # attn_drop is identity (p=0.0 / eval). Normalize AFTER the PV
            # matmul: scales (TQ, hd) instead of (TQ, N_pad).
            o_h = jnp.dot(p.astype(cdt), v_h, preferred_element_type=jnp.float32)
            o_h = o_h * pl.reciprocal(l, approx=True)
            # Fused output projection: accumulate this head's contribution.
            acc = acc + jnp.dot(o_h.astype(cdt), wp_ref[lo:hi, :],
                                preferred_element_type=jnp.float32)
        # proj bias + one lane-dense store per image; proj_drop is identity.
        o_ref[b_img, :, :] = (acc + b_ref[...]).astype(o_ref.dtype)


def mhsa_forward(x, qkv_w, proj_w, proj_b, *, num_heads, qk_scale=None,
                 compute_dtype=jnp.bfloat16, q_tile=None, batch_block=1,
                 seq_align=128, vmem_limit_bytes=None):
    """x: (B, N, D); qkv_w: (3*AH, D); proj_w: (D, AH); proj_b: (D,). qkv_bias=False."""
    B, N, D = x.shape
    all_head_dim = qkv_w.shape[0] // 3
    head_dim = all_head_dim // num_heads
    scale = float(qk_scale) if qk_scale is not None else float(head_dim) ** (-0.5)

    # Sequence padding (keys masked in-kernel); q_tile must divide padded length.
    assert seq_align % 8 == 0
    n_pad = _round_up(N, seq_align)
    if q_tile is None:
        q_tile = n_pad
    assert n_pad % q_tile == 0 and q_tile % 8 == 0
    n_qt = n_pad // q_tile
    assert B % batch_block == 0
    BB = batch_block

    # Weight prep (plain-JAX glue): pre-transpose for transpose-free in-kernel
    # dots, fold the attention scale into Wq (f32, then cast), cast operands.
    qkv_w = qkv_w.astype(jnp.float32)
    wq_t = (qkv_w[:all_head_dim].T * scale).astype(compute_dtype)           # (D, AH)
    wk_t = qkv_w[all_head_dim:2 * all_head_dim].T.astype(compute_dtype)     # (D, AH)
    wv_t = qkv_w[2 * all_head_dim:].T.astype(compute_dtype)                 # (D, AH)
    wp_t = proj_w.astype(jnp.float32).T.astype(compute_dtype)               # (AH, D)
    bias = proj_b.astype(jnp.float32).reshape(1, D)                         # (1, D)

    xp = x
    if n_pad != N:
        xp = jnp.pad(x, ((0, 0), (0, n_pad - N), (0, 0)))
    xp = xp.astype(compute_dtype)

    kernel = functools.partial(
        _mhsa_kernel, num_heads=num_heads, head_dim=head_dim,
        batch_block=BB, n_pad=n_pad, n_valid=N, q_tile=q_tile, n_q_tiles=n_qt)

    # Untiled VMEM residents: one HBM->VMEM copy, no double buffering.
    def resident():
        return pl.BlockSpec(memory_space=pltpu.MemorySpace.VMEM)

    itemsize = jnp.dtype(compute_dtype).itemsize
    flops = B * (8 * n_pad * D * all_head_dim + 4 * n_pad * n_pad * all_head_dim)
    bytes_accessed = (xp.size * itemsize                                    # x in
                      + B * n_pad * D * jnp.dtype(x.dtype).itemsize         # out
                      + (wq_t.size + wk_t.size + wv_t.size + wp_t.size) * itemsize
                      + bias.size * 4)
    cost = pl.CostEstimate(flops=int(flops),
                           transcendentals=int(B * num_heads * n_pad * n_pad),
                           bytes_accessed=int(bytes_accessed))

    out = pl.pallas_call(
        kernel,
        out_shape=jax.ShapeDtypeStruct((B, n_pad, D), x.dtype),
        grid_spec=pltpu.PrefetchScalarGridSpec(
            num_scalar_prefetch=0,
            grid=(B // BB, n_qt),
            in_specs=[
                pl.BlockSpec((BB, n_pad, D), lambda b, t: (b, 0, 0)),  # x (whole block)
                resident(),                                            # Wq^T * scale
                resident(),                                            # Wk^T
                resident(),                                            # Wv^T
                resident(),                                            # Wproj^T
                resident(),                                            # proj bias
            ],
            out_specs=pl.BlockSpec((BB, q_tile, D), lambda b, t: (b, t, 0)),
            scratch_shapes=[
                pltpu.VMEM((BB * n_pad, all_head_dim), compute_dtype),  # K cache
                pltpu.VMEM((BB * n_pad, all_head_dim), compute_dtype),  # V cache
            ],
        ),
        compiler_params=pltpu.CompilerParams(
            # Batch-block axis is parallel (megacore / v7x dual-TC); the q-tile
            # axis is "arbitrary" so the K/V cache written at t == 0 is valid
            # for later tiles of the same block.
            dimension_semantics=("parallel", "arbitrary"),
            vmem_limit_bytes=vmem_limit_bytes),
        cost_estimate=cost,
    )(xp, wq_t, wk_t, wv_t, wp_t, bias)

    if n_pad != N:
        out = out[:, :N, :]
    return out


def mhsa_reference(x, qkv_w, proj_w, proj_b, *, num_heads, qk_scale=None):
    """Pure-JAX reference mirroring the PyTorch forward exactly."""
    B, N, D = x.shape
    all_head_dim = qkv_w.shape[0] // 3
    head_dim = all_head_dim // num_heads
    scale = qk_scale if qk_scale is not None else head_dim ** (-0.5)
    qkv = x @ qkv_w.T
    qkv = qkv.reshape(B, N, 3, num_heads, head_dim).transpose(2, 0, 3, 1, 4)
    q, k, v = qkv[0], qkv[1], qkv[2]
    attn = jnp.einsum("bhqd,bhkd->bhqk", q, k) * scale
    attn = jax.nn.softmax(attn, axis=-1)
    w = jnp.einsum("bhqk,bhkd->bhqd", attn, v)
    w = w.transpose(0, 2, 1, 3).reshape(B, N, num_heads * head_dim)
    return w @ proj_w.T + proj_b


if __name__ == "__main__":
    # Small ViT-like config: dim=32, heads=4, head_dim=8, qkv_bias=False.
    B, N, D = 2, 8, 32
    num_heads = 4
    all_head_dim = D

    key = jax.random.PRNGKey(0)
    kx, kq, kp, kb = jax.random.split(key, 4)
    x = jax.random.normal(kx, (B, N, D), dtype=jnp.float32)
    qkv_w = jax.random.normal(kq, (3 * all_head_dim, D), dtype=jnp.float32) * 0.05
    proj_w = jax.random.normal(kp, (D, all_head_dim), dtype=jnp.float32) * 0.05
    proj_b = jax.random.normal(kb, (D,), dtype=jnp.float32) * 0.05

    ref = mhsa_reference(x, qkv_w, proj_w, proj_b, num_heads=num_heads)

    # 1) f32 operands, default config (N=8 padded to 128 -> exercises key masking).
    out_f32 = jax.block_until_ready(
        mhsa_forward(x, qkv_w, proj_w, proj_b, num_heads=num_heads,
                     compute_dtype=jnp.float32))
    assert out_f32.shape == (B, N, D)
    assert jnp.allclose(out_f32, ref, atol=2e-3, rtol=2e-3), "f32 mismatch vs reference"

    # 2) Default perf config: bf16 matmul operands, f32 softmax / accumulation.
    out_bf16 = jax.block_until_ready(
        mhsa_forward(x, qkv_w, proj_w, proj_b, num_heads=num_heads))
    assert jnp.allclose(out_bf16, ref, atol=3e-2, rtol=3e-2), "bf16 mismatch vs reference"

    # 3) Query tiling + per-block K/V cache + batch blocking, no padding path.
    N2 = 16
    x2 = jax.random.normal(jax.random.PRNGKey(1), (B, N2, D), dtype=jnp.float32)
    ref2 = mhsa_reference(x2, qkv_w, proj_w, proj_b, num_heads=num_heads)
    out2 = jax.block_until_ready(
        mhsa_forward(x2, qkv_w, proj_w, proj_b, num_heads=num_heads,
                     compute_dtype=jnp.float32, seq_align=8, q_tile=8,
                     batch_block=2))
    assert jnp.allclose(out2, ref2, atol=2e-3, rtol=2e-3), "tiled mismatch vs reference"

    # 4) Padding + masking + query tiling + batch blocking combined.
    out3 = jax.block_until_ready(
        mhsa_forward(x2, qkv_w, proj_w, proj_b, num_heads=num_heads,
                     compute_dtype=jnp.float32, q_tile=64, batch_block=2))
    assert jnp.allclose(out3, ref2, atol=2e-3, rtol=2e-3), "padded+tiled mismatch"

    print("KERNEL_OK")
</pallas_src>

<mosaic_0001>
module attributes {stable_mosaic.version = 11 : i64} {
  func.func @_mhsa_kernel(%arg0: i32, %arg1: i32, %arg2: memref<1x128x32xf32, #tpu.memory_space<vmem>>, %arg3: memref<32x32xf32, #tpu.memory_space<vmem>>, %arg4: memref<32x32xf32, #tpu.memory_space<vmem>>, %arg5: memref<32x32xf32, #tpu.memory_space<vmem>>, %arg6: memref<32x32xf32, #tpu.memory_space<vmem>>, %arg7: memref<1x32xf32, #tpu.memory_space<vmem>>, %arg8: memref<1x128x32xf32, #tpu.memory_space<vmem>>, %arg9: memref<128x32xf32, #tpu.memory_space<vmem>>, %arg10: memref<128x32xf32, #tpu.memory_space<vmem>>) attributes {dimension_semantics = [#tpu.dimension_semantics<parallel>, #tpu.dimension_semantics<arbitrary>], iteration_bounds = array<i64: 2, 1>, scalar_prefetch = 0 : i64, scratch_operands = 2 : i64, tpu.core_type = #tpu.core_type<tc>, window_params = [{transform_indices = @transform_0, window_bounds = array<i64: 1, 128, 32>}, {pipeline_mode = #tpu.pipeline_mode<synchronous>, transform_indices = @transform_1, window_bounds = array<i64: 32, 32>}, {pipeline_mode = #tpu.pipeline_mode<synchronous>, transform_indices = @transform_2, window_bounds = array<i64: 32, 32>}, {pipeline_mode = #tpu.pipeline_mode<synchronous>, transform_indices = @transform_3, window_bounds = array<i64: 32, 32>}, {pipeline_mode = #tpu.pipeline_mode<synchronous>, transform_indices = @transform_4, window_bounds = array<i64: 32, 32>}, {pipeline_mode = #tpu.pipeline_mode<synchronous>, transform_indices = @transform_5, window_bounds = array<i64: 1, 32>}, {transform_indices = @transform_6, window_bounds = array<i64: 1, 128, 32>}]} {
    %0 = tpu.iota {dimensions = array<i32: 1>} : vector<1x128xi32>
    %c8_i32 = arith.constant 8 : i32
    %1 = vector.broadcast %c8_i32 : i32 to vector<1x128xi32>
    %2 = arith.cmpi slt, %0, %1 : vector<1x128xi32>
    %cst = arith.constant 0.000000e+00 : f32
    %cst_0 = arith.constant -1.000000e+30 : f32
    %3 = vector.broadcast %cst : f32 to vector<1x128xf32>
    %4 = vector.broadcast %cst_0 : f32 to vector<1x128xf32>
    %5 = arith.select %2, %3, %4 : vector<1x128xi1>, vector<1x128xf32>
    %c0 = arith.constant 0 : index
    %c0_1 = arith.constant 0 : index
    %c0_2 = arith.constant 0 : index
    %6 = vector.load %arg2[%c0, %c0_1, %c0_2] : memref<1x128x32xf32, #tpu.memory_space<vmem>>, vector<1x128x32xf32>
    %7 = vector.shape_cast %6 : vector<1x128x32xf32> to vector<128x32xf32>
    %c0_3 = arith.constant 0 : index
    %c0_4 = arith.constant 0 : index
    %8 = vector.load %arg4[%c0_3, %c0_4] : memref<32x32xf32, #tpu.memory_space<vmem>>, vector<32x32xf32>
    %cst_5 = arith.constant dense<0.000000e+00> : vector<128x32xf32>
    %9 = tpu.matmul %7, %8, %cst_5 {dimension_numbers = #tpu.dot_dimension_numbers<[1], [0], [0], [1], [0, 0, 1, 1], [], []>} : vector<128x32xf32>, vector<32x32xf32>, vector<128x32xf32> -> vector<128x32xf32>
    %c0_6 = arith.constant 0 : index
    %c0_7 = arith.constant 0 : index
    %10 = vector.load %arg9[%c0_6, %c0_7] : memref<128x32xf32, #tpu.memory_space<vmem>>, vector<128x32xf32>
    tpu.vector_store %arg9[%c0_6, %c0_7], %9 {strides = array<i32>} : memref<128x32xf32, #tpu.memory_space<vmem>>, vector<128x32xf32>,
    %c0_8 = arith.constant 0 : index
    %c0_9 = arith.constant 0 : index
    %11 = vector.load %arg5[%c0_8, %c0_9] : memref<32x32xf32, #tpu.memory_space<vmem>>, vector<32x32xf32>
    %cst_10 = arith.constant dense<0.000000e+00> : vector<128x32xf32>
    %12 = tpu.matmul %7, %11, %cst_10 {dimension_numbers = #tpu.dot_dimension_numbers<[1], [0], [0], [1], [0, 0, 1, 1], [], []>} : vector<128x32xf32>, vector<32x32xf32>, vector<128x32xf32> -> vector<128x32xf32>
    %c0_11 = arith.constant 0 : index
    %c0_12 = arith.constant 0 : index
    %13 = vector.load %arg10[%c0_11, %c0_12] : memref<128x32xf32, #tpu.memory_space<vmem>>, vector<128x32xf32>
    tpu.vector_store %arg10[%c0_11, %c0_12], %12 {strides = array<i32>} : memref<128x32xf32, #tpu.memory_space<vmem>>, vector<128x32xf32>,
    %c0_13 = arith.constant 0 : index
    %c0_14 = arith.constant 0 : index
    %14 = vector.load %arg3[%c0_13, %c0_14] : memref<32x32xf32, #tpu.memory_space<vmem>>, vector<32x32xf32>
    %cst_15 = arith.constant dense<0.000000e+00> : vector<128x32xf32>
    %15 = tpu.matmul %7, %14, %cst_15 {dimension_numbers = #tpu.dot_dimension_numbers<[1], [0], [0], [1], [0, 0, 1, 1], [], []>} : vector<128x32xf32>, vector<32x32xf32>, vector<128x32xf32> -> vector<128x32xf32>
    %cst_16 = arith.constant 0.000000e+00 : f32
    %16 = vector.broadcast %cst_16 : f32 to vector<128x32xf32>
    %17 = vector.extract_strided_slice %15 {offsets = [0, 0], sizes = [128, 8], strides = [1, 1]} : vector<128x32xf32> to vector<128x8xf32>
    %c0_17 = arith.constant 0 : index
    %c0_18 = arith.constant 0 : index
    %18 = vector.load %arg9[%c0_17, %c0_18] : memref<128x32xf32, #tpu.memory_space<vmem>>, vector<128x8xf32>
    %c0_19 = arith.constant 0 : index
    %c0_20 = arith.constant 0 : index
    %19 = vector.load %arg10[%c0_19, %c0_20] : memref<128x32xf32, #tpu.memory_space<vmem>>, vector<128x8xf32>
    %cst_21 = arith.constant dense<0.000000e+00> : vector<128x128xf32>
    %20 = tpu.matmul %17, %18, %cst_21 {dimension_numbers = #tpu.dot_dimension_numbers<[1], [1], [0], [0], [0, 0, 1, 0], [], []>} : vector<128x8xf32>, vector<128x8xf32>, vector<128x128xf32> -> vector<128x128xf32>
    %21 = vector.broadcast %5 : vector<1x128xf32> to vector<128x128xf32>
    %22 = arith.addf %20, %21 : vector<128x128xf32>
    %cst_22 = arith.constant dense<0xFF800000> : vector<128xf32>
    %23 = vector.multi_reduction <maximumf>, %22, %cst_22 [1] : vector<128x128xf32> to vector<128xf32>
    %24 = vector.shape_cast %23 : vector<128xf32> to vector<128x1xf32>
    %25 = vector.broadcast %24 : vector<128x1xf32> to vector<128x128xf32>
    %26 = arith.subf %22, %25 : vector<128x128xf32>
    %27 = math.exp %26 : vector<128x128xf32>
    %cst_23 = arith.constant dense<0.000000e+00> : vector<128xf32>
    %28 = vector.multi_reduction <add>, %27, %cst_23 [1] : vector<128x128xf32> to vector<128xf32>
    %29 = vector.shape_cast %28 : vector<128xf32> to vector<128x1xf32>
    %cst_24 = arith.constant dense<0.000000e+00> : vector<128x8xf32>
    %30 = tpu.matmul %27, %19, %cst_24 {dimension_numbers = #tpu.dot_dimension_numbers<[1], [0], [0], [1], [0, 0, 1, 1], [], []>} : vector<128x128xf32>, vector<128x8xf32>, vector<128x8xf32> -> vector<128x8xf32>
    %31 = tpu.reciprocal %29 {approx = true} : vector<128x1xf32> -> vector<128x1xf32>
    %32 = vector.broadcast %31 : vector<128x1xf32> to vector<128x8xf32>
    %33 = arith.mulf %30, %32 : vector<128x8xf32>
    %c0_25 = arith.constant 0 : index
    %c0_26 = arith.constant 0 : index
    %34 = vector.load %arg6[%c0_25, %c0_26] : memref<32x32xf32, #tpu.memory_space<vmem>>, vector<8x32xf32>
    %cst_27 = arith.constant dense<0.000000e+00> : vector<128x32xf32>
    %35 = tpu.matmul %33, %34, %cst_27 {dimension_numbers = #tpu.dot_dimension_numbers<[1], [0], [0], [1], [0, 0, 1, 1], [], []>} : vector<128x8xf32>, vector<8x32xf32>, vector<128x32xf32> -> vector<128x32xf32>
    %36 = arith.addf %16, %35 : vector<128x32xf32>
    %37 = vector.extract_strided_slice %15 {offsets = [0, 8], sizes = [128, 8], strides = [1, 1]} : vector<128x32xf32> to vector<128x8xf32>
    %c0_28 = arith.constant 0 : index
    %c8 = arith.constant 8 : index
    %38 = vector.load %arg9[%c0_28, %c8] : memref<128x32xf32, #tpu.memory_space<vmem>>, vector<128x8xf32>
    %c0_29 = arith.constant 0 : index
    %c8_30 = arith.constant 8 : index
    %39 = vector.load %arg10[%c0_29, %c8_30] : memref<128x32xf32, #tpu.memory_space<vmem>>, vector<128x8xf32>
    %cst_31 = arith.constant dense<0.000000e+00> : vector<128x128xf32>
    %40 = tpu.matmul %37, %38, %cst_31 {dimension_numbers = #tpu.dot_dimension_numbers<[1], [1], [0], [0], [0, 0, 1, 0], [], []>} : vector<128x8xf32>, vector<128x8xf32>, vector<128x128xf32> -> vector<128x128xf32>
    %41 = vector.broadcast %5 : vector<1x128xf32> to vector<128x128xf32>
    %42 = arith.addf %40, %41 : vector<128x128xf32>
    %cst_32 = arith.constant dense<0xFF800000> : vector<128xf32>
    %43 = vector.multi_reduction <maximumf>, %42, %cst_32 [1] : vector<128x128xf32> to vector<128xf32>
    %44 = vector.shape_cast %43 : vector<128xf32> to vector<128x1xf32>
    %45 = vector.broadcast %44 : vector<128x1xf32> to vector<128x128xf32>
    %46 = arith.subf %42, %45 : vector<128x128xf32>
    %47 = math.exp %46 : vector<128x128xf32>
    %cst_33 = arith.constant dense<0.000000e+00> : vector<128xf32>
    %48 = vector.multi_reduction <add>, %47, %cst_33 [1] : vector<128x128xf32> to vector<128xf32>
    %49 = vector.shape_cast %48 : vector<128xf32> to vector<128x1xf32>
    %cst_34 = arith.constant dense<0.000000e+00> : vector<128x8xf32>
    %50 = tpu.matmul %47, %39, %cst_34 {dimension_numbers = #tpu.dot_dimension_numbers<[1], [0], [0], [1], [0, 0, 1, 1], [], []>} : vector<128x128xf32>, vector<128x8xf32>, vector<128x8xf32> -> vector<128x8xf32>
    %51 = tpu.reciprocal %49 {approx = true} : vector<128x1xf32> -> vector<128x1xf32>
    %52 = vector.broadcast %51 : vector<128x1xf32> to vector<128x8xf32>
    %53 = arith.mulf %50, %52 : vector<128x8xf32>
    %c8_35 = arith.constant 8 : index
    %c0_36 = arith.constant 0 : index
    %54 = vector.load %arg6[%c8_35, %c0_36] : memref<32x32xf32, #tpu.memory_space<vmem>>, vector<8x32xf32>
    %cst_37 = arith.constant dense<0.000000e+00> : vector<128x32xf32>
    %55 = tpu.matmul %53, %54, %cst_37 {dimension_numbers = #tpu.dot_dimension_numbers<[1], [0], [0], [1], [0, 0, 1, 1], [], []>} : vector<128x8xf32>, vector<8x32xf32>, vector<128x32xf32> -> vector<128x32xf32>
    %56 = arith.addf %36, %55 : vector<128x32xf32>
    %57 = vector.extract_strided_slice %15 {offsets = [0, 16], sizes = [128, 8], strides = [1, 1]} : vector<128x32xf32> to vector<128x8xf32>
    %c0_38 = arith.constant 0 : index
    %c16 = arith.constant 16 : index
    %58 = vector.load %arg9[%c0_38, %c16] : memref<128x32xf32, #tpu.memory_space<vmem>>, vector<128x8xf32>
    %c0_39 = arith.constant 0 : index
    %c16_40 = arith.constant 16 : index
    %59 = vector.load %arg10[%c0_39, %c16_40] : memref<128x32xf32, #tpu.memory_space<vmem>>, vector<128x8xf32>
    %cst_41 = arith.constant dense<0.000000e+00> : vector<128x128xf32>
    %60 = tpu.matmul %57, %58, %cst_41 {dimension_numbers = #tpu.dot_dimension_numbers<[1], [1], [0], [0], [0, 0, 1, 0], [], []>} : vector<128x8xf32>, vector<128x8xf32>, vector<128x128xf32> -> vector<128x128xf32>
    %61 = vector.broadcast %5 : vector<1x128xf32> to vector<128x128xf32>
    %62 = arith.addf %60, %61 : vector<128x128xf32>
    %cst_42 = arith.constant dense<0xFF800000> : vector<128xf32>
    %63 = vector.multi_reduction <maximumf>, %62, %cst_42 [1] : vector<128x128xf32> to vector<128xf32>
    %64 = vector.shape_cast %63 : vector<128xf32> to vector<128x1xf32>
    %65 = vector.broadcast %64 : vector<128x1xf32> to vector<128x128xf32>
    %66 = arith.subf %62, %65 : vector<128x128xf32>
    %67 = math.exp %66 : vector<128x128xf32>
    %cst_43 = arith.constant dense<0.000000e+00> : vector<128xf32>
    %68 = vector.multi_reduction <add>, %67, %cst_43 [1] : vector<128x128xf32> to vector<128xf32>
    %69 = vector.shape_cast %68 : vector<128xf32> to vector<128x1xf32>
    %cst_44 = arith.constant dense<0.000000e+00> : vector<128x8xf32>
    %70 = tpu.matmul %67, %59, %cst_44 {dimension_numbers = #tpu.dot_dimension_numbers<[1], [0], [0], [1], [0, 0, 1, 1], [], []>} : vector<128x128xf32>, vector<128x8xf32>, vector<128x8xf32> -> vector<128x8xf32>
    %71 = tpu.reciprocal %69 {approx = true} : vector<128x1xf32> -> vector<128x1xf32>
    %72 = vector.broadcast %71 : vector<128x1xf32> to vector<128x8xf32>
    %73 = arith.mulf %70, %72 : vector<128x8xf32>
    %c16_45 = arith.constant 16 : index
    %c0_46 = arith.constant 0 : index
    %74 = vector.load %arg6[%c16_45, %c0_46] : memref<32x32xf32, #tpu.memory_space<vmem>>, vector<8x32xf32>
    %cst_47 = arith.constant dense<0.000000e+00> : vector<128x32xf32>
    %75 = tpu.matmul %73, %74, %cst_47 {dimension_numbers = #tpu.dot_dimension_numbers<[1], [0], [0], [1], [0, 0, 1, 1], [], []>} : vector<128x8xf32>, vector<8x32xf32>, vector<128x32xf32> -> vector<128x32xf32>
    %76 = arith.addf %56, %75 : vector<128x32xf32>
    %77 = vector.extract_strided_slice %15 {offsets = [0, 24], sizes = [128, 8], strides = [1, 1]} : vector<128x32xf32> to vector<128x8xf32>
    %c0_48 = arith.constant 0 : index
    %c24 = arith.constant 24 : index
    %78 = vector.load %arg9[%c0_48, %c24] : memref<128x32xf32, #tpu.memory_space<vmem>>, vector<128x8xf32>
    %c0_49 = arith.constant 0 : index
    %c24_50 = arith.constant 24 : index
    %79 = vector.load %arg10[%c0_49, %c24_50] : memref<128x32xf32, #tpu.memory_space<vmem>>, vector<128x8xf32>
    %cst_51 = arith.constant dense<0.000000e+00> : vector<128x128xf32>
    %80 = tpu.matmul %77, %78, %cst_51 {dimension_numbers = #tpu.dot_dimension_numbers<[1], [1], [0], [0], [0, 0, 1, 0], [], []>} : vector<128x8xf32>, vector<128x8xf32>, vector<128x128xf32> -> vector<128x128xf32>
    %81 = vector.broadcast %5 : vector<1x128xf32> to vector<128x128xf32>
    %82 = arith.addf %80, %81 : vector<128x128xf32>
    %cst_52 = arith.constant dense<0xFF800000> : vector<128xf32>
    %83 = vector.multi_reduction <maximumf>, %82, %cst_52 [1] : vector<128x128xf32> to vector<128xf32>
    %84 = vector.shape_cast %83 : vector<128xf32> to vector<128x1xf32>
    %85 = vector.broadcast %84 : vector<128x1xf32> to vector<128x128xf32>
    %86 = arith.subf %82, %85 : vector<128x128xf32>
    %87 = math.exp %86 : vector<128x128xf32>
    %cst_53 = arith.constant dense<0.000000e+00> : vector<128xf32>
    %88 = vector.multi_reduction <add>, %87, %cst_53 [1] : vector<128x128xf32> to vector<128xf32>
    %89 = vector.shape_cast %88 : vector<128xf32> to vector<128x1xf32>
    %cst_54 = arith.constant dense<0.000000e+00> : vector<128x8xf32>
    %90 = tpu.matmul %87, %79, %cst_54 {dimension_numbers = #tpu.dot_dimension_numbers<[1], [0], [0], [1], [0, 0, 1, 1], [], []>} : vector<128x128xf32>, vector<128x8xf32>, vector<128x8xf32> -> vector<128x8xf32>
    %91 = tpu.reciprocal %89 {approx = true} : vector<128x1xf32> -> vector<128x1xf32>
    %92 = vector.broadcast %91 : vector<128x1xf32> to vector<128x8xf32>
    %93 = arith.mulf %90, %92 : vector<128x8xf32>
    %c24_55 = arith.constant 24 : index
    %c0_56 = arith.constant 0 : index
    %94 = vector.load %arg6[%c24_55, %c0_56] : memref<32x32xf32, #tpu.memory_space<vmem>>, vector<8x32xf32>
    %cst_57 = arith.constant dense<0.000000e+00> : vector<128x32xf32>
    %95 = tpu.matmul %93, %94, %cst_57 {dimension_numbers = #tpu.dot_dimension_numbers<[1], [0], [0], [1], [0, 0, 1, 1], [], []>} : vector<128x8xf32>, vector<8x32xf32>, vector<128x32xf32> -> vector<128x32xf32>
    %96 = arith.addf %76, %95 : vector<128x32xf32>
    %c0_58 = arith.constant 0 : index
    %c0_59 = arith.constant 0 : index
    %97 = vector.load %arg7[%c0_58, %c0_59] : memref<1x32xf32, #tpu.memory_space<vmem>>, vector<1x32xf32>
    %98 = vector.broadcast %97 : vector<1x32xf32> to vector<128x32xf32>
    %99 = arith.addf %96, %98 : vector<128x32xf32>
    %c0_60 = arith.constant 0 : index
    %c0_61 = arith.constant 0 : index
    %c0_62 = arith.constant 0 : index
    %100 = vector.load %arg8[%c0_60, %c0_61, %c0_62] : memref<1x128x32xf32, #tpu.memory_space<vmem>>, vector<1x128x32xf32>
    %101 = vector.shape_cast %100 : vector<1x128x32xf32> to vector<128x32xf32>
    %102 = vector.shape_cast %99 : vector<128x32xf32> to vector<1x128x32xf32>
    tpu.vector_store %arg8[%c0_60, %c0_61, %c0_62], %102 {strides = array<i32>} : memref<1x128x32xf32, #tpu.memory_space<vmem>>, vector<1x128x32xf32>,
    return
  }
  func.func @transform_0(%arg0: i32, %arg1: i32) -> (i32, i32, i32) {
    %c0_i32 = arith.constant 0 : i32
    %c0_i32_0 = arith.constant 0 : i32
    %c0_i32_1 = arith.constant 0 : i32
    return %arg0, %c0_i32, %c0_i32_0 : i32, i32, i32
  }
  func.func @transform_1(%arg0: i32, %arg1: i32) -> (i32, i32) {
    %c0_i32 = arith.constant 0 : i32
    %c0_i32_0 = arith.constant 0 : i32
    %c0_i32_1 = arith.constant 0 : i32
    return %c0_i32, %c0_i32_0 : i32, i32
  }
  func.func @transform_2(%arg0: i32, %arg1: i32) -> (i32, i32) {
    %c0_i32 = arith.constant 0 : i32
    %c0_i32_0 = arith.constant 0 : i32
    %c0_i32_1 = arith.constant 0 : i32
    return %c0_i32, %c0_i32_0 : i32, i32
  }
  func.func @transform_3(%arg0: i32, %arg1: i32) -> (i32, i32) {
    %c0_i32 = arith.constant 0 : i32
    %c0_i32_0 = arith.constant 0 : i32
    %c0_i32_1 = arith.constant 0 : i32
    return %c0_i32, %c0_i32_0 : i32, i32
  }
  func.func @transform_4(%arg0: i32, %arg1: i32) -> (i32, i32) {
    %c0_i32 = arith.constant 0 : i32
    %c0_i32_0 = arith.constant 0 : i32
    %c0_i32_1 = arith.constant 0 : i32
    return %c0_i32, %c0_i32_0 : i32, i32
  }
  func.func @transform_5(%arg0: i32, %arg1: i32) -> (i32, i32) {
    %c0_i32 = arith.constant 0 : i32
    %c0_i32_0 = arith.constant 0 : i32
    %c0_i32_1 = arith.constant 0 : i32
    return %c0_i32, %c0_i32_0 : i32, i32
  }
  func.func @transform_6(%arg0: i32, %arg1: i32) -> (i32, i32, i32) {
    %c0_i32 = arith.constant 0 : i32
    %c0_i32_0 = arith.constant 0 : i32
    return %arg0, %arg1, %c0_i32 : i32, i32, i32
  }
}

</mosaic_0001>

<bundles_post_ra>
// kernel: tpu_custom_call.1
= control target key start
LH: loop header
LB: loop body
LE: loop exit
PB: predicated region body
PF: predicated region fallthrough
CT: control target
= control target key end

     0   :  { %s6459_s21 = smov 0   ;;  %s6461_s22 = smov 0   ;;  %s8071_s0 = inlined_call_operand.vmem [shape: f32[2,128,32], index: 0, kind: input, shape index: {}]   ;;  %s8072_s1 = inlined_call_operand.vmem [shape: f32[32,32], index: 1, kind: input, shape index: {}]   ;;  %s8073_s2 = inlined_call_operand.vmem [shape: f32[32,32], index: 2, kind: input, shape index: {}]   ;;  %s8074_s3 = inlined_call_operand.vmem [shape: f32[32,32], index: 3, kind: input, shape index: {}]   ;;  %s8075_s4 = inlined_call_operand.vmem [shape: f32[32,32], index: 4, kind: input, shape index: {}]   ;;  %s8076_s5 = inlined_call_operand.vmem [shape: f32[1,32], index: 5, kind: input, shape index: {}]   ;;  %s8077_s6 = inlined_call_operand.vmem [shape: f32[2,128,32], index: 6, kind: output, shape index: {}]  }
   0x1   :  { %s6463_s23 = smov 0  }
   0x2 LB: > { %s28_s24 = sadd.s32 1, %s6414_s22  ;;  %p4164_p0 = scmp.ge.s32.totalorder %s6418_s23, 1  ;;  %s6418_s23 = sphi %s6463_s23, %s16_s23   ;;  %s6414_s22 = sphi %s6461_s22, %s8172_s22   ;;  %s6410_s21 = sphi %s6459_s21, %s8171_s21  }
   0x3   : > { %p30_p1 = scmp.ge.s32.totalorder %s28_s24, 2  ;;  %p226_p2 = scmp.lt.s32.totalorder %s6418_s23, 3 }
   0x5   : > { %s8174_s24 = smov (%p30_p1, %s28_s24), 0  ;;  %p227_p3 = pnand %p4164_p0, %p226_p2 }
   0x7   : > { %230 = sbr.rel (%p227_p3) target bundleno = 2234 (0x8ba), region = 44 }
   0xe   : > { %v295_v0 = vld [vmem:[%s8073_s2] sm:$0xff]  ;;  %v296_v1 = vld [vmem:[%s8073_s2 + $0x8] sm:$0xff]  ;;  %v297_v2 = vld [vmem:[%s8073_s2 + $0x10] sm:$0xff]  ;;  %p260_p4 = scmp.lt.s32.totalorder %s6410_s21, 1  ;;  %vm299_vm0 = vcmask 261120   ;;  %vm855_vm1 = vcmask 64512  }
   0xf   : > { %v5446_v3 = vpack.c.bf16 %v296_v1, %v295_v0  ;;  %v298_v4 = vld [vmem:[%s8073_s2 + $0x18] sm:$0xff]  ;;  %v674_v6 = vld [vmem:[%s8072_s1] sm:$0xff]  ;;  %v675_v7 = vld [vmem:[%s8072_s1 + $0x8] sm:$0xff]  ;;  %s6420_s9 = smov 120   ;;  %s6422_s10 = smov 112  }
  0x10   : > { %v5450_v5 = vpack.c.bf16 %v298_v4, %v297_v2  ;;  %s8176_s21 = smov (!%p260_p4, %s6410_s21), 1  ;;  %v509_v8 = vld [vmem:[%s8074_s3] sm:$0xff]  ;;  %v510_v9 = vld [vmem:[%s8074_s3 + $0x8] sm:$0xff]  ;;  %v511_v10 = vld [vmem:[%s8074_s3 + $0x10] sm:$0xff]  ;;  %v5462_v14 = vpack.c.bf16 %v675_v7, %v674_v6  ;;  %s6423_s11 = smov 104  }
  0x11   : > { %5447 = vmatprep.subr.bf16.mxu0 %v5446_v3  ;;  %v512_v11 = vld [vmem:[%s8074_s3 + $0x18] sm:$0xff]  ;;  %s4412_s25 = sshll.u32 %s8176_s21, 7  ;;  %v5454_v12 = vpack.c.bf16 %v510_v9, %v509_v8  ;;  %v676_v16 = vld [vmem:[%s8072_s1 + $0x10] sm:$0xff]  ;;  %vm6596_vm2 = vmpackc.low %vm855_vm1, %vm855_vm1 }
  0x12   : > { %5449 = vmatpush3.bf16.msra.mxu0 %v5446_v3  ;;  %v5458_v13 = vpack.c.bf16 %v512_v11, %v511_v10  ;;  %s6515_s28 = scalar_lea.vmem %s8071_s0, %s4412_s25  ;;  %v677_v17 = vld [vmem:[%s8072_s1 + $0x18] sm:$0xff]  ;;  %s8028_s29 = scalar_lea.vmem %s8077_s6, %s4412_s25 }
  0x13   : > { %5451 = vmatprep.subr.bf16.mxu0 %v5450_v5  ;;  %v279_v15 = vld [vmem:[%s6515_s28] sm:$0xff]  ;;  %5455 = vmatprep.subr.bf16.mxu1 %v5454_v12  ;;  %v280_v18 = vld [vmem:[%s6515_s28 + $0x8] sm:$0xff]  ;;  %v281_v19 = vld [vmem:[%s6515_s28 + $0x10] sm:$0xff]  ;;  %v5466_v20 = vpack.c.bf16 %v677_v17, %v676_v16 }
  0x14   : > { %4806 = vmatprep.mubr.msk.f32.mxu0 %vm299_vm0, %v279_v15  ;;  %5457 = vmatpush3.bf16.msra.mxu1 %v5454_v12  ;;  %v282_v21 = vld [vmem:[%s6515_s28 + $0x18] sm:$0xff]  ;;  %v283_v22 = vld [vmem:[%s6515_s28 + $0x20] sm:$0xff]  ;;  %v284_v23 = vld [vmem:[%s6515_s28 + $0x28] sm:$0xff] }
  0x15   : > { %5459 = vmatprep.subr.bf16.mxu1 %v5458_v13  ;;  %4838 = vmatprep.mubr.msk.f32.mxu1 %vm299_vm0, %v279_v15  ;;  %v285_v24 = vld [vmem:[%s6515_s28 + $0x30] sm:$0xff]  ;;  %v286_v25 = vld [vmem:[%s6515_s28 + $0x38] sm:$0xff]  ;;  %v287_v26 = vld [vmem:[%s6515_s28 + $0x40] sm:$0xff] }
  0x16   : > { %5453 = vmatpush3.bf16.msra.mxu0 %v5450_v5  ;;  %v288_v27 = vld [vmem:[%s6515_s28 + $0x48] sm:$0xff]  ;;  %v289_v28 = vld [vmem:[%s6515_s28 + $0x50] sm:$0xff]  ;;  %v290_v29 = vld [vmem:[%s6515_s28 + $0x58] sm:$0xff] }
  0x17   : > { %5463 = vmatprep.subr.bf16.mxu0 %v5462_v14  ;;  %v291_v30 = vld [vmem:[%s6515_s28 + $0x60] sm:$0xff]  ;;  %v292_v31 = vld [vmem:[%s6515_s28 + $0x68] sm:$0xff]  ;;  %v293_v32 = vld [vmem:[%s6515_s28 + $0x70] sm:$0xff] }
  0x18   : > { %5461 = vmatpush3.bf16.msra.mxu1 %v5458_v13  ;;  %v294_v33 = vld [vmem:[%s6515_s28 + $0x78] sm:$0xff] }
  0x19   : > { %4807 = vmatmul.mubr.msk.f32.vlgmr.msra.gmra.mrb[0].mxu0 %vm299_vm0, %v280_v18 }
  0x1a   : > { %4809 = vmatprep.mubr.msk.f32.mxu0 %vm299_vm0, %v281_v19  ;;  %5465 = vmatpush3.bf16.msra.mxu0 %v5462_v14 }
  0x1b   : > { %5467 = vmatprep.subr.bf16.mxu0 %v5466_v20  ;;  %4839 = vmatmul.mubr.msk.f32.vlgmr.msra.gmra.mrb[0].mxu1 %vm299_vm0, %v280_v18 }
  0x1c   : > { %4841 = vmatprep.mubr.msk.f32.mxu1 %vm299_vm0, %v281_v19 }
  0x1d   : > { %4810 = vmatmul.mubr.msk.f32.gmra.mrb[2].mxu0 %vm299_vm0, %v282_v21 }
  0x1e   : > { %4812 = vmatprep.mubr.msk.f32.mxu0 %vm299_vm0, %v283_v22  ;;  %5469 = vmatpush3.bf16.msra.mxu0 %v5466_v20 }
  0x1f   : > { %4842 = vmatmul.mubr.msk.f32.gmra.mrb[2].mxu1 %vm299_vm0, %v282_v21 }
  0x20   : > { %4844 = vmatprep.mubr.msk.f32.mxu1 %vm299_vm0, %v283_v22 }
  0x21   : > { %4813 = vmatmul.mubr.msk.f32.gmra.mrb[4].mxu0 %vm299_vm0, %v284_v23 }
  0x22   : > { %4815 = vmatprep.mubr.msk.f32.mxu0 %vm299_vm0, %v285_v24 }
  0x23   : > { %4845 = vmatmul.mubr.msk.f32.gmra.mrb[4].mxu1 %vm299_vm0, %v284_v23 }
  0x24   : > { %4847 = vmatprep.mubr.msk.f32.mxu1 %vm299_vm0, %v285_v24 }
  0x25   : > { %4816 = vmatmul.mubr.msk.f32.gmra.mrb[6].mxu0 %vm299_vm0, %v286_v25 }
  0x26   : > { %4818 = vmatprep.mubr.msk.f32.mxu0 %vm299_vm0, %v287_v26 }
  0x27   : > { %4848 = vmatmul.mubr.msk.f32.gmra.mrb[6].mxu1 %vm299_vm0, %v286_v25 }
  0x28   : > { %4850 = vmatprep.mubr.msk.f32.mxu1 %vm299_vm0, %v287_v26 }
  0x29   : > { %4819 = vmatmul.mubr.msk.f32.gmra.mrb[8].mxu0 %vm299_vm0, %v288_v27 }
  0x2a   : > { %4821 = vmatprep.mubr.msk.f32.mxu0 %vm299_vm0, %v289_v28 }
  0x2b   : > { %4851 = vmatmul.mubr.msk.f32.gmra.mrb[8].mxu1 %vm299_vm0, %v288_v27 }
  0x2c   : > { %4853 = vmatprep.mubr.msk.f32.mxu1 %vm299_vm0, %v289_v28 }
  0x2d   : > { %4822 = vmatmul.mubr.msk.f32.gmra.mrb[10].mxu0 %vm299_vm0, %v290_v29 }
  0x2e   : > { %4824 = vmatprep.mubr.msk.f32.mxu0 %vm299_vm0, %v291_v30 }
  0x2f   : > { %4854 = vmatmul.mubr.msk.f32.gmra.mrb[10].mxu1 %vm299_vm0, %v290_v29 }
  0x30   : > { %4856 = vmatprep.mubr.msk.f32.mxu1 %vm299_vm0, %v291_v30 }
  0x31   : > { %4825 = vmatmul.mubr.msk.f32.gmra.mrb[12].mxu0 %vm299_vm0, %v292_v31 }
  0x32   : > { %4827 = vmatprep.mubr.msk.f32.mxu0 %vm299_vm0, %v293_v32 }
  0x33   : > { %4857 = vmatmul.mubr.msk.f32.gmra.mrb[12].mxu1 %vm299_vm0, %v292_v31 }
  0x34   : > { %4859 = vmatprep.mubr.msk.f32.mxu1 %vm299_vm0, %v293_v32 }
  0x35   : > { %4828 = vmatmul.mubr.msk.f32.gmra.mrb[14].mxu0 %vm299_vm0, %v294_v33 }
  0x36   : > { %4870 = vmatprep.mubr.msk.f32.mxu0 %vm299_vm0, %v279_v15 }
  0x37   : > { %4860 = vmatmul.mubr.msk.f32.gmra.mrb[14].mxu1 %vm299_vm0, %v294_v33 }
  0x39   : > { %4871 = vmatmul.mubr.msk.f32.vlgmr.msra.gmra.mrb[16].mxu0 %vm299_vm0, %v280_v18 }
  0x3a   : > { %4873 = vmatprep.mubr.msk.f32.mxu0 %vm299_vm0, %v281_v19 }
  0x3d   : > { %4874 = vmatmul.mubr.msk.f32.gmra.mrb[18].mxu0 %vm299_vm0, %v282_v21 }
  0x3e   : > { %4876 = vmatprep.mubr.msk.f32.mxu0 %vm299_vm0, %v283_v22 }
  0x41   : > { %4877 = vmatmul.mubr.msk.f32.gmra.mrb[20].mxu0 %vm299_vm0, %v284_v23 }
  0x42   : > { %4879 = vmatprep.mubr.msk.f32.mxu0 %vm299_vm0, %v285_v24 }
  0x45   : > { %4880 = vmatmul.mubr.msk.f32.gmra.mrb[22].mxu0 %vm299_vm0, %v286_v25 }
  0x46   : > { %4882 = vmatprep.mubr.msk.f32.mxu0 %vm299_vm0, %v287_v26 }
  0x49   : > { %4883 = vmatmul.mubr.msk.f32.gmra.mrb[24].mxu0 %vm299_vm0, %v288_v27 }
  0x4a   : > { %4885 = vmatprep.mubr.msk.f32.mxu0 %vm299_vm0, %v289_v28 }
  0x4d   : > { %4886 = vmatmul.mubr.msk.f32.gmra.mrb[26].mxu0 %vm299_vm0, %v290_v29 }
  0x4e   : > { %4888 = vmatprep.mubr.msk.f32.mxu0 %vm299_vm0, %v291_v30 }
  0x51   : > { %4889 = vmatmul.mubr.msk.f32.gmra.mrb[28].mxu0 %vm299_vm0, %v292_v31 }
  0x52   : > { %4891 = vmatprep.mubr.msk.f32.mxu0 %vm299_vm0, %v293_v32 }
  0x55   : > { %4892 = vmatmul.mubr.msk.f32.gmra.mrb[30].mxu0 %vm299_vm0, %v294_v33 }
  0xec   : > { %v4808_v34 = vpop.f32.mrb[0].mxu0 }
  0xed   : > { %494 = vst.msk [vmem:[#allocation2 + $0x8] sm:$0xff] %vm299_vm0, %v4808_v34  ;;  %v414_v35 = vpop.f32.mrb[1].mxu0 }
  0xee   : > { %493 = vst.msk [vmem:[#allocation2] sm:$0xff] %vm299_vm0, %v414_v35  ;;  %v4840_v36 = vpop.f32.mrb[0].mxu1 }
  0xef   : > { %659 = vst.msk [vmem:[#allocation3 + $0x8] sm:$0xff] %vm299_vm0, %v4840_v36  ;;  %v579_v38 = vpop.f32.mrb[1].mxu1 }
  0xf0   : > { %v4811_v37 = vpop.f32.mrb[2].mxu0  ;;  %658 = vst.msk [vmem:[#allocation3] sm:$0xff] %vm299_vm0, %v579_v38 }
  0xf1   : > { %496 = vst.msk [vmem:[#allocation2 + $0x18] sm:$0xff] %vm299_vm0, %v4811_v37  ;;  %v424_v39 = vpop.f32.mrb[3].mxu0 }
  0xf2   : > { %495 = vst.msk [vmem:[#allocation2 + $0x10] sm:$0xff] %vm299_vm0, %v424_v39  ;;  %v4843_v40 = vpop.f32.mrb[2].mxu1 }
  0xf3   : > { %661 = vst.msk [vmem:[#allocation3 + $0x18] sm:$0xff] %vm299_vm0, %v4843_v40  ;;  %v589_v43 = vpop.f32.mrb[3].mxu1 }
  0xf4   : > { %v824_v41 = vld [vmem:[#allocation2 + $0x8] sm:$0xff]  ;;  %v4814_v42 = vpop.f32.mrb[4].mxu0  ;;  %660 = vst.msk [vmem:[#allocation3 + $0x10] sm:$0xff] %vm299_vm0, %v589_v43 }
  0xf5   : > { %v823_v44 = vld [vmem:[#allocation2] sm:$0xff]  ;;  %498 = vst.msk [vmem:[#allocation2 + $0x28] sm:$0xff] %vm299_vm0, %v4814_v42  ;;  %v434_v46 = vpop.f32.mrb[5].mxu0 }
  0xf6   : > { %v6602_v47 = vpack.i.bf16 %v824_v41, %v823_v44  ;;  %v5470_v48 = vpack.c.bf16 %v824_v41, %v823_v44  ;;  %497 = vst.msk [vmem:[#allocation2 + $0x20] sm:$0xff] %vm299_vm0, %v434_v46  ;;  %v4846_v49 = vpop.f32.mrb[4].mxu1  ;;  %v6605_v50 = vld [vmem:[#allocation3 + $0x8] sm:$0xff] }
  0xf7   : > { %663 = vst.msk [vmem:[#allocation3 + $0x28] sm:$0xff] %vm299_vm0, %v4846_v49  ;;  %v599_v53 = vpop.f32.mrb[5].mxu1  ;;  %v6612_v54 = vld [vmem:[#allocation3] sm:$0xff] }
  0xf8   : > { %5883 = vrot.lane.b32.xlu1 %v6602_v47, %s6420_s9  ;;  %5472 = vmatprep.subr.msk.bf16.mxu1 %vm6596_vm2, %v5470_v48  ;;  %v826_v51 = vld [vmem:[#allocation2 + $0x18] sm:$0xff]  ;;  %v4817_v52 = vpop.f32.mrb[6].mxu0  ;;  %662 = vst.msk [vmem:[#allocation3 + $0x20] sm:$0xff] %vm299_vm0, %v599_v53  ;;  %v5518_v57 = vpack.c.bf16 %v6605_v50, %v6612_v54 }
  0xf9   : > { %5475 = vmatpush3.bf16.xpose.msk.msra.mxu1 %vm6596_vm2, %v5470_v48  ;;  %v825_v55 = vld [vmem:[#allocation2 + $0x10] sm:$0xff]  ;;  %500 = vst.msk [vmem:[#allocation2 + $0x38] sm:$0xff] %vm299_vm0, %v4817_v52  ;;  %v444_v56 = vpop.f32.mrb[7].mxu0 }
  0xfa   : > { %v6620_v58 = vpack.i.bf16 %v826_v51, %v825_v55  ;;  %v5476_v59 = vpack.c.bf16 %v826_v51, %v825_v55  ;;  %499 = vst.msk [vmem:[#allocation2 + $0x30] sm:$0xff] %vm299_vm0, %v444_v56  ;;  %v4849_v60 = vpop.f32.mrb[6].mxu1  ;;  %5519 = vmatprep.subr.bf16.mxu0 %v5518_v57  ;;  %v6623_v61 = vld [vmem:[#allocation3 + $0x18] sm:$0xff] }
  0xfb   : > { %665 = vst.msk [vmem:[#allocation3 + $0x38] sm:$0xff] %vm299_vm0, %v4849_v60  ;;  %v609_v0 = vpop.f32.mrb[7].mxu1  ;;  %v6630_v1 = vld [vmem:[#allocation3 + $0x10] sm:$0xff]  ;;  %5521 = vmatpush3.bf16.msra.mxu0 %v5518_v57 }
  0xfc   : > { %5888 = vrot.lane.b32.xlu0 %v6620_v58, %s6420_s9  ;;  %5478 = vmatprep.subr.msk.bf16.mxu1 %vm6596_vm2, %v5476_v59  ;;  %v828_v62 = vld [vmem:[#allocation2 + $0x28] sm:$0xff]  ;;  %v4820_v63 = vpop.f32.mrb[8].mxu0  ;;  %664 = vst.msk [vmem:[#allocation3 + $0x30] sm:$0xff] %vm299_vm0, %v609_v0  ;;  %v5522_v4 = vpack.c.bf16 %v6623_v61, %v6630_v1 }
  0xfd   : > { %v827_v2 = vld [vmem:[#allocation2 + $0x20] sm:$0xff]  ;;  %502 = vst.msk [vmem:[#allocation2 + $0x48] sm:$0xff] %vm299_vm0, %v4820_v63  ;;  %v454_v3 = vpop.f32.mrb[9].mxu0 }
  0xfe   : > { %v6636_v5 = vpack.i.bf16 %v828_v62, %v827_v2  ;;  %v5482_v6 = vpack.c.bf16 %v828_v62, %v827_v2  ;;  %501 = vst.msk [vmem:[#allocation2 + $0x40] sm:$0xff] %vm299_vm0, %v454_v3  ;;  %v4852_v7 = vpop.f32.mrb[8].mxu1  ;;  %5523 = vmatprep.subr.bf16.mxu0 %v5522_v4  ;;  %v6639_v8 = vld [vmem:[#allocation3 + $0x28] sm:$0xff] }
  0xff   : > { %667 = vst.msk [vmem:[#allocation3 + $0x48] sm:$0xff] %vm299_vm0, %v4852_v7  ;;  %v619_v11 = vpop.f32.mrb[9].mxu1  ;;  %v6644_v12 = vld [vmem:[#allocation3 + $0x20] sm:$0xff]  ;;  %5525 = vmatpush3.bf16.msra.mxu0 %v5522_v4 }
 0x100   : > { %5893 = vrot.lane.b32.xlu1 %v6636_v5, %s6420_s9  ;;  %v830_v9 = vld [vmem:[#allocation2 + $0x38] sm:$0xff]  ;;  %v4823_v10 = vpop.f32.mrb[10].mxu0  ;;  %666 = vst.msk [vmem:[#allocation3 + $0x40] sm:$0xff] %vm299_vm0, %v619_v11  ;;  %v5526_v15 = vpack.c.bf16 %v6639_v8, %v6644_v12 }
 0x101   : > { %5481 = vmatpush3.bf16.xpose.msk.msra.mxu1 %vm6596_vm2, %v5476_v59  ;;  %v829_v13 = vld [vmem:[#allocation2 + $0x30] sm:$0xff]  ;;  %504 = vst.msk [vmem:[#allocation2 + $0x58] sm:$0xff] %vm299_vm0, %v4823_v10  ;;  %v464_v14 = vpop.f32.mrb[11].mxu0 }
 0x102   : > { %5484 = vmatprep.subr.msk.bf16.mxu1 %vm6596_vm2, %v5482_v6  ;;  %503 = vst.msk [vmem:[#allocation2 + $0x50] sm:$0xff] %vm299_vm0, %v464_v14  ;;  %v6655_v16 = vpack.i.bf16 %v830_v9, %v829_v13  ;;  %v4855_v17 = vpop.f32.mrb[10].mxu1  ;;  %5527 = vmatprep.subr.bf16.mxu0 %v5526_v15  ;;  %v6657_v18 = vld [vmem:[#allocation3 + $0x38] sm:$0xff]  ;;  %v5488_v26 = vpack.c.bf16 %v830_v9, %v829_v13 }
 0x103   : > { %669 = vst.msk [vmem:[#allocation3 + $0x58] sm:$0xff] %vm299_vm0, %v4855_v17  ;;  %v629_v21 = vpop.f32.mrb[11].mxu1  ;;  %v6660_v22 = vld [vmem:[#allocation3 + $0x30] sm:$0xff]  ;;  %5529 = vmatpush3.bf16.msra.mxu0 %v5526_v15 }
 0x104   : > { %v832_v19 = vld [vmem:[#allocation2 + $0x48] sm:$0xff]  ;;  %v4826_v20 = vpop.f32.mrb[12].mxu0  ;;  %668 = vst.msk [vmem:[#allocation3 + $0x50] sm:$0xff] %vm299_vm0, %v629_v21  ;;  %v5530_v25 = vpack.c.bf16 %v6657_v18, %v6660_v22 }
 0x105   : > { %v831_v23 = vld [vmem:[#allocation2 + $0x40] sm:$0xff]  ;;  %506 = vst.msk [vmem:[#allocation2 + $0x68] sm:$0xff] %vm299_vm0, %v4826_v20  ;;  %v474_v24 = vpop.f32.mrb[13].mxu0 }
 0x106   : > { %v6666_v27 = vpack.i.bf16 %v832_v19, %v831_v23  ;;  %505 = vst.msk [vmem:[#allocation2 + $0x60] sm:$0xff] %vm299_vm0, %v474_v24  ;;  %v4858_v28 = vpop.f32.mrb[12].mxu1  ;;  %5531 = vmatprep.subr.bf16.mxu0 %v5530_v25  ;;  %v6669_v29 = vld [vmem:[#allocation3 + $0x48] sm:$0xff]  ;;  %v5494_v49 = vpack.c.bf16 %v832_v19, %v831_v23 }
 0x107   : > { %671 = vst.msk [vmem:[#allocation3 + $0x68] sm:$0xff] %vm299_vm0, %v4858_v28  ;;  %v639_v32 = vpop.f32.mrb[13].mxu1  ;;  %v6674_v33 = vld [vmem:[#allocation3 + $0x40] sm:$0xff]  ;;  %5533 = vmatpush3.bf16.msra.mxu0 %v5530_v25 }
 0x108   : > { %5903 = vrot.lane.b32.xlu1 %v6666_v27, %s6420_s9  ;;  %v834_v30 = vld [vmem:[#allocation2 + $0x58] sm:$0xff]  ;;  %v4829_v31 = vpop.f32.mrb[14].mxu0  ;;  %670 = vst.msk [vmem:[#allocation3 + $0x60] sm:$0xff] %vm299_vm0, %v639_v32  ;;  %v5534_v36 = vpack.c.bf16 %v6669_v29, %v6674_v33  ;;  %v6421_v32 = vmov -1e+30  }
 0x109   : > { %5487 = vmatpush3.bf16.xpose.msk.msra.mxu1 %vm6596_vm2, %v5482_v6  ;;  %v833_v34 = vld [vmem:[#allocation2 + $0x50] sm:$0xff]  ;;  %508 = vst.msk [vmem:[#allocation2 + $0x78] sm:$0xff] %vm299_vm0, %v4829_v31  ;;  %v484_v35 = vpop.f32.mrb[15].mxu0 }
 0x10a   : > { %5490 = vmatprep.subr.msk.bf16.mxu1 %vm6596_vm2, %v5488_v26  ;;  %507 = vst.msk [vmem:[#allocation2 + $0x70] sm:$0xff] %vm299_vm0, %v484_v35  ;;  %v6685_v37 = vpack.i.bf16 %v834_v30, %v833_v34  ;;  %v4861_v38 = vpop.f32.mrb[14].mxu1  ;;  %5535 = vmatprep.subr.bf16.mxu0 %v5534_v36  ;;  %v6687_v39 = vld [vmem:[#allocation3 + $0x58] sm:$0xff]  ;;  %v5500_v6 = vpack.c.bf16 %v834_v30, %v833_v34  ;;  %v275_v30 = vlaneseq }
 0x10b   : > { %673 = vst.msk [vmem:[#allocation3 + $0x78] sm:$0xff] %vm299_vm0, %v4861_v38  ;;  %v649_v42 = vpop.f32.mrb[15].mxu1  ;;  %v6692_v43 = vld [vmem:[#allocation3 + $0x50] sm:$0xff]  ;;  %5537 = vmatpush3.bf16.msra.mxu0 %v5534_v36 }
 0x10c   : > { %v836_v40 = vld [vmem:[#allocation2 + $0x68] sm:$0xff]  ;;  %v6689_v41 = vpop.f32.mrb[16].mxu0  ;;  %672 = vst.msk [vmem:[#allocation3 + $0x70] sm:$0xff] %vm299_vm0, %v649_v42  ;;  %v5538_v48 = vpack.c.bf16 %v6687_v39, %v6692_v43  ;;  %v276_v31 = vand.u32 127, %v275_v30 }
 0x10d   : > { %v835_v44 = vld [vmem:[#allocation2 + $0x60] sm:$0xff]  ;;  %v6694_v46 = vpop.f32.mrb[17].mxu0 }
 0x10e   : > { %4926 = vmatprep.mubr.msk.f32.mxu1 %vm855_vm1, %v6694_v46  ;;  %v6701_v51 = vpack.i.bf16 %v836_v40, %v835_v44  ;;  %5539 = vmatprep.subr.bf16.mxu0 %v5538_v48  ;;  %v6703_v52 = vld [vmem:[#allocation3 + $0x68] sm:$0xff]  ;;  %v5506_v13 = vpack.c.bf16 %v836_v40, %v835_v44  ;;  %vm277_vm3 = vcmp.lt.s32.totalorder %v276_v31, 8 }
 0x10f   : > { %v6707_v56 = vld [vmem:[#allocation3 + $0x60] sm:$0xff]  ;;  %5541 = vmatpush3.bf16.msra.mxu0 %v5538_v48  ;;  %v6798_v34 = vsel %vm277_vm3, 0.0, %v6421_v32 }
 0x110   : > { %v838_v53 = vld [vmem:[#allocation2 + $0x78] sm:$0xff]  ;;  %v6705_v55 = vpop.f32.mrb[18].mxu0  ;;  %v5542_v60 = vpack.c.bf16 %v6703_v52, %v6707_v56  ;;  %8099 = vst [vmem:[#allocation4_spill] sm:$0xff] %v6798_v34 }
 0x111   : > { %5493 = vmatpush3.bf16.xpose.msk.msra.mxu1 %vm6596_vm2, %v5488_v26  ;;  %v837_v57 = vld [vmem:[#allocation2 + $0x70] sm:$0xff]  ;;  %v6711_v59 = vpop.f32.mrb[19].mxu0 }
 0x112   : > { %5496 = vmatprep.subr.msk.bf16.mxu1 %vm6596_vm2, %v5494_v49  ;;  %v6717_v62 = vpack.i.bf16 %v838_v53, %v837_v57  ;;  %5543 = vmatprep.subr.bf16.mxu0 %v5542_v60  ;;  %v6719_v63 = vld [vmem:[#allocation3 + $0x78] sm:$0xff]  ;;  %v5512_v20 = vpack.c.bf16 %v838_v53, %v837_v57 }
 0x113   : > { %v6723_v2 = vld [vmem:[#allocation3 + $0x70] sm:$0xff]  ;;  %5545 = vmatpush3.bf16.msra.mxu0 %v5542_v60 }
 0x114   : > { %v6721_v0 = vpop.f32.mrb[20].mxu0  ;;  %v5546_v4 = vpack.c.bf16 %v6719_v63, %v6723_v2 }
 0x115   : > { %v6725_v3 = vpop.f32.mrb[21].mxu0 }
 0x116   : > { %5547 = vmatprep.subr.bf16.mxu0 %v5546_v4 }
 0x117   : > { %5549 = vmatpush3.bf16.msra.mxu0 %v5546_v4 }
 0x118   : > { %v6729_v7 = vpop.f32.mrb[22].mxu0 }
 0x119   : > { %5499 = vmatpush3.bf16.xpose.msk.msra.mxu1 %vm6596_vm2, %v5494_v49  ;;  %v6733_v9 = vpop.f32.mrb[23].mxu0 }
 0x11a   : > { %5502 = vmatprep.subr.msk.bf16.mxu1 %vm6596_vm2, %v5500_v6 }
 0x11c   : > { %v6737_v10 = vpop.f32.mrb[24].mxu0 }
 0x11d   : > { %v6739_v11 = vpop.f32.mrb[25].mxu0 }
 0x120   : > { %v6741_v14 = vpop.f32.mrb[26].mxu0 }
 0x121   : > { %5505 = vmatpush3.bf16.xpose.msk.msra.mxu1 %vm6596_vm2, %v5500_v6  ;;  %v6745_v15 = vpop.f32.mrb[27].mxu0 }
 0x122   : > { %5508 = vmatprep.subr.msk.bf16.mxu1 %vm6596_vm2, %v5506_v13 }
 0x124   : > { %v6749_v17 = vpop.f32.mrb[28].mxu0 }
 0x125   : > { %v6751_v19 = vpop.f32.mrb[29].mxu0 }
 0x128   : > { %v6753_v21 = vpop.f32.mrb[30].mxu0 }
 0x129   : > { %5511 = vmatpush3.bf16.xpose.msk.msra.mxu1 %vm6596_vm2, %v5506_v13  ;;  %v6757_v23 = vpop.f32.mrb[31].mxu0 }
 0x12a   : > { %5514 = vmatprep.subr.msk.bf16.mxu1 %vm6596_vm2, %v5512_v20 }
 0x131   : > { %5517 = vmatpush3.bf16.xpose.msk.msra.mxu1 %vm6596_vm2, %v5512_v20 }
 0x138   : > { %4927 = vmatmul.mubr.msk.f32.vlgmr.msra.gmra.mrb[16].mxu1 %vm855_vm1, %v6689_v41 }
 0x139   : > { %4929 = vmatprep.mubr.msk.f32.mxu1 %vm855_vm1, %v6711_v59 }
 0x13c   : > { %4930 = vmatmul.mubr.msk.f32.gmra.mrb[18].mxu1 %vm855_vm1, %v6705_v55 }
 0x13d   : > { %4932 = vmatprep.mubr.msk.f32.mxu1 %vm855_vm1, %v6725_v3 }
 0x140   : > { %4933 = vmatmul.mubr.msk.f32.gmra.mrb[20].mxu1 %vm855_vm1, %v6721_v0 }
 0x141   : > { %4935 = vmatprep.mubr.msk.f32.mxu1 %vm855_vm1, %v6733_v9 }
 0x144   : > { %4936 = vmatmul.mubr.msk.f32.gmra.mrb[22].mxu1 %vm855_vm1, %v6729_v7 }
 0x145   : > { %4938 = vmatprep.mubr.msk.f32.mxu1 %vm855_vm1, %v6739_v11 }
 0x148   : > { %4939 = vmatmul.mubr.msk.f32.gmra.mrb[24].mxu1 %vm855_vm1, %v6737_v10 }
 0x149   : > { %4941 = vmatprep.mubr.msk.f32.mxu1 %vm855_vm1, %v6745_v15 }
 0x14c   : > { %4942 = vmatmul.mubr.msk.f32.gmra.mrb[26].mxu1 %vm855_vm1, %v6741_v14 }
 0x14d   : > { %4944 = vmatprep.mubr.msk.f32.mxu1 %vm855_vm1, %v6751_v19 }
 0x150   : > { %4945 = vmatmul.mubr.msk.f32.gmra.mrb[28].mxu1 %vm855_vm1, %v6749_v17 }
 0x151   : > { %4947 = vmatprep.mubr.msk.f32.mxu1 %vm855_vm1, %v6757_v23 }
 0x154   : > { %4948 = vmatmul.mubr.msk.f32.gmra.mrb[30].mxu1 %vm855_vm1, %v6753_v21 }
 0x16a   : > { %v5884_v24 = vpop.permute.xlu1 %5883 }
 0x16b   : > { %v5886_v25 = vunpack.i.h.bf16 %v5884_v24  ;;  %v5885_v26 = vunpack.i.l.bf16 %v5884_v24 }
 0x16d   : > { %v6793_v28 = vpack.c.bf16 %v5886_v25, %v5885_v26 }
 0x16f   : > { %5552 = vmatprep.subr.msk.bf16.mxu0 %vm6596_vm2, %v6793_v28 }
 0x20b   : > { %v4928_v35 = vpop.f32.mrb[16].mxu1 }
 0x20c   : > { %v6801_v36 = vadd.f32 %v4928_v35, %v6798_v34  ;;  %v1018_v38 = vpop.f32.mrb[17].mxu1 }
 0x20d   : > { %v6805_v42 = vadd.f32 %v1018_v38, %v6798_v34 }
 0x20e   : > { %1099 = vmax.xlane.f32.xlu0 %v6801_v36 }
 0x20f   : > { %v4931_v40 = vpop.f32.mrb[18].mxu1 }
 0x210   : > { %v1028_v44 = vpop.f32.mrb[19].mxu1 }
 0x211   : > { %v6808_v48 = vadd.f32 %v1028_v44, %v6798_v34 }
 0x212   : > { %1097 = vmax.xlane.f32.xlu0 %v6805_v42 }
 0x213   : > { %v4934_v49 = vpop.f32.mrb[20].mxu1  ;;  %1101 = vmax.xlane.f32.xlu1 %v6808_v48 }
 0x214   : > { %v6813_v53 = vadd.f32 %v4934_v49, %v6798_v34  ;;  %v1038_v57 = vpop.f32.mrb[21].mxu1 }
 0x215   : > { %v6817_v6 = vadd.f32 %v1038_v57, %v6798_v34  ;;  %v6845_v57 = vadd.f32 %v4931_v40, %v6798_v34 }
 0x217   : > { %v4937_v60 = vpop.f32.mrb[22].mxu1  ;;  %1107 = vmax.xlane.f32.xlu1 %v6813_v53 }
 0x218   : > { %v1048_v4 = vpop.f32.mrb[23].mxu1 }
 0x219   : > { %v6821_v24 = vadd.f32 %v1048_v4, %v6798_v34  ;;  %v6849_v4 = vadd.f32 %v4937_v60, %v6798_v34 }
 0x21b   : > { %v4940_v13 = vpop.f32.mrb[24].mxu1  ;;  %1105 = vmax.xlane.f32.xlu1 %v6817_v6 }
 0x21c   : > { %v1058_v20 = vpop.f32.mrb[25].mxu1 }
 0x21f   : > { %v4943_v25 = vpop.f32.mrb[26].mxu1  ;;  %1109 = vmax.xlane.f32.xlu1 %v6821_v24 }
 0x220   : > { %v1068_v26 = vpop.f32.mrb[27].mxu1  ;;  %v6861_v40 = vadd.f32 %v4943_v25, %v6798_v34 }
 0x221   : > { %v6825_v30 = vadd.f32 %v1068_v26, %v6798_v34  ;;  %v6853_v26 = vadd.f32 %v4940_v13, %v6798_v34  ;;  %v5889_v13 = vpop.permute.xlu0 %5888 }
 0x222   : > { %8103 = vst [vmem:[#allocation8_spill] sm:$0xff] %v6861_v40 }
 0x223   : > { %v4946_v31 = vpop.f32.mrb[28].mxu1  ;;  %1117 = vmax.xlane.f32.xlu1 %v6825_v30 }
 0x224   : > { %v6829_v32 = vadd.f32 %v4946_v31, %v6798_v34  ;;  %v1078_v35 = vpop.f32.mrb[29].mxu1  ;;  %v6857_v31 = vadd.f32 %v1058_v20, %v6798_v34  ;;  %v5894_v20 = vpop.permute.xlu1 %5893 }
 0x225   : > { %v6835_v49 = vadd.f32 %v1078_v35, %v6798_v34 }
 0x226   : > { %8100 = vst [vmem:[#allocation5_spill] sm:$0xff] %v6829_v32  ;;  %8102 = vst [vmem:[#allocation7_spill] sm:$0xff] %v6857_v31 }
 0x227   : > { %1123 = vmax.xlane.f32.xlu1 %v6829_v32  ;;  %v4949_v38 = vpop.f32.mrb[30].mxu1  ;;  %8101 = vst [vmem:[#allocation6_spill] sm:$0xff] %v6835_v49  ;;  %v5972_v32 = vpack.i.bf16 %v6639_v8, %v6644_v12  ;;  %v5967_v8 = vpack.i.bf16 %v6623_v61, %v6630_v1  ;;  %v5977_v61 = vpack.i.bf16 %v6657_v18, %v6660_v22  ;;  %v5896_v1 = vunpack.i.h.bf16 %v5894_v20 }
 0x228   : > { %5898 = vrot.lane.b32.xlu0 %v6655_v16, %s6420_s9  ;;  %v1088_v44 = vpop.f32.mrb[31].mxu1  ;;  %v6864_v35 = vadd.f32 %v4949_v38, %v6798_v34  ;;  %v5957_v38 = vpack.i.bf16 %v6605_v50, %v6612_v54  ;;  %v5982_v18 = vpack.i.bf16 %v6669_v29, %v6674_v33  ;;  %v5987_v29 = vpack.i.bf16 %v6687_v39, %v6692_v43 }
 0x229   : > { %v6869_v60 = vadd.f32 %v1088_v44, %v6798_v34  ;;  %v6914_v44 = vpop.permute.xlu1 %5903  ;;  %v5992_v39 = vpack.i.bf16 %v6703_v52, %v6707_v56 }
 0x22a   : > { %8104 = vst [vmem:[#allocation9_spill] sm:$0xff] %v6864_v35  ;;  %v5906_v33 = vunpack.i.h.bf16 %v6914_v44 }
 0x22b   : > { %1121 = vmax.xlane.f32.xlu1 %v6835_v49  ;;  %8105 = vst [vmem:[#allocation10_spill] sm:$0xff] %v6869_v60 }
 0x23c   : > { %5913 = vrot.lane.b32.xlu1 %v6701_v51, %s6420_s9 }
 0x240   : > { %5918 = vrot.lane.b32.xlu1 %v6717_v62, %s6420_s9 }
 0x244   : > { %1387 = vrot.lane.b32.xlu1 %v6694_v46, %s6420_s9 }
 0x247   : > { %1103 = vmax.xlane.f32.xlu0 %v6845_v57 }
 0x24b   : > { %1111 = vmax.xlane.f32.xlu0 %v6849_v4 }
 0x24f   : > { %1115 = vmax.xlane.f32.xlu0 %v6853_v26 }
 0x253   : > { %1113 = vmax.xlane.f32.xlu0 %v6857_v31 }
 0x257   : > { %1119 = vmax.xlane.f32.xlu0 %v6861_v40 }
 0x25b   : > { %1127 = vmax.xlane.f32.xlu0 %v6864_v35 }
 0x268   : > { %1125 = vmax.xlane.f32.xlu1 %v6869_v60 }
 0x271   : > { %5908 = vrot.lane.b32.xlu0 %v6685_v37, %s6420_s9 }
 0x275   : > { %1393 = vrot.lane.b32.xlu0 %v6705_v55, %s6420_s9 }
 0x279   : > { %1389 = vrot.lane.b32.xlu1 %v6689_v41, %s6420_s9  ;;  %1397 = vrot.lane.b32.xlu0 %v6721_v0, %s6420_s9 }
 0x27d   : > { %1391 = vrot.lane.b32.xlu1 %v6711_v59, %s6420_s9  ;;  %1401 = vrot.lane.b32.xlu0 %v6729_v7, %s6420_s9 }
 0x281   : > { %1395 = vrot.lane.b32.xlu1 %v6725_v3, %s6420_s9  ;;  %1405 = vrot.lane.b32.xlu0 %v6737_v10, %s6420_s9 }
 0x285   : > { %1399 = vrot.lane.b32.xlu1 %v6733_v9, %s6420_s9  ;;  %1409 = vrot.lane.b32.xlu0 %v6741_v14, %s6420_s9 }
 0x289   : > { %1403 = vrot.lane.b32.xlu1 %v6739_v11, %s6420_s9  ;;  %1413 = vrot.lane.b32.xlu0 %v6749_v17, %s6420_s9 }
 0x28d   : > { %1407 = vrot.lane.b32.xlu1 %v6745_v15, %s6420_s9  ;;  %1417 = vrot.lane.b32.xlu0 %v6753_v21, %s6420_s9 }
 0x291   : > { %1411 = vrot.lane.b32.xlu1 %v6751_v19, %s6420_s9  ;;  %5928 = vrot.lane.b32.xlu0 %v6620_v58, %s6422_s10 }
 0x295   : > { %1415 = vrot.lane.b32.xlu1 %v6757_v23, %s6420_s9  ;;  %5938 = vrot.lane.b32.xlu0 %v6655_v16, %s6422_s10 }
 0x299   : > { %5923 = vrot.lane.b32.xlu1 %v6602_v47, %s6422_s10  ;;  %5948 = vrot.lane.b32.xlu0 %v6685_v37, %s6422_s10 }
 0x29b   : > { %v1100_v25 = vpop.xlane.xlu0 %1099 }
 0x29c   : > { %v1130_v34 = vsub.f32 %v6801_v36, %v1100_v25  ;;  %v5890_v36 = vunpack.i.l.bf16 %v5889_v13 }
 0x29d   : > { %5933 = vrot.lane.b32.xlu1 %v6636_v5, %s6422_s10  ;;  %5958 = vrot.lane.b32.xlu0 %v5957_v38, %s6420_s9 }
 0x29e   : > { %v1147_v60 = vmul.f32 1.442695, %v1130_v34  ;;  %v5891_v34 = vunpack.i.h.bf16 %v5889_v13 }
 0x29f   : > { %v1098_v35 = vpop.xlane.xlu0 %1097 }
 0x2a0   : > { %v1129_v40 = vsub.f32 %v6805_v42, %v1098_v35  ;;  %v1102_v49 = vpop.xlane.xlu1 %1101  ;;  %6122 = vpow2.f32 %v1147_v60  ;;  %v5997_v35 = vpack.i.bf16 %v6719_v63, %v6723_v2  ;;  %v5905_v63 = vunpack.i.l.bf16 %v6914_v44 }
 0x2a1   : > { %v1131_v31 = vsub.f32 %v6808_v48, %v1102_v49  ;;  %5943 = vrot.lane.b32.xlu1 %v6666_v27, %s6422_s10  ;;  %5973 = vrot.lane.b32.xlu0 %v5972_v32, %s6420_s9  ;;  %v5556_v32 = vpack.c.bf16 %v5891_v34, %v5890_v36  ;;  %v5895_v49 = vunpack.i.l.bf16 %v5894_v20 }
 0x2a2   : > { %v1145_v50 = vmul.f32 1.442695, %v1129_v40  ;;  %v5574_v20 = vpack.c.bf16 %v5906_v33, %v5905_v63 }
 0x2a3   : > { %v1149_v54 = vmul.f32 1.442695, %v1131_v31  ;;  %v5899_v31 = vpop.permute.xlu0 %5898 }
 0x2a4   : > { %6124 = vpow2.f32 %v1145_v50  ;;  %v5901_v22 = vunpack.i.h.bf16 %v5899_v31  ;;  %v5900_v40 = vunpack.i.l.bf16 %v5899_v31  ;;  %v1108_v13 = vpop.xlane.xlu1 %1107 }
 0x2a5   : > { %6126 = vpow2.f32 %v1149_v54  ;;  %5953 = vrot.lane.b32.xlu1 %v6701_v51, %s6422_s10  ;;  %2402 = vrot.lane.b32.xlu0 %v6689_v41, %s6422_s10  ;;  %v1134_v56 = vsub.f32 %v6813_v53, %v1108_v13 }
 0x2a6   : > { %v5568_v60 = vpack.c.bf16 %v5901_v22, %v5900_v40  ;;  %v8108_v22 = vld [vmem:[#allocation8_spill] sm:$0xff] }
 0x2a7   : > { %v1155_v34 = vmul.f32 1.442695, %v1134_v56 }
 0x2a8   : > { %v1106_v2 = vpop.xlane.xlu1 %1105 }
 0x2a9   : > { %5963 = vrot.lane.b32.xlu1 %v6717_v62, %s6422_s10  ;;  %2404 = vrot.lane.b32.xlu0 %v6711_v59, %s6422_s10  ;;  %v1133_v25 = vsub.f32 %v6817_v6, %v1106_v2 }
 0x2aa   : > { %v6937_v12 = vpop.eup %6122 }
 0x2ab   : > { %v1153_v50 = vmul.f32 1.442695, %v1133_v25 }
 0x2ac   : > { %v1110_v43 = vpop.xlane.xlu1 %1109 }
 0x2ad   : > { %5968 = vrot.lane.b32.xlu1 %v5967_v8, %s6420_s9  ;;  %2408 = vrot.lane.b32.xlu0 %v6725_v3, %s6422_s10  ;;  %v1135_v54 = vsub.f32 %v6821_v24, %v1110_v43 }
 0x2ae   : > { %v6942_v42 = vpop.eup %6124 }
 0x2af   : > { %v6944_v48 = vpop.eup %6126  ;;  %4982 = vmatprep.mubr.f32.mxu0 %v6942_v42  ;;  %v1157_v53 = vmul.f32 1.442695, %v1135_v54 }
 0x2b0   : > { %4983 = vmatmul.mubr.f32.vlgmr.msra.gmra.mrb[32].mxu0 %v6937_v12  ;;  %v1118_v38 = vpop.xlane.xlu1 %1117 }
 0x2b1   : > { %5555 = vmatpush3.bf16.xpose.msk.msra.mxu0 %vm6596_vm2, %v6793_v28  ;;  %2400 = vrot.lane.b32.xlu1 %v6694_v46, %s6422_s10  ;;  %v5562_v28 = vpack.c.bf16 %v5896_v1, %v5895_v49 }
 0x2b2   : > { %2412 = vrot.lane.b32.xlu0 %v6733_v9, %s6422_s10  ;;  %4985 = vmatprep.mubr.f32.mxu0 %v6944_v48 }
 0x2b3   : > { %5558 = vmatprep.subr.msk.bf16.mxu0 %vm6596_vm2, %v5556_v32 }
 0x2b4   : > { %v1124_v36 = vpop.xlane.xlu1 %1123 }
 0x2b5   : > { %5978 = vrot.lane.b32.xlu1 %v5977_v61, %s6420_s9  ;;  %v8106_v61 = vld [vmem:[#allocation7_spill] sm:$0xff] }
 0x2b6   : > { %2416 = vrot.lane.b32.xlu0 %v6739_v11, %s6422_s10 }
 0x2b9   : > { %5561 = vmatpush3.bf16.xpose.msk.msra.mxu0 %vm6596_vm2, %v5556_v32  ;;  %2406 = vrot.lane.b32.xlu1 %v6705_v55, %s6422_s10 }
 0x2ba   : > { %2418 = vrot.lane.b32.xlu0 %v6737_v10, %s6422_s10  ;;  %5564 = vmatprep.subr.msk.bf16.mxu0 %vm6596_vm2, %v5562_v28 }
 0x2bd   : > { %5983 = vrot.lane.b32.xlu1 %v5982_v18, %s6420_s9 }
 0x2be   : > { %5998 = vrot.lane.b32.xlu0 %v5997_v35, %s6420_s9 }
 0x2c1   : > { %5567 = vmatpush3.bf16.xpose.msk.msra.mxu0 %vm6596_vm2, %v5562_v28  ;;  %2410 = vrot.lane.b32.xlu1 %v6721_v0, %s6422_s10 }
 0x2c2   : > { %2420 = vrot.lane.b32.xlu0 %v6745_v15, %s6422_s10  ;;  %5570 = vmatprep.subr.msk.bf16.mxu0 %vm6596_vm2, %v5568_v60 }
 0x2c5   : > { %5988 = vrot.lane.b32.xlu1 %v5987_v29, %s6420_s9 }
 0x2c6   : > { %2424 = vrot.lane.b32.xlu0 %v6751_v19, %s6422_s10 }
 0x2c9   : > { %5573 = vmatpush3.bf16.xpose.msk.msra.mxu0 %vm6596_vm2, %v5568_v60  ;;  %2414 = vrot.lane.b32.xlu1 %v6729_v7, %s6422_s10 }
 0x2ca   : > { %2428 = vrot.lane.b32.xlu0 %v6757_v23, %s6422_s10  ;;  %5576 = vmatprep.subr.msk.bf16.mxu0 %vm6596_vm2, %v5574_v20 }
 0x2cd   : > { %5993 = vrot.lane.b32.xlu1 %v5992_v39, %s6420_s9 }
 0x2ce   : > { %2430 = vrot.lane.b32.xlu0 %v6753_v21, %s6422_s10 }
 0x2d1   : > { %5579 = vmatpush3.bf16.xpose.msk.msra.mxu0 %vm6596_vm2, %v5574_v20  ;;  %2422 = vrot.lane.b32.xlu1 %v6741_v14, %s6422_s10 }
 0x2d2   : > { %6003 = vrot.lane.b32.xlu0 %v6602_v47, %s6423_s11 }
 0x2d4   : > { %v1104_v52 = vpop.xlane.xlu0 %1103 }
 0x2d5   : > { %v1132_v44 = vsub.f32 %v6845_v57, %v1104_v52  ;;  %2426 = vrot.lane.b32.xlu1 %v6749_v17, %s6422_s10 }
 0x2d6   : > { %6008 = vrot.lane.b32.xlu0 %v6620_v58, %s6423_s11 }
 0x2d7   : > { %v1151_v6 = vmul.f32 1.442695, %v1132_v44 }
 0x2d8   : > { %v1112_v8 = vpop.xlane.xlu0 %1111 }
 0x2d9   : > { %6128 = vpow2.f32 %v1151_v6  ;;  %v1136_v47 = vsub.f32 %v6849_v4, %v1112_v8  ;;  %6013 = vrot.lane.b32.xlu1 %v6636_v5, %s6423_s11  ;;  %v1122_v4 = vpop.xlane.xlu1 %1121  ;;  %v1139_v5 = vsub.f32 %v6825_v30, %v1118_v38 }
 0x2da   : > { %6130 = vpow2.f32 %v1153_v50  ;;  %6018 = vrot.lane.b32.xlu0 %v6655_v16, %s6423_s11  ;;  %v8110_v50 = vld [vmem:[#allocation9_spill] sm:$0xff] }
 0x2db   : > { %6132 = vpow2.f32 %v1155_v34  ;;  %v1159_v24 = vmul.f32 1.442695, %v1136_v47  ;;  %v1165_v31 = vmul.f32 1.442695, %v1139_v5 }
 0x2dc   : > { %v1116_v57 = vpop.xlane.xlu0 %1115  ;;  %6134 = vpow2.f32 %v1157_v53 }
 0x2dd   : > { %6023 = vrot.lane.b32.xlu1 %v6666_v27, %s6423_s11  ;;  %v1138_v58 = vsub.f32 %v6853_v26, %v1116_v57  ;;  %6136 = vpow2.f32 %v1159_v24  ;;  %v8107_v26 = vld [vmem:[#allocation6_spill] sm:$0xff]  ;;  %v5914_v18 = vpop.permute.xlu1 %5913 }
 0x2de   : > { %6028 = vrot.lane.b32.xlu0 %v6685_v37, %s6423_s11  ;;  %v1141_v49 = vsub.f32 %v8107_v26, %v1122_v4  ;;  %v5915_v43 = vunpack.i.l.bf16 %v5914_v18 }
 0x2df   : > { %v1163_v16 = vmul.f32 1.442695, %v1138_v58 }
 0x2e0   : > { %v1114_v32 = vpop.xlane.xlu0 %1113  ;;  %v1169_v60 = vmul.f32 1.442695, %v1141_v49 }
 0x2e1   : > { %v1137_v1 = vsub.f32 %v8106_v61, %v1114_v32  ;;  %6038 = vrot.lane.b32.xlu1 %v6717_v62, %s6423_s11  ;;  %v5919_v63 = vpop.permute.xlu1 %5918 }
 0x2e2   : > { %6033 = vrot.lane.b32.xlu0 %v6701_v51, %s6423_s11  ;;  %v8109_v51 = vld [vmem:[#allocation5_spill] sm:$0xff]  ;;  %v5921_v8 = vunpack.i.h.bf16 %v5919_v63  ;;  %v5920_v34 = vunpack.i.l.bf16 %v5919_v63 }
 0x2e3   : > { %v7035_v27 = vpop.eup %6128  ;;  %v1161_v28 = vmul.f32 1.442695, %v1137_v1  ;;  %v1142_v62 = vsub.f32 %v8109_v51, %v1124_v36  ;;  %v8111_v36 = vld [vmem:[#allocation10_spill] sm:$0xff] }
 0x2e4   : > { %v7038_v37 = vpop.eup %6130  ;;  %4986 = vmatmul.mubr.f32.gmra.mrb[34].mxu0 %v7035_v27  ;;  %v1120_v30 = vpop.xlane.xlu0 %1119  ;;  %v5592_v4 = vpack.c.bf16 %v5921_v8, %v5920_v34 }
 0x2e5   : > { %6138 = vpow2.f32 %v1161_v28  ;;  %v1140_v40 = vsub.f32 %v8108_v22, %v1120_v30  ;;  %3222 = vrot.lane.b32.xlu1 %v6689_v41, %s6423_s11  ;;  %4988 = vmatprep.mubr.f32.mxu0 %v7038_v37  ;;  %v7048_v35 = vpop.eup %6132  ;;  %v1171_v41 = vmul.f32 1.442695, %v1142_v62  ;;  %v1388_v56 = vpop.permute.xlu1 %1387 }
 0x2e6   : > { %6140 = vpow2.f32 %v1163_v16  ;;  %3220 = vrot.lane.b32.xlu0 %v6694_v46, %s6423_s11  ;;  %v7050_v29 = vpop.eup %6134 }
 0x2e7   : > { %v1167_v13 = vmul.f32 1.442695, %v1140_v40  ;;  %6142 = vpow2.f32 %v1165_v31  ;;  %v7058_v46 = vpop.eup %6136 }
 0x2e8   : > { %4989 = vmatmul.mubr.f32.gmra.mrb[36].mxu0 %v7048_v35  ;;  %v1128_v33 = vpop.xlane.xlu0 %1127 }
 0x2e9   : > { %6144 = vpow2.f32 %v1167_v13  ;;  %3224 = vrot.lane.b32.xlu1 %v6711_v59, %s6423_s11  ;;  %4991 = vmatprep.mubr.f32.mxu0 %v7050_v29  ;;  %v5916_v59 = vunpack.i.h.bf16 %v5914_v18  ;;  %v1144_v54 = vsub.f32 %v8110_v50, %v1128_v33 }
 0x2ea   : > { %3226 = vrot.lane.b32.xlu0 %v6705_v55, %s6423_s11  ;;  %6146 = vpow2.f32 %v1169_v60 }
 0x2eb   : > { %6148 = vpow2.f32 %v1171_v41  ;;  %v5586_v44 = vpack.c.bf16 %v5916_v59, %v5915_v43  ;;  %v1175_v53 = vmul.f32 1.442695, %v1144_v54 }
 0x2ec   : > { %4992 = vmatmul.mubr.f32.gmra.mrb[38].mxu0 %v7058_v46  ;;  %v5909_v2 = vpop.permute.xlu0 %5908 }
 0x2ed   : > { %v5911_v20 = vunpack.i.h.bf16 %v5909_v2  ;;  %v5910_v39 = vunpack.i.l.bf16 %v5909_v2  ;;  %3228 = vrot.lane.b32.xlu1 %v6725_v3, %s6423_s11 }
 0x2ee   : > { %3232 = vrot.lane.b32.xlu0 %v6733_v9, %s6423_s11 }
 0x2ef   : > { %v7065_v25 = vpop.eup %6138  ;;  %v5580_v55 = vpack.c.bf16 %v5911_v20, %v5910_v39 }
 0x2f0   : > { %v7067_v38 = vpop.eup %6140  ;;  %4994 = vmatprep.mubr.f32.mxu0 %v7065_v25  ;;  %v1394_v52 = vpop.permute.xlu0 %1393 }
 0x2f1   : > { %3230 = vrot.lane.b32.xlu1 %v6721_v0, %s6423_s11  ;;  %4995 = vmatmul.mubr.f32.gmra.mrb[40].mxu0 %v7067_v38  ;;  %v7073_v3 = vpop.eup %6142 }
 0x2f2   : > { %3236 = vrot.lane.b32.xlu0 %v6739_v11, %s6423_s11  ;;  %5582 = vmatprep.subr.msk.bf16.mxu0 %vm6596_vm2, %v5580_v55 }
 0x2f3   : > { %v7079_v9 = vpop.eup %6144  ;;  %4997 = vmatprep.mubr.f32.mxu0 %v7073_v3  ;;  %5585 = vmatpush3.bf16.xpose.msk.msra.mxu0 %vm6596_vm2, %v5580_v55 }
 0x2f4   : > { %5588 = vmatprep.subr.msk.bf16.mxu0 %vm6596_vm2, %v5586_v44  ;;  %v1398_v0 = vpop.permute.xlu0 %1397  ;;  %v7087_v6 = vpop.eup %6146 }
 0x2f5   : > { %3234 = vrot.lane.b32.xlu1 %v6729_v7, %s6423_s11  ;;  %v1126_v11 = vpop.xlane.xlu1 %1125  ;;  %4998 = vmatmul.mubr.f32.gmra.mrb[42].mxu0 %v7079_v9  ;;  %v7096_v57 = vpop.eup %6148 }
 0x2f6   : > { %v1143_v47 = vsub.f32 %v8111_v36, %v1126_v11  ;;  %3240 = vrot.lane.b32.xlu0 %v6745_v15, %s6423_s11  ;;  %5000 = vmatprep.mubr.f32.mxu0 %v7087_v6 }
 0x2f8   : > { %v1173_v24 = vmul.f32 1.442695, %v1143_v47  ;;  %v1402_v58 = vpop.permute.xlu0 %1401 }
 0x2f9   : > { %3238 = vrot.lane.b32.xlu1 %v6737_v10, %s6423_s11  ;;  %v1390_v7 = vpop.permute.xlu1 %1389  ;;  %5001 = vmatmul.mubr.f32.gmra.mrb[44].mxu0 %v7096_v57 }
 0x2fa   : > { %6150 = vpow2.f32 %v1173_v24  ;;  %3244 = vrot.lane.b32.xlu0 %v6751_v19, %s6423_s11 }
 0x2fb   : > { %6152 = vpow2.f32 %v1175_v53  ;;  %5591 = vmatpush3.bf16.xpose.msk.msra.mxu0 %vm6596_vm2, %v5586_v44 }
 0x2fc   : > { %5594 = vmatprep.subr.msk.bf16.mxu0 %vm6596_vm2, %v5592_v4  ;;  %v1406_v15 = vpop.permute.xlu0 %1405 }
 0x2fd   : > { %3242 = vrot.lane.b32.xlu1 %v6741_v14, %s6423_s11  ;;  %v1392_v10 = vpop.permute.xlu1 %1391 }
 0x300   : > { %v1410_v5 = vpop.permute.xlu0 %1409 }
 0x301   : > { %3246 = vrot.lane.b32.xlu1 %v6749_v17, %s6423_s11  ;;  %v1396_v32 = vpop.permute.xlu1 %1395 }
 0x303   : > { %5597 = vmatpush3.bf16.xpose.msk.msra.mxu0 %vm6596_vm2, %v5592_v4 }
 0x304   : > { %v7113_v19 = vpop.eup %6150  ;;  %v1414_v61 = vpop.permute.xlu0 %1413 }
 0x305   : > { %v7115_v1 = vpop.eup %6152  ;;  %v1400_v16 = vpop.permute.xlu1 %1399  ;;  %5003 = vmatprep.mubr.f32.mxu0 %v7113_v19 }
 0x306   : > { %5004 = vmatmul.mubr.f32.gmra.mrb[46].mxu0 %v7115_v1 }
 0x307   : > { %5038 = vmatprep.mubr.msk.f32.mxu0 %vm855_vm1, %v1388_v56 }
 0x308   : > { %v1418_v14 = vpop.permute.xlu0 %1417 }
 0x309   : > { %v1404_v26 = vpop.permute.xlu1 %1403 }
 0x30a   : > { %5039 = vmatmul.mubr.msk.f32.vlgmr.msra.gmra.mrb[48].mxu0 %vm855_vm1, %v1390_v7 }
 0x30b   : > { %5041 = vmatprep.mubr.msk.f32.mxu0 %vm855_vm1, %v1392_v10 }
 0x30c   : > { %v5929_v17 = vpop.permute.xlu0 %5928 }
 0x30d   : > { %v1408_v49 = vpop.permute.xlu1 %1407  ;;  %v5931_v33 = vunpack.i.h.bf16 %v5929_v17  ;;  %v5930_v41 = vunpack.i.l.bf16 %v5929_v17 }
 0x30e   : > { %5042 = vmatmul.mubr.msk.f32.gmra.mrb[50].mxu0 %vm855_vm1, %v1394_v52 }
 0x30f   : > { %5044 = vmatprep.mubr.msk.f32.mxu0 %vm855_vm1, %v1396_v32 }
 0x310   : > { %v5939_v28 = vpop.permute.xlu0 %5938 }
 0x311   : > { %v1412_v31 = vpop.permute.xlu1 %1411  ;;  %v5940_v54 = vunpack.i.l.bf16 %v5939_v28 }
 0x312   : > { %5045 = vmatmul.mubr.msk.f32.gmra.mrb[52].mxu0 %vm855_vm1, %v1398_v0 }
 0x313   : > { %5047 = vmatprep.mubr.msk.f32.mxu0 %vm855_vm1, %v1400_v16 }
 0x314   : > { %v7126_v30 = vpop.permute.xlu0 %5948 }
 0x315   : > { %v1416_v18 = vpop.permute.xlu1 %1415 }
 0x316   : > { %5048 = vmatmul.mubr.msk.f32.gmra.mrb[54].mxu0 %vm855_vm1, %v1402_v58 }
 0x317   : > { %5050 = vmatprep.mubr.msk.f32.mxu0 %vm855_vm1, %v1404_v26  ;;  %v5950_v26 = vunpack.i.l.bf16 %v7126_v30 }
 0x318   : > { %v5959_v22 = vpop.permute.xlu0 %5958 }
 0x319   : > { %1179 = vadd.xlane.f32.xlu0 %v6937_v12  ;;  %v5961_v40 = vunpack.i.h.bf16 %v5959_v22  ;;  %v5960_v51 = vunpack.i.l.bf16 %v5959_v22  ;;  %v5924_v62 = vpop.permute.xlu1 %5923  ;;  %v5636_v12 = vpack.c.bf16 %v5931_v33, %v5930_v41 }
 0x31a   : > { %v5926_v60 = vunpack.i.h.bf16 %v5924_v62  ;;  %v5925_v13 = vunpack.i.l.bf16 %v5924_v62  ;;  %5051 = vmatmul.mubr.msk.f32.gmra.mrb[56].mxu0 %vm855_vm1, %v1406_v15 }
 0x31b   : > { %5053 = vmatprep.mubr.msk.f32.mxu0 %vm855_vm1, %v1408_v49  ;;  %v5598_v63 = vpack.c.bf16 %v5961_v40, %v5960_v51 }
 0x31c   : > { %v5630_v2 = vpack.c.bf16 %v5926_v60, %v5925_v13  ;;  %v5974_v20 = vpop.permute.xlu0 %5973 }
 0x31d   : > { %1183 = vadd.xlane.f32.xlu0 %v7035_v27  ;;  %v5934_v39 = vpop.permute.xlu1 %5933  ;;  %5599 = vmatprep.subr.bf16.mxu1 %v5598_v63  ;;  %v5976_v11 = vunpack.i.h.bf16 %v5974_v20  ;;  %v5975_v8 = vunpack.i.l.bf16 %v5974_v20 }
 0x31e   : > { %5054 = vmatmul.mubr.msk.f32.gmra.mrb[58].mxu0 %vm855_vm1, %v1410_v5  ;;  %5601 = vmatpush3.bf16.msra.mxu1 %v5598_v63  ;;  %v5936_v43 = vunpack.i.h.bf16 %v5934_v39  ;;  %v5935_v55 = vunpack.i.l.bf16 %v5934_v39 }
 0x31f   : > { %5632 = vmatprep.subr.msk.bf16.mxu0 %vm6596_vm2, %v5630_v2  ;;  %5056 = vmatprep.mubr.msk.f32.mxu0 %vm855_vm1, %v1412_v31 }
 0x320   : > { %5635 = vmatpush3.bf16.xpose.msk.msra.mxu0 %vm6596_vm2, %v5630_v2  ;;  %v7140_v59 = vpop.permute.xlu0 %2402 }
 0x321   : > { %1187 = vadd.xlane.f32.xlu0 %v7048_v35  ;;  %5638 = vmatprep.subr.msk.bf16.mxu0 %vm6596_vm2, %v5636_v12  ;;  %v5944_v27 = vpop.permute.xlu1 %5943  ;;  %v5642_v35 = vpack.c.bf16 %v5936_v43, %v5935_v55 }
 0x322   : > { %5057 = vmatmul.mubr.msk.f32.gmra.mrb[60].mxu0 %vm855_vm1, %v1414_v61  ;;  %v5946_v58 = vunpack.i.h.bf16 %v5944_v27  ;;  %v5945_v7 = vunpack.i.l.bf16 %v5944_v27 }
 0x323   : > { %5059 = vmatprep.mubr.msk.f32.mxu0 %vm855_vm1, %v1416_v18 }
 0x324   : > { %v7147_v52 = vpop.permute.xlu0 %2404  ;;  %v5654_v32 = vpack.c.bf16 %v5946_v58, %v5945_v7 }
 0x325   : > { %1191 = vadd.xlane.f32.xlu0 %v7058_v46  ;;  %v7150_v56 = vpop.permute.xlu1 %5953  ;;  %1177 = vadd.xlane.f32.xlu1 %v6942_v42  ;;  %v5941_v46 = vunpack.i.h.bf16 %v5939_v28 }
 0x326   : > { %5060 = vmatmul.mubr.msk.f32.gmra.mrb[62].mxu0 %vm855_vm1, %v1418_v14  ;;  %v5951_v14 = vunpack.i.h.bf16 %v7126_v30  ;;  %v5956_v30 = vunpack.i.h.bf16 %v7150_v56  ;;  %v5955_v51 = vunpack.i.l.bf16 %v7150_v56 }
 0x327   : > { %v5648_v47 = vpack.c.bf16 %v5941_v46, %v5940_v54 }
 0x328   : > { %5641 = vmatpush3.bf16.xpose.msk.msra.mxu0 %vm6596_vm2, %v5636_v12  ;;  %v7156_v44 = vpop.permute.xlu0 %2408  ;;  %v5660_v31 = vpack.c.bf16 %v5951_v14, %v5950_v26  ;;  %v5666_v41 = vpack.c.bf16 %v5956_v30, %v5955_v51 }
 0x329   : > { %5644 = vmatprep.subr.msk.bf16.mxu0 %vm6596_vm2, %v5642_v35  ;;  %v7160_v50 = vpop.permute.xlu1 %5963  ;;  %1181 = vadd.xlane.f32.xlu1 %v6944_v48 }
 0x32a   : > { %v5966_v39 = vunpack.i.h.bf16 %v7160_v50  ;;  %v5965_v12 = vunpack.i.l.bf16 %v7160_v50 }
 0x32c   : > { %v7163_v0 = vpop.permute.xlu0 %2412  ;;  %v5672_v46 = vpack.c.bf16 %v5966_v39, %v5965_v12 }
 0x32d   : > { %v5969_v42 = vpop.permute.xlu1 %5968  ;;  %1185 = vadd.xlane.f32.xlu1 %v7038_v37  ;;  %v5606_v37 = vpack.c.bf16 %v5976_v11, %v5975_v8 }
 0x32e   : > { %v5971_v34 = vunpack.i.h.bf16 %v5969_v42  ;;  %v5970_v36 = vunpack.i.l.bf16 %v5969_v42 }
 0x330   : > { %5647 = vmatpush3.bf16.xpose.msk.msra.mxu0 %vm6596_vm2, %v5642_v35  ;;  %v7168_v53 = vpop.permute.xlu0 %2416  ;;  %v5602_v24 = vpack.c.bf16 %v5971_v34, %v5970_v36 }
 0x331   : > { %5650 = vmatprep.subr.msk.bf16.mxu0 %vm6596_vm2, %v5648_v47  ;;  %v2401_v48 = vpop.permute.xlu1 %2400  ;;  %1189 = vadd.xlane.f32.xlu1 %v7050_v29 }
 0x332   : > { %5603 = vmatprep.subr.bf16.mxu1 %v5602_v24  ;;  %5202 = vmatprep.mubr.msk.f32.mxu0 %vm855_vm1, %v2401_v48 }
 0x333   : > { %5605 = vmatpush3.bf16.msra.mxu1 %v5602_v24 }
 0x334   : > { %v7174_v4 = vpop.permute.xlu0 %2418  ;;  %5607 = vmatprep.subr.bf16.mxu1 %v5606_v37 }
 0x335   : > { %v5979_v15 = vpop.permute.xlu1 %5978  ;;  %1193 = vadd.xlane.f32.xlu1 %v7065_v25 }
 0x336   : > { %v5981_v10 = vunpack.i.h.bf16 %v5979_v15  ;;  %v5980_v5 = vunpack.i.l.bf16 %v5979_v15 }
 0x337   : > { %5609 = vmatpush3.bf16.msra.mxu1 %v5606_v37 }
 0x338   : > { %5653 = vmatpush3.bf16.xpose.msk.msra.mxu0 %vm6596_vm2, %v5648_v47  ;;  %v5999_v29 = vpop.permute.xlu0 %5998  ;;  %v5610_v61 = vpack.c.bf16 %v5981_v10, %v5980_v5 }
 0x339   : > { %5656 = vmatprep.subr.msk.bf16.mxu0 %vm6596_vm2, %v5654_v32  ;;  %v7181_v16 = vpop.permute.xlu1 %2406  ;;  %v6001_v43 = vunpack.i.h.bf16 %v5999_v29  ;;  %v6000_v55 = vunpack.i.l.bf16 %v5999_v29 }
 0x33a   : > { %5611 = vmatprep.subr.bf16.mxu1 %v5610_v61 }
 0x33b   : > { %5613 = vmatpush3.bf16.msra.mxu1 %v5610_v61  ;;  %v5626_v11 = vpack.c.bf16 %v6001_v43, %v6000_v55 }
 0x33c   : > { %v7185_v25 = vpop.permute.xlu0 %2420 }
 0x33d   : > { %v5984_v17 = vpop.permute.xlu1 %5983 }
 0x33e   : > { %v5986_v49 = vunpack.i.h.bf16 %v5984_v17  ;;  %v5985_v28 = vunpack.i.l.bf16 %v5984_v17 }
 0x340   : > { %5659 = vmatpush3.bf16.xpose.msk.msra.mxu0 %vm6596_vm2, %v5654_v32  ;;  %v7189_v18 = vpop.permute.xlu0 %2424  ;;  %v5614_v22 = vpack.c.bf16 %v5986_v49, %v5985_v28 }
 0x341   : > { %5662 = vmatprep.subr.msk.bf16.mxu0 %vm6596_vm2, %v5660_v31  ;;  %v2411_v40 = vpop.permute.xlu1 %2410 }
 0x342   : > { %5615 = vmatprep.subr.bf16.mxu1 %v5614_v22 }
 0x343   : > { %5617 = vmatpush3.bf16.msra.mxu1 %v5614_v22 }
 0x344   : > { %v7195_v62 = vpop.permute.xlu0 %2428 }
 0x345   : > { %v5989_v60 = vpop.permute.xlu1 %5988 }
 0x346   : > { %v5991_v13 = vunpack.i.h.bf16 %v5989_v60  ;;  %v5990_v33 = vunpack.i.l.bf16 %v5989_v60 }
 0x348   : > { %5665 = vmatpush3.bf16.xpose.msk.msra.mxu0 %vm6596_vm2, %v5660_v31  ;;  %v5618_v63 = vpack.c.bf16 %v5991_v13, %v5990_v33  ;;  %v7201_v20 = vpop.permute.xlu0 %2430 }
 0x349   : > { %5668 = vmatprep.subr.msk.bf16.mxu0 %vm6596_vm2, %v5666_v41  ;;  %v2415_v2 = vpop.permute.xlu1 %2414 }
 0x34a   : > { %5619 = vmatprep.subr.bf16.mxu1 %v5618_v63 }
 0x34b   : > { %5621 = vmatpush3.bf16.msra.mxu1 %v5618_v63 }
 0x34c   : > { %v6004_v54 = vpop.permute.xlu0 %6003 }
 0x34d   : > { %v5994_v27 = vpop.permute.xlu1 %5993  ;;  %v6006_v8 = vunpack.i.h.bf16 %v6004_v54  ;;  %v6005_v34 = vunpack.i.l.bf16 %v6004_v54 }
 0x34e   : > { %v5996_v56 = vunpack.i.h.bf16 %v5994_v27  ;;  %v5995_v35 = vunpack.i.l.bf16 %v5994_v27 }
 0x34f   : > { %v5710_v36 = vpack.c.bf16 %v6006_v8, %v6005_v34 }
 0x350   : > { %5671 = vmatpush3.bf16.xpose.msk.msra.mxu0 %vm6596_vm2, %v5666_v41  ;;  %v5622_v42 = vpack.c.bf16 %v5996_v56, %v5995_v35  ;;  %v6009_v47 = vpop.permute.xlu0 %6008 }
 0x351   : > { %5674 = vmatprep.subr.msk.bf16.mxu0 %vm6596_vm2, %v5672_v46  ;;  %v2423_v50 = vpop.permute.xlu1 %2422  ;;  %v6011_v48 = vunpack.i.h.bf16 %v6009_v47  ;;  %v6010_v37 = vunpack.i.l.bf16 %v6009_v47 }
 0x352   : > { %5623 = vmatprep.subr.bf16.mxu1 %v5622_v42 }
 0x353   : > { %5625 = vmatpush3.bf16.msra.mxu1 %v5622_v42  ;;  %v5716_v58 = vpack.c.bf16 %v6011_v48, %v6010_v37 }
 0x354   : > { %5627 = vmatprep.subr.bf16.mxu1 %v5626_v11 }
 0x355   : > { %v2427_v24 = vpop.permute.xlu1 %2426 }
 0x357   : > { %5629 = vmatpush3.bf16.msra.mxu1 %v5626_v11 }
 0x358   : > { %5677 = vmatpush3.bf16.xpose.msk.msra.mxu0 %vm6596_vm2, %v5672_v46 }
 0x359   : > { %5712 = vmatprep.subr.msk.bf16.mxu0 %vm6596_vm2, %v5710_v36  ;;  %v6014_v7 = vpop.permute.xlu1 %6013 }
 0x35a   : > { %v6016_v15 = vunpack.i.h.bf16 %v6014_v7  ;;  %v6015_v10 = vunpack.i.l.bf16 %v6014_v7  ;;  %v8119_v7 = vld [vmem:[#allocation4_spill] sm:$0xff] }
 0x35c   : > { %v5722_v5 = vpack.c.bf16 %v6016_v15, %v6015_v10 }
 0x35d   : > { %v6024_v61 = vpop.permute.xlu1 %6023 }
 0x35f   : > { %5203 = vmatmul.mubr.msk.f32.vlgmr.msra.gmra.mrb[64].mxu0 %vm855_vm1, %v7140_v59  ;;  %v6019_v59 = vpop.permute.xlu0 %6018 }
 0x360   : > { %5205 = vmatprep.mubr.msk.f32.mxu0 %vm855_vm1, %v7147_v52  ;;  %5715 = vmatpush3.bf16.xpose.msk.msra.mxu0 %vm6596_vm2, %v5710_v36  ;;  %v6021_v52 = vunpack.i.h.bf16 %v6019_v59  ;;  %v6020_v32 = vunpack.i.l.bf16 %v6019_v59 }
 0x361   : > { %5718 = vmatprep.subr.msk.bf16.mxu0 %vm6596_vm2, %v5716_v58  ;;  %v6039_v22 = vpop.permute.xlu1 %6038 }
 0x362   : > { %v6041_v30 = vunpack.i.h.bf16 %v6039_v22  ;;  %v6040_v51 = vunpack.i.l.bf16 %v6039_v22 }
 0x363   : > { %5206 = vmatmul.mubr.msk.f32.gmra.mrb[66].mxu0 %vm855_vm1, %v7181_v16  ;;  %v6029_v29 = vpop.permute.xlu0 %6028  ;;  %v6025_v16 = vunpack.i.l.bf16 %v6024_v61 }
 0x364   : > { %5208 = vmatprep.mubr.msk.f32.mxu0 %vm855_vm1, %v7156_v44  ;;  %v5728_v44 = vpack.c.bf16 %v6021_v52, %v6020_v32  ;;  %v6030_v26 = vunpack.i.l.bf16 %v6029_v29  ;;  %v5752_v60 = vpack.c.bf16 %v6041_v30, %v6040_v51 }
 0x367   : > { %5209 = vmatmul.mubr.msk.f32.gmra.mrb[68].mxu0 %vm855_vm1, %v2411_v40 }
 0x368   : > { %5211 = vmatprep.mubr.msk.f32.mxu0 %vm855_vm1, %v7163_v0  ;;  %5721 = vmatpush3.bf16.xpose.msk.msra.mxu0 %vm6596_vm2, %v5716_v58  ;;  %v6026_v0 = vunpack.i.h.bf16 %v6024_v61 }
 0x369   : > { %5724 = vmatprep.subr.msk.bf16.mxu0 %vm6596_vm2, %v5722_v5 }
 0x36a   : > { %v5734_v14 = vpack.c.bf16 %v6026_v0, %v6025_v16 }
 0x36b   : > { %5212 = vmatmul.mubr.msk.f32.gmra.mrb[70].mxu0 %vm855_vm1, %v2415_v2 }
 0x36c   : > { %5214 = vmatprep.mubr.msk.f32.mxu0 %vm855_vm1, %v7168_v53  ;;  %v6034_v53 = vpop.permute.xlu0 %6033 }
 0x36d   : > { %v6036_v49 = vunpack.i.h.bf16 %v6034_v53  ;;  %v6035_v28 = vunpack.i.l.bf16 %v6034_v53 }
 0x36f   : > { %5215 = vmatmul.mubr.msk.f32.gmra.mrb[72].mxu0 %vm855_vm1, %v7174_v4  ;;  %v6031_v4 = vunpack.i.h.bf16 %v6029_v29  ;;  %v5746_v40 = vpack.c.bf16 %v6036_v49, %v6035_v28 }
 0x370   : > { %5217 = vmatprep.mubr.msk.f32.mxu0 %vm855_vm1, %v7185_v25  ;;  %5727 = vmatpush3.bf16.xpose.msk.msra.mxu0 %vm6596_vm2, %v5722_v5  ;;  %v3221_v25 = vpop.permute.xlu0 %3220 }
 0x371   : > { %5730 = vmatprep.subr.msk.bf16.mxu0 %vm6596_vm2, %v5728_v44  ;;  %v5740_v17 = vpack.c.bf16 %v6031_v4, %v6030_v26 }
 0x373   : > { %5218 = vmatmul.mubr.msk.f32.gmra.mrb[74].mxu0 %vm855_vm1, %v2423_v50 }
 0x374   : > { %5220 = vmatprep.mubr.msk.f32.mxu0 %vm855_vm1, %v7189_v18  ;;  %v3227_v41 = vpop.permute.xlu0 %3226 }
 0x377   : > { %5221 = vmatmul.mubr.msk.f32.gmra.mrb[76].mxu0 %vm855_vm1, %v2427_v24 }
 0x378   : > { %5223 = vmatprep.mubr.msk.f32.mxu0 %vm855_vm1, %v7195_v62  ;;  %5733 = vmatpush3.bf16.xpose.msk.msra.mxu0 %vm6596_vm2, %v5728_v44  ;;  %v3223_v62 = vpop.permute.xlu1 %3222  ;;  %v3233_v2 = vpop.permute.xlu0 %3232 }
 0x379   : > { %5736 = vmatprep.subr.msk.bf16.mxu0 %vm6596_vm2, %v5734_v14 }
 0x37b   : > { %5224 = vmatmul.mubr.msk.f32.gmra.mrb[78].mxu0 %vm855_vm1, %v7201_v20 }
 0x37c   : > { %5340 = vmatprep.mubr.msk.f32.mxu0 %vm855_vm1, %v3221_v25  ;;  %v3225_v13 = vpop.permute.xlu1 %3224  ;;  %v3237_v39 = vpop.permute.xlu0 %3236 }
 0x380   : > { %5739 = vmatpush3.bf16.xpose.msk.msra.mxu0 %vm6596_vm2, %v5734_v14  ;;  %v3229_v33 = vpop.permute.xlu1 %3228  ;;  %v3241_v45 = vpop.permute.xlu0 %3240 }
 0x381   : > { %5742 = vmatprep.subr.msk.bf16.mxu0 %vm6596_vm2, %v5740_v17 }
 0x383   : > { %v7260_v31 = vpop.f32.mrb[32].mxu0 }
 0x384   : > { %v7262_v18 = vpop.f32.mrb[33].mxu0  ;;  %v3231_v63 = vpop.permute.xlu1 %3230 }
 0x385   : > { %v3245_v43 = vpop.permute.xlu0 %3244 }
 0x388   : > { %5745 = vmatpush3.bf16.xpose.msk.msra.mxu0 %vm6596_vm2, %v5740_v17  ;;  %v3235_v20 = vpop.permute.xlu1 %3234 }
 0x389   : > { %5748 = vmatprep.subr.msk.bf16.mxu0 %vm6596_vm2, %v5746_v40 }
 0x38c   : > { %v3239_v12 = vpop.permute.xlu1 %3238 }
 0x390   : > { %5751 = vmatpush3.bf16.xpose.msk.msra.mxu0 %vm6596_vm2, %v5746_v40  ;;  %v3243_v27 = vpop.permute.xlu1 %3242 }
 0x391   : > { %5754 = vmatprep.subr.msk.bf16.mxu0 %vm6596_vm2, %v5752_v60 }
 0x394   : > { %v3247_v55 = vpop.permute.xlu1 %3246 }
 0x398   : > { %5757 = vmatpush3.bf16.xpose.msk.msra.mxu0 %vm6596_vm2, %v5752_v60 }
 0x39f   : > { %5341 = vmatmul.mubr.msk.f32.vlgmr.msra.gmra.mrb[80].mxu0 %vm855_vm1, %v3223_v62 }
 0x3a0   : > { %5343 = vmatprep.mubr.msk.f32.mxu0 %vm855_vm1, %v3225_v13 }
 0x3a3   : > { %5344 = vmatmul.mubr.msk.f32.gmra.mrb[82].mxu0 %vm855_vm1, %v3227_v41 }
 0x3a4   : > { %5346 = vmatprep.mubr.msk.f32.mxu0 %vm855_vm1, %v3229_v33 }
 0x3a7   : > { %5347 = vmatmul.mubr.msk.f32.gmra.mrb[84].mxu0 %vm855_vm1, %v3231_v63 }
 0x3a8   : > { %5349 = vmatprep.mubr.msk.f32.mxu0 %vm855_vm1, %v3233_v2 }
 0x3ab   : > { %5350 = vmatmul.mubr.msk.f32.gmra.mrb[86].mxu0 %vm855_vm1, %v3235_v20 }
 0x3ac   : > { %5352 = vmatprep.mubr.msk.f32.mxu0 %vm855_vm1, %v3237_v39 }
 0x3af   : > { %5353 = vmatmul.mubr.msk.f32.gmra.mrb[88].mxu0 %vm855_vm1, %v3239_v12 }
 0x3b0   : > { %5355 = vmatprep.mubr.msk.f32.mxu0 %vm855_vm1, %v3241_v45 }
 0x3b3   : > { %5356 = vmatmul.mubr.msk.f32.gmra.mrb[90].mxu0 %vm855_vm1, %v3243_v27 }
 0x3b4   : > { %5358 = vmatprep.mubr.msk.f32.mxu0 %vm855_vm1, %v3245_v43 }
 0x3b7   : > { %5359 = vmatmul.mubr.msk.f32.gmra.mrb[92].mxu0 %vm855_vm1, %v3247_v55  ;;  %v7287_v56 = vpop.f32.mrb[34].mxu0 }
 0x3b8   : > { %v7289_v35 = vpop.f32.mrb[35].mxu0 }
 0x3bb   : > { %v7291_v46 = vpop.f32.mrb[36].mxu0 }
 0x3bc   : > { %8112 = vst [vmem:[#allocation7_spill] sm:$0xff] %v7291_v46  ;;  %v7293_v54 = vpop.f32.mrb[37].mxu0 }
 0x3bf   : > { %v7295_v42 = vpop.f32.mrb[38].mxu0 }
 0x3c0   : > { %8113 = vst [vmem:[#allocation6_spill] sm:$0xff] %v7295_v42  ;;  %v7297_v11 = vpop.f32.mrb[39].mxu0 }
 0x3c1   : > { %8114 = vst [vmem:[#allocation8_spill] sm:$0xff] %v7297_v11 }
 0x3c4   : > { %v7299_v8 = vpop.f32.mrb[40].mxu0 }
 0x3c5   : > { %v7301_v34 = vpop.f32.mrb[41].mxu0 }
 0x3c6   : > { %8115 = vst [vmem:[#allocation5_spill] sm:$0xff] %v7301_v34 }
 0x3c8   : > { %v7303_v50 = vpop.f32.mrb[42].mxu0 }
 0x3c9   : > { %v7305_v36 = vpop.f32.mrb[43].mxu0 }
 0x3ca   : > { %8116 = vst [vmem:[#allocation9_spill] sm:$0xff] %v7305_v36 }
 0x3cc   : > { %v7307_v47 = vpop.f32.mrb[44].mxu0 }
 0x3cd   : > { %v7309_v24 = vpop.f32.mrb[45].mxu0 }
 0x3d9   : > { %v7311_v48 = vpop.f32.mrb[46].mxu0 }
 0x3da   : > { %8117 = vst [vmem:[#allocation10_spill] sm:$0xff] %v7311_v48  ;;  %v7313_v37 = vpop.f32.mrb[47].mxu0 }
 0x3db   : > { %8118 = vst [vmem:[#allocation11_spill] sm:$0xff] %v7313_v37 }
 0x3dd   : > { %v5040_v58 = vpop.f32.mrb[48].mxu0 }
 0x3de   : > { %v7316_v15 = vadd.f32 %v5040_v58, %v8119_v7  ;;  %v1581_v10 = vpop.f32.mrb[49].mxu0 }
 0x3df   : > { %v7319_v5 = vadd.f32 %v1581_v10, %v8119_v7  ;;  %v6378_v10 = vld [vmem:[#allocation3 + $0x28] sm:$0xff] }
 0x3e0   : > { %1662 = vmax.xlane.f32.xlu1 %v7316_v15 }
 0x3e1   : > { %v5043_v59 = vpop.f32.mrb[50].mxu0  ;;  %1660 = vmax.xlane.f32.xlu0 %v7319_v5 }
 0x3e2   : > { %v7324_v52 = vadd.f32 %v5043_v59, %v8119_v7  ;;  %v1591_v32 = vpop.f32.mrb[51].mxu0 }
 0x3e3   : > { %v7327_v44 = vadd.f32 %v1591_v32, %v8119_v7 }
 0x3e4   : > { %1666 = vmax.xlane.f32.xlu1 %v7324_v52 }
 0x3e5   : > { %v5046_v29 = vpop.f32.mrb[52].mxu0  ;;  %1664 = vmax.xlane.f32.xlu0 %v7327_v44 }
 0x3e6   : > { %v7332_v61 = vadd.f32 %v5046_v29, %v8119_v7  ;;  %v1601_v0 = vpop.f32.mrb[53].mxu0  ;;  %v7422_v29 = vpop.xlane.xlu1 %1177 }
 0x3e7   : > { %v7335_v16 = vadd.f32 %v1601_v0, %v8119_v7  ;;  %v6380_v0 = vld [vmem:[#allocation3 + $0x8] sm:$0xff] }
 0x3e8   : > { %1670 = vmax.xlane.f32.xlu1 %v7332_v61 }
 0x3e9   : > { %v5049_v53 = vpop.f32.mrb[54].mxu0  ;;  %1668 = vmax.xlane.f32.xlu0 %v7335_v16 }
 0x3ea   : > { %v7340_v14 = vadd.f32 %v5049_v53, %v8119_v7  ;;  %v1611_v4 = vpop.f32.mrb[55].mxu0  ;;  %v6381_v53 = vld [vmem:[#allocation3] sm:$0xff] }
 0x3eb   : > { %v7343_v26 = vadd.f32 %v1611_v4, %v8119_v7  ;;  %v7424_v4 = vpack.i.bf16 %v6380_v0, %v6381_v53 }
 0x3ec   : > { %1674 = vmax.xlane.f32.xlu1 %v7340_v14 }
 0x3ed   : > { %v5052_v25 = vpop.f32.mrb[56].mxu0  ;;  %1672 = vmax.xlane.f32.xlu0 %v7343_v26 }
 0x3ee   : > { %v7348_v17 = vadd.f32 %v5052_v25, %v8119_v7  ;;  %v1621_v49 = vpop.f32.mrb[57].mxu0  ;;  %v6382_v25 = vld [vmem:[#allocation3 + $0x18] sm:$0xff] }
 0x3ef   : > { %v7351_v28 = vadd.f32 %v1621_v49, %v8119_v7  ;;  %v6383_v49 = vld [vmem:[#allocation3 + $0x10] sm:$0xff] }
 0x3f0   : > { %1678 = vmax.xlane.f32.xlu1 %v7348_v17 }
 0x3f1   : > { %v5055_v22 = vpop.f32.mrb[58].mxu0  ;;  %1676 = vmax.xlane.f32.xlu0 %v7351_v28 }
 0x3f2   : > { %v7356_v40 = vadd.f32 %v5055_v22, %v8119_v7  ;;  %v1631_v30 = vpop.f32.mrb[59].mxu0  ;;  %v7428_v22 = vpack.i.bf16 %v6382_v25, %v6383_v49 }
 0x3f3   : > { %v7359_v51 = vadd.f32 %v1631_v30, %v8119_v7  ;;  %v7430_v30 = vpop.xlane.xlu1 %1181 }
 0x3f4   : > { %1682 = vmax.xlane.f32.xlu1 %v7356_v40  ;;  %8121 = vst [vmem:[#allocation12_spill] sm:$0xff] %v7428_v22 }
 0x3f5   : > { %v5058_v62 = vpop.f32.mrb[60].mxu0  ;;  %1680 = vmax.xlane.f32.xlu0 %v7359_v51 }
 0x3f6   : > { %v7364_v60 = vadd.f32 %v5058_v62, %v8119_v7  ;;  %v1641_v13 = vpop.f32.mrb[61].mxu0  ;;  %v7432_v62 = vpop.xlane.xlu0 %1179 }
 0x3f7   : > { %v7368_v41 = vadd.f32 %v1641_v13, %v8119_v7  ;;  %v6384_v13 = vld [vmem:[#allocation3 + $0x38] sm:$0xff] }
 0x3f8   : > { %1686 = vmax.xlane.f32.xlu1 %v7364_v60 }
 0x3f9   : > { %v5061_v33 = vpop.f32.mrb[62].mxu0 }
 0x3fa   : > { %v1651_v63 = vpop.f32.mrb[63].mxu0  ;;  %v7376_v20 = vadd.f32 %v5061_v33, %v8119_v7  ;;  %v6385_v33 = vld [vmem:[#allocation3 + $0x30] sm:$0xff] }
 0x3fb   : > { %v7371_v2 = vadd.f32 %v1651_v63, %v8119_v7  ;;  %v6057_v63 = vpack.i.bf16 %v6384_v13, %v6385_v33 }
 0x3fc   : > { %1684 = vmax.xlane.f32.xlu1 %v7368_v41 }
 0x3fd   : > { %1688 = vmax.xlane.f32.xlu0 %v7371_v2 }
 0x400   : > { %1690 = vmax.xlane.f32.xlu1 %v7376_v20 }
 0x411   : > { %3250 = vrot.lane.b32.xlu1 %v6753_v21, %s6423_s11 }
 0x413   : > { %3248 = vrot.lane.b32.xlu0 %v6757_v23, %s6423_s11 }
 0x432   : > { %v5204_v39 = vpop.f32.mrb[64].mxu0  ;;  %1195 = vadd.xlane.f32.xlu0 %v7067_v38 }
 0x433   : > { %v2594_v12 = vpop.f32.mrb[65].mxu0  ;;  %v7452_v33 = vadd.f32 %v5204_v39, %v8119_v7 }
 0x435   : > { %1197 = vadd.xlane.f32.xlu1 %v7073_v3 }
 0x436   : > { %v7385_v45 = vpop.f32.mrb[66].mxu0  ;;  %1199 = vadd.xlane.f32.xlu0 %v7079_v9 }
 0x437   : > { %v7388_v27 = vpop.f32.mrb[67].mxu0 }
 0x439   : > { %1205 = vadd.xlane.f32.xlu1 %v7113_v19 }
 0x43a   : > { %v7391_v43 = vpop.f32.mrb[68].mxu0  ;;  %1201 = vadd.xlane.f32.xlu0 %v7087_v6 }
 0x43b   : > { %v7394_v21 = vpop.f32.mrb[69].mxu0 }
 0x43d   : > { %1207 = vadd.xlane.f32.xlu1 %v7115_v1  ;;  %v6379_v1 = vld [vmem:[#allocation3 + $0x20] sm:$0xff] }
 0x43e   : > { %v7397_v23 = vpop.f32.mrb[70].mxu0  ;;  %1203 = vadd.xlane.f32.xlu0 %v7096_v57  ;;  %v7414_v59 = vpack.i.bf16 %v6378_v10, %v6379_v1  ;;  %v7437_v10 = vpop.xlane.xlu1 %1185 }
 0x43f   : > { %v7400_v38 = vpop.f32.mrb[71].mxu0  ;;  %v7439_v1 = vpop.xlane.xlu0 %1183 }
 0x440   : > { %8120 = vst [vmem:[#allocation4_spill] sm:$0xff] %v7414_v59 }
 0x442   : > { %v7402_v3 = vpop.f32.mrb[72].mxu0  ;;  %v7441_v0 = vpop.xlane.xlu1 %1189 }
 0x443   : > { %v7404_v9 = vpop.f32.mrb[73].mxu0  ;;  %v7443_v53 = vpop.xlane.xlu0 %1187 }
 0x446   : > { %v7406_v55 = vpop.f32.mrb[74].mxu0  ;;  %v7445_v25 = vpop.xlane.xlu1 %1193 }
 0x447   : > { %v7408_v19 = vpop.f32.mrb[75].mxu0  ;;  %v7447_v49 = vpop.xlane.xlu0 %1191 }
 0x44a   : > { %v7410_v58 = vpop.f32.mrb[76].mxu0 }
 0x44b   : > { %v7412_v6 = vpop.f32.mrb[77].mxu0 }
 0x44e   : > { %v7416_v32 = vpop.f32.mrb[78].mxu0  ;;  %6053 = vrot.lane.b32.xlu1 %v7414_v59, %s6422_s10 }
 0x44f   : > { %v7420_v57 = vpop.f32.mrb[79].mxu0 }
 0x454   : > { %6043 = vrot.lane.b32.xlu0 %v7424_v4, %s6422_s10 }
 0x458   : > { %6048 = vrot.lane.b32.xlu0 %v7428_v22, %s6422_s10 }
 0x45c   : > { %6058 = vrot.lane.b32.xlu0 %v6057_v63, %s6422_s10 }
 0x46d   : > { %v1663_v48 = vpop.xlane.xlu1 %1662 }
 0x46e   : > { %v1693_v37 = vsub.f32 %v7316_v15, %v1663_v48  ;;  %v1661_v22 = vpop.xlane.xlu0 %1660  ;;  %v7462_v15 = vadd.f32 %v2594_v12, %v8119_v7 }
 0x46f   : > { %v1692_v13 = vsub.f32 %v7319_v5, %v1661_v22 }
 0x470   : > { %v1710_v63 = vmul.f32 1.442695, %v1693_v37 }
 0x471   : > { %v1708_v59 = vmul.f32 1.442695, %v1692_v13  ;;  %v1667_v36 = vpop.xlane.xlu1 %1666 }
 0x472   : > { %v1695_v34 = vsub.f32 %v7324_v52, %v1667_v36  ;;  %v7455_v42 = vpop.f32.mrb[80].mxu0  ;;  %2675 = vmax.xlane.f32.xlu1 %v7452_v33  ;;  %v1665_v11 = vpop.xlane.xlu0 %1664 }
 0x473   : > { %6154 = vpow2.f32 %v1708_v59  ;;  %v7458_v46 = vpop.f32.mrb[81].mxu0  ;;  %v1694_v48 = vsub.f32 %v7327_v44, %v1665_v11  ;;  %v7473_v11 = vadd.f32 %v7385_v45, %v8119_v7  ;;  %v7477_v44 = vadd.f32 %v7388_v27, %v8119_v7 }
 0x474   : > { %6156 = vpow2.f32 %v1710_v63  ;;  %v1714_v5 = vmul.f32 1.442695, %v1695_v34  ;;  %v7489_v27 = vadd.f32 %v7391_v43, %v8119_v7 }
 0x475   : > { %v1712_v37 = vmul.f32 1.442695, %v1694_v48  ;;  %v1671_v39 = vpop.xlane.xlu1 %1670 }
 0x476   : > { %v1697_v22 = vsub.f32 %v7332_v61, %v1671_v39  ;;  %v7465_v36 = vpop.f32.mrb[82].mxu0  ;;  %2673 = vmax.xlane.f32.xlu1 %v7462_v15  ;;  %v1669_v52 = vpop.xlane.xlu0 %1668 }
 0x477   : > { %8122 = vst [vmem:[#allocation13_spill] sm:$0xff] %v7465_v36  ;;  %6158 = vpow2.f32 %v1712_v37  ;;  %v7468_v59 = vpop.f32.mrb[83].mxu0  ;;  %v1696_v13 = vsub.f32 %v7335_v16, %v1669_v52 }
 0x478   : > { %6160 = vpow2.f32 %v1714_v5  ;;  %v1718_v34 = vmul.f32 1.442695, %v1697_v22 }
 0x479   : > { %v1716_v61 = vmul.f32 1.442695, %v1696_v13  ;;  %v1675_v12 = vpop.xlane.xlu1 %1674 }
 0x47a   : > { %v1699_v63 = vsub.f32 %v7340_v14, %v1675_v12  ;;  %v7480_v48 = vpop.f32.mrb[84].mxu0  ;;  %2679 = vmax.xlane.f32.xlu1 %v7473_v11  ;;  %v1673_v37 = vpop.xlane.xlu0 %1672  ;;  %v7493_v14 = vadd.f32 %v7394_v21, %v8119_v7 }
 0x47b   : > { %8123 = vst [vmem:[#allocation14_spill] sm:$0xff] %v7480_v48  ;;  %6162 = vpow2.f32 %v1716_v61  ;;  %v7483_v16 = vpop.f32.mrb[85].mxu0  ;;  %v1698_v45 = vsub.f32 %v7343_v26, %v1673_v37  ;;  %2677 = vmax.xlane.f32.xlu0 %v7477_v44 }
 0x47c   : > { %8124 = vst [vmem:[#allocation15_spill] sm:$0xff] %v7483_v16  ;;  %6164 = vpow2.f32 %v1718_v34  ;;  %v1722_v39 = vmul.f32 1.442695, %v1699_v63 }
 0x47d   : > { %v6155_v5 = vpop.eup %6154  ;;  %v1720_v22 = vmul.f32 1.442695, %v1698_v45  ;;  %v1679_v52 = vpop.xlane.xlu1 %1678 }
 0x47e   : > { %v6157_v13 = vpop.eup %6156  ;;  %v1701_v61 = vsub.f32 %v7348_v17, %v1679_v52  ;;  %v7496_v12 = vpop.f32.mrb[86].mxu0  ;;  %2683 = vmax.xlane.f32.xlu1 %v7489_v27  ;;  %5094 = vmatprep.mubr.f32.mxu1 %v6155_v5 }
 0x47f   : > { %8125 = vst [vmem:[#allocation16_spill] sm:$0xff] %v7496_v12  ;;  %v1677_v26 = vpop.xlane.xlu0 %1676  ;;  %6166 = vpow2.f32 %v1720_v22  ;;  %v7499_v43 = vpop.f32.mrb[87].mxu0  ;;  %2681 = vmax.xlane.f32.xlu0 %v7493_v14  ;;  %5095 = vmatmul.mubr.f32.vlgmr.msra.gmra.mrb[32].mxu1 %v6157_v13 }
 0x480   : > { %8126 = vst [vmem:[#allocation17_spill] sm:$0xff] %v7499_v43  ;;  %v1700_v34 = vsub.f32 %v7351_v28, %v1677_v26  ;;  %v1726_v21 = vmul.f32 1.442695, %v1701_v61  ;;  %6168 = vpow2.f32 %v1722_v39 }
 0x481   : > { %v6159_v63 = vpop.eup %6158  ;;  %v1683_v45 = vpop.xlane.xlu1 %1682 }
 0x482   : > { %v1724_v37 = vmul.f32 1.442695, %v1700_v34  ;;  %v6161_v17 = vpop.eup %6160  ;;  %6170 = vpow2.f32 %v1726_v21  ;;  %v1703_v52 = vsub.f32 %v7356_v40, %v1683_v45  ;;  %v7504_v12 = vpop.f32.mrb[88].mxu0  ;;  %1740 = vadd.xlane.f32.xlu1 %v6155_v5  ;;  %5097 = vmatprep.mubr.f32.mxu1 %v6159_v63 }
 0x483   : > { %8127 = vst [vmem:[#allocation18_spill] sm:$0xff] %v7504_v12  ;;  %v1681_v22 = vpop.xlane.xlu0 %1680  ;;  %v7506_v48 = vpop.f32.mrb[89].mxu0  ;;  %1742 = vadd.xlane.f32.xlu0 %v6157_v13  ;;  %5098 = vmatmul.mubr.f32.gmra.mrb[34].mxu1 %v6161_v17 }
 0x484   : > { %6172 = vpow2.f32 %v1724_v37  ;;  %8128 = vst [vmem:[#allocation19_spill] sm:$0xff] %v7506_v48  ;;  %v1702_v28 = vsub.f32 %v7359_v51, %v1681_v22  ;;  %v1730_v39 = vmul.f32 1.442695, %v1703_v52 }
 0x485   : > { %v6163_v61 = vpop.eup %6162  ;;  %v1687_v34 = vpop.xlane.xlu1 %1686 }
 0x486   : > { %v1728_v26 = vmul.f32 1.442695, %v1702_v28  ;;  %v6165_v43 = vpop.eup %6164  ;;  %v7509_v21 = vpop.f32.mrb[90].mxu0  ;;  %1746 = vadd.xlane.f32.xlu1 %v6161_v17  ;;  %5100 = vmatprep.mubr.f32.mxu1 %v6163_v61  ;;  %v1705_v5 = vsub.f32 %v7364_v60, %v1687_v34 }
 0x487   : > { %8129 = vst [vmem:[#allocation20_spill] sm:$0xff] %v7509_v21  ;;  %v7511_v40 = vpop.f32.mrb[91].mxu0  ;;  %5101 = vmatmul.mubr.f32.gmra.mrb[36].mxu1 %v6165_v43 }
 0x488   : > { %6174 = vpow2.f32 %v1728_v26  ;;  %8130 = vst [vmem:[#allocation21_spill] sm:$0xff] %v7511_v40  ;;  %v1734_v21 = vmul.f32 1.442695, %v1705_v5 }
 0x489   : > { %v6167_v37 = vpop.eup %6166  ;;  %6176 = vpow2.f32 %v1730_v39  ;;  %v1685_v51 = vpop.xlane.xlu1 %1684 }
 0x48a   : > { %v7514_v13 = vpop.f32.mrb[92].mxu0  ;;  %v1704_v45 = vsub.f32 %v7368_v41, %v1685_v51  ;;  %1744 = vadd.xlane.f32.xlu1 %v6159_v63  ;;  %1752 = vadd.xlane.f32.xlu0 %v6167_v37  ;;  %v1689_v52 = vpop.xlane.xlu0 %1688  ;;  %v7530_v51 = vadd.f32 %v7404_v9, %v8119_v7 }
 0x48b   : > { %8131 = vst [vmem:[#allocation22_spill] sm:$0xff] %v7514_v13  ;;  %v6169_v22 = vpop.eup %6168  ;;  %v7517_v28 = vpop.f32.mrb[93].mxu0  ;;  %5103 = vmatprep.mubr.f32.mxu1 %v6167_v37  ;;  %v1706_v17 = vsub.f32 %v7371_v2, %v1689_v52 }
 0x48c   : > { %8132 = vst [vmem:[#allocation23_spill] sm:$0xff] %v7517_v28  ;;  %v6171_v26 = vpop.eup %6170  ;;  %v1732_v12 = vmul.f32 1.442695, %v1704_v45  ;;  %5104 = vmatmul.mubr.f32.gmra.mrb[38].mxu1 %v6169_v22  ;;  %v6387_v45 = vld [vmem:[#allocation3 + $0x40] sm:$0xff] }
 0x48d   : > { %v1736_v39 = vmul.f32 1.442695, %v1706_v17  ;;  %v1691_v34 = vpop.xlane.xlu1 %1690  ;;  %v6389_v17 = vld [vmem:[#allocation3 + $0x50] sm:$0xff] }
 0x48e   : > { %v6173_v60 = vpop.eup %6172  ;;  %6178 = vpow2.f32 %v1732_v12  ;;  %v1707_v13 = vsub.f32 %v7376_v20, %v1691_v34  ;;  %1750 = vadd.xlane.f32.xlu1 %v6165_v43  ;;  %1758 = vadd.xlane.f32.xlu0 %v6171_v26  ;;  %v3249_v41 = vpop.permute.xlu0 %3248 }
 0x48f   : > { %6180 = vpow2.f32 %v1736_v39  ;;  %5106 = vmatprep.mubr.f32.mxu1 %v6173_v60  ;;  %5361 = vmatprep.mubr.msk.f32.mxu0 %vm855_vm1, %v3249_v41 }
 0x490   : > { %6182 = vpow2.f32 %v1734_v21  ;;  %v1738_v63 = vmul.f32 1.442695, %v1707_v13  ;;  %5107 = vmatmul.mubr.f32.gmra.mrb[40].mxu1 %v6171_v26  ;;  %v6386_v13 = vld [vmem:[#allocation3 + $0x48] sm:$0xff] }
 0x491   : > { %v3251_v5 = vpop.permute.xlu1 %3250  ;;  %v7533_v52 = vpack.i.bf16 %v6386_v13, %v6387_v45  ;;  %v6390_v13 = vld [vmem:[#allocation3 + $0x68] sm:$0xff]  ;;  %v6391_v45 = vld [vmem:[#allocation3 + $0x60] sm:$0xff] }
 0x492   : > { %v6175_v2 = vpop.eup %6174  ;;  %6184 = vpow2.f32 %v1738_v63  ;;  %1748 = vadd.xlane.f32.xlu1 %v6163_v61  ;;  %1756 = vadd.xlane.f32.xlu0 %v6173_v60  ;;  %v7525_v61 = vadd.f32 %v7400_v38, %v8119_v7 }
 0x493   : > { %v6177_v37 = vpop.eup %6176  ;;  %5109 = vmatprep.mubr.f32.mxu1 %v6175_v2  ;;  %5362 = vmatmul.mubr.msk.f32.gmra.mrb[94].mxu0 %vm855_vm1, %v3251_v5  ;;  %8133 = vst [vmem:[#allocation24_spill] sm:$0xff] %v7533_v52 }
 0x494   : > { %5110 = vmatmul.mubr.f32.gmra.mrb[42].mxu1 %v6177_v37 }
 0x496   : > { %1754 = vadd.xlane.f32.xlu1 %v6169_v22  ;;  %1760 = vadd.xlane.f32.xlu0 %v6175_v2  ;;  %v6388_v22 = vld [vmem:[#allocation3 + $0x58] sm:$0xff] }
 0x497   : > { %v7537_v26 = vpack.i.bf16 %v6388_v22, %v6389_v17  ;;  %v6392_v22 = vld [vmem:[#allocation3 + $0x78] sm:$0xff]  ;;  %v6393_v17 = vld [vmem:[#allocation3 + $0x70] sm:$0xff] }
 0x498   : > { %v6179_v20 = vpop.eup %6178 }
 0x499   : > { %v6181_v12 = vpop.eup %6180  ;;  %5112 = vmatprep.mubr.f32.mxu1 %v6179_v20  ;;  %8134 = vst [vmem:[#allocation25_spill] sm:$0xff] %v7537_v26 }
 0x49a   : > { %v6183_v43 = vpop.eup %6182  ;;  %1762 = vadd.xlane.f32.xlu1 %v6177_v37  ;;  %1764 = vadd.xlane.f32.xlu0 %v6179_v20  ;;  %v2013_v20 = vld [vmem:[%s8075_s4 + $0x8] sm:$0xff] }
 0x49b   : > { %5113 = vmatmul.mubr.f32.gmra.mrb[44].mxu1 %v6183_v43  ;;  %5118 = vmatprep.subr.mxu1 %v2013_v20 }
 0x49c   : > { %v6185_v21 = vpop.eup %6184  ;;  %5115 = vmatprep.mubr.f32.mxu1 %v6181_v12  ;;  %5119 = vmatpush3.msra.mxu1 %v2013_v20 }
 0x49e   : > { %1766 = vadd.xlane.f32.xlu1 %v6183_v43  ;;  %1770 = vadd.xlane.f32.xlu0 %v6185_v21  ;;  %v7555_v43 = vadd.f32 %v7397_v23, %v8119_v7  ;;  %v7573_v23 = vadd.f32 %v7408_v19, %v8119_v7 }
 0x49f   : > { %5116 = vmatmul.mubr.f32.gmra.mrb[46].mxu1 %v6185_v21  ;;  %v7579_v21 = vadd.f32 %v7412_v6, %v8119_v7 }
 0x4a2   : > { %2685 = vmax.xlane.f32.xlu0 %v7525_v61 }
 0x4a6   : > { %2689 = vmax.xlane.f32.xlu0 %v7530_v51 }
 0x4af   : > { %6063 = vrot.lane.b32.xlu1 %v7533_v52, %s6422_s10 }
 0x4bc   : > { %6068 = vrot.lane.b32.xlu0 %v7537_v26, %s6422_s10  ;;  %v7614_v26 = vadd.f32 %v7410_v58, %v8119_v7 }
 0x4be   : > { %8137 = vst [vmem:[#allocation28_spill] sm:$0xff] %v7614_v26 }
 0x4bf   : > { %v1196_v38 = vpop.xlane.xlu0 %1195 }
 0x4c0   : > { %6186 = vrcp.f32 %v1196_v38  ;;  %v7590_v38 = vpack.i.bf16 %v6392_v22, %v6393_v17  ;;  %v7608_v17 = vadd.f32 %v7406_v55, %v8119_v7 }
 0x4c2   : > { %8136 = vst [vmem:[#allocation27_spill] sm:$0xff] %v7590_v38 }
 0x4c3   : > { %v1200_v9 = vpop.xlane.xlu0 %1199 }
 0x4c4   : > { %6188 = vrcp.f32 %v1200_v9 }
 0x4c7   : > { %v1202_v60 = vpop.xlane.xlu0 %1201 }
 0x4c8   : > { %6190 = vrcp.f32 %v1202_v60 }
 0x4ca   : > { %v6187_v39 = vpop.eup %6186 }
 0x4cb   : > { %v1204_v34 = vpop.xlane.xlu0 %1203  ;;  %v7542_v41 = vmul.f32 %v6187_v39, %v7299_v8 }
 0x4cc   : > { %6192 = vrcp.f32 %v1204_v34 }
 0x4ce   : > { %v6189_v63 = vpop.eup %6188 }
 0x4cf   : > { %v7545_v2 = vmul.f32 %v6189_v63, %v7303_v50  ;;  %v7561_v50 = vld [vmem:[%s8075_s4] sm:$0xff]  ;;  %v7596_v9 = vpop.permute.xlu0 %6043 }
 0x4d0   : > { %5144 = vmatprep.subr.mxu1 %v7561_v50 }
 0x4d2   : > { %v6191_v5 = vpop.eup %6190 }
 0x4d3   : > { %1768 = vadd.xlane.f32.xlu1 %v6181_v12  ;;  %v7548_v37 = vmul.f32 %v6191_v5, %v7309_v24  ;;  %v7569_v12 = vadd.f32 %v7402_v3, %v8119_v7  ;;  %v7584_v3 = vpack.i.bf16 %v6390_v13, %v6391_v45  ;;  %v7600_v39 = vpop.permute.xlu0 %6048 }
 0x4d5   : > { %8135 = vst [vmem:[#allocation26_spill] sm:$0xff] %v7584_v3 }
 0x4d6   : > { %v6193_v8 = vpop.eup %6192 }
 0x4d7   : > { %2687 = vmax.xlane.f32.xlu1 %v7555_v43  ;;  %v7564_v24 = vmul.f32 %v6193_v8, %v7307_v47  ;;  %v7582_v47 = vpop.xlane.xlu1 %1197  ;;  %v7602_v63 = vpop.permute.xlu0 %6058 }
 0x4db   : > { %2693 = vmax.xlane.f32.xlu0 %v7573_v23  ;;  %2691 = vmax.xlane.f32.xlu1 %v7569_v12  ;;  %v7588_v19 = vpop.xlane.xlu1 %1205 }
 0x4df   : > { %2697 = vmax.xlane.f32.xlu0 %v7579_v21  ;;  %v7594_v6 = vpop.xlane.xlu1 %1207 }
 0x4e3   : > { %v7598_v60 = vpop.permute.xlu1 %6053 }
 0x4ec   : > { %6073 = vrot.lane.b32.xlu1 %v7584_v3, %s6422_s10 }
 0x4f5   : > { %6078 = vrot.lane.b32.xlu0 %v7590_v38, %s6422_s10 }
 0x4ff   : > { %v2676_v34 = vpop.xlane.xlu1 %2675 }
 0x500   : > { %v2706_v13 = vsub.f32 %v7452_v33, %v2676_v34 }
 0x502   : > { %v2723_v38 = vmul.f32 1.442695, %v2706_v13 }
 0x503   : > { %v2674_v5 = vpop.xlane.xlu1 %2673 }
 0x504   : > { %v2705_v8 = vsub.f32 %v7462_v15, %v2674_v5  ;;  %v7618_v15 = vadd.f32 %v7420_v57, %v8119_v7 }
 0x506   : > { %v2721_v45 = vmul.f32 1.442695, %v2705_v8  ;;  %8138 = vst [vmem:[#allocation29_spill] sm:$0xff] %v7618_v15 }
 0x507   : > { %v2680_v33 = vpop.xlane.xlu1 %2679 }
 0x508   : > { %v2678_v20 = vpop.xlane.xlu0 %2677  ;;  %6194 = vpow2.f32 %v2721_v45  ;;  %v2708_v55 = vsub.f32 %v7473_v11, %v2680_v33 }
 0x509   : > { %v2707_v28 = vsub.f32 %v7477_v44, %v2678_v20  ;;  %6196 = vpow2.f32 %v2723_v38  ;;  %v7625_v44 = vadd.f32 %v7416_v32, %v8119_v7 }
 0x50a   : > { %v2727_v20 = vmul.f32 1.442695, %v2708_v55 }
 0x50b   : > { %v2725_v5 = vmul.f32 1.442695, %v2707_v28  ;;  %8139 = vst [vmem:[#allocation30_spill] sm:$0xff] %v7625_v44  ;;  %v2684_v8 = vpop.xlane.xlu1 %2683 }
 0x50c   : > { %v2682_v22 = vpop.xlane.xlu0 %2681  ;;  %v2710_v11 = vsub.f32 %v7489_v27, %v2684_v8 }
 0x50d   : > { %6198 = vpow2.f32 %v2725_v5  ;;  %v2709_v57 = vsub.f32 %v7493_v14, %v2682_v22 }
 0x50e   : > { %6200 = vpow2.f32 %v2727_v20  ;;  %v2731_v33 = vmul.f32 1.442695, %v2710_v11 }
 0x50f   : > { %v2729_v28 = vmul.f32 1.442695, %v2709_v57  ;;  %v1741_v57 = vpop.xlane.xlu1 %1740 }
 0x510   : > { %2695 = vmax.xlane.f32.xlu1 %v7608_v17  ;;  %v1743_v34 = vpop.xlane.xlu0 %1742 }
 0x511   : > { %6202 = vpow2.f32 %v2729_v28 }
 0x512   : > { %v7629_v13 = vpop.eup %6194  ;;  %6204 = vpow2.f32 %v2731_v33 }
 0x513   : > { %v7635_v32 = vpop.eup %6196  ;;  %v1747_v33 = vpop.xlane.xlu1 %1746 }
 0x514   : > { %2701 = vmax.xlane.f32.xlu0 %v7618_v15  ;;  %2699 = vmax.xlane.f32.xlu1 %v7614_v26 }
 0x517   : > { %v1753_v58 = vpop.xlane.xlu0 %1752  ;;  %v7638_v55 = vpop.eup %6198 }
 0x518   : > { %2703 = vmax.xlane.f32.xlu1 %v7625_v44  ;;  %v7643_v22 = vpop.eup %6200  ;;  %v1745_v40 = vpop.xlane.xlu1 %1744  ;;  %v6045_v44 = vunpack.i.l.bf16 %v7596_v9 }
 0x51b   : > { %v7631_v45 = vpop.xlane.xlu0 %1758  ;;  %v7648_v27 = vpop.eup %6202 }
 0x51c   : > { %2753 = vadd.xlane.f32.xlu1 %v7629_v13  ;;  %v7653_v8 = vpop.eup %6204  ;;  %v1751_v52 = vpop.xlane.xlu1 %1750 }
 0x51d   : > { %8140 = vst [vmem:[#allocation31_spill] sm:$0xff] %v7653_v8 }
 0x51f   : > { %v1757_v38 = vpop.xlane.xlu0 %1756 }
 0x520   : > { %2755 = vadd.xlane.f32.xlu1 %v7635_v32  ;;  %v1749_v16 = vpop.xlane.xlu1 %1748 }
 0x523   : > { %v7640_v14 = vpop.xlane.xlu0 %1760 }
 0x524   : > { %2757 = vadd.xlane.f32.xlu1 %v7638_v55  ;;  %v1755_v36 = vpop.xlane.xlu1 %1754 }
 0x527   : > { %v7645_v5 = vpop.xlane.xlu0 %1764 }
 0x528   : > { %2759 = vadd.xlane.f32.xlu1 %v7643_v22 }
 0x52b   : > { %v7650_v20 = vpop.xlane.xlu0 %1770 }
 0x52c   : > { %2761 = vadd.xlane.f32.xlu1 %v7648_v27 }
 0x52f   : > { %v2686_v11 = vpop.xlane.xlu0 %2685 }
 0x530   : > { %v2711_v28 = vsub.f32 %v7525_v61, %v2686_v11  ;;  %2763 = vadd.xlane.f32.xlu1 %v7653_v8  ;;  %v1763_v61 = vpop.xlane.xlu1 %1762 }
 0x532   : > { %v2733_v3 = vmul.f32 1.442695, %v2711_v28  ;;  %v6046_v28 = vunpack.i.h.bf16 %v7596_v9 }
 0x534   : > { %6206 = vpow2.f32 %v2733_v3 }
 0x535   : > { %6208 = vrcp.f32 %v1741_v57 }
 0x536   : > { %6210 = vrcp.f32 %v1743_v34  ;;  %v7665_v34 = vpack.c.bf16 %v6046_v28, %v6045_v44 }
 0x537   : > { %6212 = vrcp.f32 %v1745_v40 }
 0x538   : > { %6214 = vrcp.f32 %v1747_v33 }
 0x539   : > { %6216 = vrcp.f32 %v1749_v16 }
 0x53a   : > { %6218 = vrcp.f32 %v1751_v52 }
 0x53b   : > { %6220 = vrcp.f32 %v1753_v58 }
 0x53c   : > { %6222 = vrcp.f32 %v1755_v36 }
 0x53d   : > { %6224 = vrcp.f32 %v1757_v38 }
 0x53e   : > { %v7657_v48 = vpop.eup %6206  ;;  %6226 = vrcp.f32 %v7631_v45 }
 0x53f   : > { %8141 = vst [vmem:[#allocation32_spill] sm:$0xff] %v7657_v48  ;;  %2765 = vadd.xlane.f32.xlu0 %v7657_v48  ;;  %v6209_v3 = vpop.eup %6208  ;;  %6228 = vrcp.f32 %v7640_v14 }
 0x540   : > { %v6211_v48 = vpop.eup %6210  ;;  %6230 = vrcp.f32 %v1763_v61 }
 0x541   : > { %6083 = vrot.lane.b32.xlu1 %v7424_v4, %s6423_s11  ;;  %v1767_v4 = vpop.xlane.xlu1 %1766  ;;  %v6213_v40 = vpop.eup %6212  ;;  %6232 = vrcp.f32 %v7645_v5 }
 0x542   : > { %v6215_v52 = vpop.eup %6214  ;;  %6234 = vrcp.f32 %v1767_v4 }
 0x543   : > { %v6217_v58 = vpop.eup %6216  ;;  %6236 = vrcp.f32 %v7422_v29 }
 0x544   : > { %v6219_v36 = vpop.eup %6218 }
 0x545   : > { %v7673_v44 = vpop.permute.xlu1 %6063  ;;  %v6221_v38 = vpop.eup %6220 }
 0x546   : > { %v6223_v45 = vpop.eup %6222 }
 0x547   : > { %v6225_v14 = vpop.eup %6224 }
 0x552   : > { %v5096_v11 = vpop.f32.mrb[32].mxu1 }
 0x553   : > { %v1902_v8 = vpop.f32.mrb[33].mxu1  ;;  %v1998_v26 = vmul.f32 %v6211_v48, %v5096_v11 }
 0x554   : > { %v1997_v15 = vmul.f32 %v6209_v3, %v1902_v8 }
 0x556   : > { %v5099_v57 = vpop.f32.mrb[34].mxu1  ;;  %5120 = vmatprep.mubr.msk.f32.mxu1 %vm855_vm1, %v1997_v15 }
 0x557   : > { %v1912_v16 = vpop.f32.mrb[35].mxu1  ;;  %5121 = vmatmul.mubr.msk.f32.vlgmr.msra.gmra.mrb[48].mxu1 %vm855_vm1, %v1998_v26  ;;  %v2000_v9 = vmul.f32 %v6215_v52, %v5099_v57 }
 0x558   : > { %v1999_v33 = vmul.f32 %v6213_v40, %v1912_v16  ;;  %5145 = vmatpush3.msra.mxu1 %v7561_v50  ;;  %v7680_v40 = vadd.f32 %v7455_v42, %v8119_v7 }
 0x559   : > { %5679 = vmatprep.subr.bf16.mxu1 %v7665_v34 }
 0x55a   : > { %v5102_v48 = vpop.f32.mrb[36].mxu1  ;;  %5123 = vmatprep.mubr.msk.f32.mxu1 %vm855_vm1, %v1999_v33  ;;  %v6227_v33 = vpop.eup %6226 }
 0x55b   : > { %v1922_v15 = vpop.f32.mrb[37].mxu1  ;;  %5124 = vmatmul.mubr.msk.f32.gmra.mrb[50].mxu1 %vm855_vm1, %v2000_v9  ;;  %v2002_v8 = vmul.f32 %v6219_v36, %v5102_v48 }
 0x55c   : > { %v2001_v26 = vmul.f32 %v6217_v58, %v1922_v15 }
 0x55e   : > { %5126 = vmatprep.mubr.msk.f32.mxu1 %vm855_vm1, %v2001_v26 }
 0x55f   : > { %v5105_v50 = vpop.f32.mrb[38].mxu1  ;;  %5127 = vmatmul.mubr.msk.f32.gmra.mrb[52].mxu1 %vm855_vm1, %v2002_v8  ;;  %v6229_v8 = vpop.eup %6228 }
 0x560   : > { %v1932_v11 = vpop.f32.mrb[39].mxu1  ;;  %v1769_v3 = vpop.xlane.xlu1 %1768  ;;  %v2004_v57 = vmul.f32 %v6223_v45, %v5105_v50 }
 0x561   : > { %v2003_v28 = vmul.f32 %v6221_v38, %v1932_v11  ;;  %6238 = vrcp.f32 %v1769_v3  ;;  %v6231_v50 = vpop.eup %6230 }
 0x562   : > { %v6233_v45 = vpop.eup %6232 }
 0x563   : > { %v5108_v16 = vpop.f32.mrb[40].mxu1  ;;  %5129 = vmatprep.mubr.msk.f32.mxu1 %vm855_vm1, %v2003_v28 }
 0x564   : > { %v1942_v52 = vpop.f32.mrb[41].mxu1  ;;  %5130 = vmatmul.mubr.msk.f32.gmra.mrb[54].mxu1 %vm855_vm1, %v2004_v57  ;;  %v2688_v61 = vpop.xlane.xlu1 %2687  ;;  %v2006_v58 = vmul.f32 %v6227_v33, %v5108_v16 }
 0x565   : > { %v2005_v9 = vmul.f32 %v6225_v14, %v1942_v52  ;;  %v2712_v48 = vsub.f32 %v7555_v43, %v2688_v61  ;;  %3495 = vmax.xlane.f32.xlu1 %v7680_v40  ;;  %v6235_v57 = vpop.eup %6234 }
 0x566   : > { %v7687_v42 = vpop.f32.mrb[94].mxu0  ;;  %v6237_v14 = vpop.eup %6236 }
 0x567   : > { %v2735_v15 = vmul.f32 1.442695, %v2712_v48  ;;  %v5111_v36 = vpop.f32.mrb[42].mxu1  ;;  %5132 = vmatprep.mubr.msk.f32.mxu1 %vm855_vm1, %v2005_v9  ;;  %v7691_v26 = vpop.f32.mrb[95].mxu0 }
 0x568   : > { %v1952_v5 = vpop.f32.mrb[43].mxu1  ;;  %5133 = vmatmul.mubr.msk.f32.gmra.mrb[56].mxu1 %vm855_vm1, %v2006_v58  ;;  %v2692_v43 = vpop.xlane.xlu1 %2691  ;;  %v2008_v29 = vmul.f32 %v6231_v50, %v5111_v36  ;;  %v1370_v58 = vmul.f32 %v6237_v14, %v7262_v18  ;;  %v7717_v36 = vadd.f32 %v7458_v46, %v8119_v7 }
 0x569   : > { %6240 = vpow2.f32 %v2735_v15  ;;  %v2007_v4 = vmul.f32 %v6229_v8, %v1952_v5  ;;  %v2714_v38 = vsub.f32 %v7569_v12, %v2692_v43  ;;  %v6051_v8 = vunpack.i.h.bf16 %v7600_v39 }
 0x56a   : > { %6242 = vrcp.f32 %v7650_v20  ;;  %v6056_v5 = vunpack.i.h.bf16 %v7598_v60  ;;  %v6055_v43 = vunpack.i.l.bf16 %v7598_v60  ;;  %v6061_v60 = vunpack.i.h.bf16 %v7602_v63 }
 0x56b   : > { %6244 = vrcp.f32 %v7432_v62  ;;  %v2739_v11 = vmul.f32 1.442695, %v2714_v38  ;;  %5135 = vmatprep.mubr.msk.f32.mxu1 %vm855_vm1, %v2007_v4  ;;  %v6239_v20 = vpop.eup %6238  ;;  %v6060_v4 = vunpack.i.l.bf16 %v7602_v63  ;;  %v6065_v63 = vunpack.i.l.bf16 %v7673_v44 }
 0x56c   : > { %6246 = vrcp.f32 %v7430_v30  ;;  %5136 = vmatmul.mubr.msk.f32.gmra.mrb[58].mxu1 %vm855_vm1, %v2008_v29  ;;  %v5686_v38 = vpack.c.bf16 %v6056_v5, %v6055_v43  ;;  %v8148_v43 = vld [vmem:[#allocation12_spill] sm:$0xff] }
 0x56d   : > { %6248 = vpow2.f32 %v2739_v11  ;;  %v8143_v11 = vld [vmem:[#allocation8_spill] sm:$0xff] }
 0x56e   : > { %v5114_v3 = vpop.f32.mrb[44].mxu1  ;;  %6250 = vrcp.f32 %v7437_v10 }
 0x56f   : > { %v1962_v28 = vpop.f32.mrb[45].mxu1  ;;  %v2010_v12 = vmul.f32 %v6235_v57, %v5114_v3  ;;  %6252 = vrcp.f32 %v7439_v1  ;;  %v7709_v1 = vpop.xlane.xlu0 %2689 }
 0x570   : > { %v2009_v16 = vmul.f32 %v6233_v45, %v1962_v28  ;;  %6254 = vrcp.f32 %v7441_v0  ;;  %v6050_v0 = vunpack.i.l.bf16 %v7600_v39  ;;  %v7731_v39 = vadd.f32 %v7468_v59, %v8119_v7 }
 0x571   : > { %6256 = vrcp.f32 %v7443_v53  ;;  %v5690_v45 = vpack.c.bf16 %v6061_v60, %v6060_v4  ;;  %v6066_v28 = vunpack.i.h.bf16 %v7673_v44  ;;  %v6074_v44 = vpop.permute.xlu1 %6073 }
 0x572   : > { %v5117_v62 = vpop.f32.mrb[46].mxu1  ;;  %5138 = vmatprep.mubr.msk.f32.mxu1 %vm855_vm1, %v2009_v16  ;;  %6258 = vrcp.f32 %v7445_v25  ;;  %v5682_v50 = vpack.c.bf16 %v6051_v8, %v6050_v0  ;;  %v8144_v16 = vld [vmem:[#allocation6_spill] sm:$0xff]  ;;  %v6075_v8 = vunpack.i.l.bf16 %v6074_v44 }
 0x573   : > { %v7703_v52 = vpop.eup %6240  ;;  %v1972_v30 = vpop.f32.mrb[47].mxu1  ;;  %5139 = vmatmul.mubr.msk.f32.gmra.mrb[60].mxu1 %vm855_vm1, %v2010_v12  ;;  %6260 = vrcp.f32 %v7447_v49  ;;  %v8145_v12 = vld [vmem:[#allocation5_spill] sm:$0xff] }
 0x574   : > { %v6243_v61 = vpop.eup %6242  ;;  %v2011_v33 = vmul.f32 %v6239_v20, %v1972_v30  ;;  %2767 = vadd.xlane.f32.xlu0 %v7703_v52  ;;  %v6069_v25 = vpop.permute.xlu0 %6068  ;;  %6262 = vrcp.f32 %v7582_v47 }
 0x575   : > { %v6245_v9 = vpop.eup %6244  ;;  %v2012_v10 = vmul.f32 %v6243_v61, %v5117_v62  ;;  %6264 = vrcp.f32 %v7588_v19  ;;  %v5694_v61 = vpack.c.bf16 %v6066_v28, %v6065_v63 }
 0x576   : > { %v6247_v48 = vpop.eup %6246  ;;  %5141 = vmatprep.mubr.msk.f32.mxu1 %vm855_vm1, %v2011_v33  ;;  %v1371_v53 = vmul.f32 %v6245_v9, %v7260_v31  ;;  %v6071_v33 = vunpack.i.h.bf16 %v6069_v25  ;;  %v6070_v9 = vunpack.i.l.bf16 %v6069_v25  ;;  %6266 = vrcp.f32 %v7594_v6  ;;  %v8147_v6 = vld [vmem:[#allocation4_spill] sm:$0xff] }
 0x577   : > { %v7713_v15 = vpop.eup %6248  ;;  %5142 = vmatmul.mubr.msk.f32.gmra.mrb[62].mxu1 %vm855_vm1, %v2012_v10  ;;  %v1372_v18 = vmul.f32 %v6247_v48, %v7289_v35  ;;  %v8146_v10 = vld [vmem:[#allocation9_spill] sm:$0xff] }
 0x578   : > { %5146 = vmatprep.mubr.msk.f32.mxu1 %vm855_vm1, %v1370_v58  ;;  %2771 = vadd.xlane.f32.xlu1 %v7713_v15  ;;  %v6251_v46 = vpop.eup %6250  ;;  %v7745_v29 = vpop.xlane.xlu0 %2693  ;;  %v5698_v19 = vpack.c.bf16 %v6071_v33, %v6070_v9  ;;  %v6076_v58 = vunpack.i.h.bf16 %v6074_v44 }
 0x579   : > { %3493 = vmax.xlane.f32.xlu0 %v7717_v36  ;;  %v6253_v31 = vpop.eup %6252  ;;  %v1374_v49 = vmul.f32 %v6251_v46, %v7293_v54 }
 0x57a   : > { %v1373_v35 = vmul.f32 %v6253_v31, %v7287_v56  ;;  %v6255_v59 = vpop.eup %6254  ;;  %v8142_v56 = vld [vmem:[#allocation7_spill] sm:$0xff] }
 0x57b   : > { %5147 = vmatmul.mubr.msk.f32.vlgmr.msra.gmra.mrb[48].mxu1 %vm855_vm1, %v1371_v53  ;;  %v1376_v3 = vmul.f32 %v6255_v59, %v8143_v11  ;;  %v8154_v11 = vld [vmem:[#allocation32_spill] sm:$0xff] }
 0x57c   : > { %5681 = vmatpush3.bf16.msra.mxu1 %v7665_v34  ;;  %5149 = vmatprep.mubr.msk.f32.mxu1 %vm855_vm1, %v1372_v18  ;;  %v6257_v34 = vpop.eup %6256  ;;  %v2698_v62 = vpop.xlane.xlu0 %2697  ;;  %v5702_v18 = vpack.c.bf16 %v6076_v58, %v6075_v8 }
 0x57d   : > { %5683 = vmatprep.subr.bf16.mxu1 %v5682_v50  ;;  %3497 = vmax.xlane.f32.xlu1 %v7731_v39  ;;  %v1375_v47 = vmul.f32 %v6257_v34, %v8142_v56  ;;  %v6259_v54 = vpop.eup %6258 }
 0x57e   : > { %v6261_v57 = vpop.eup %6260  ;;  %v1378_v20 = vmul.f32 %v6259_v54, %v8145_v12 }
 0x57f   : > { %5150 = vmatmul.mubr.msk.f32.gmra.mrb[50].mxu1 %vm855_vm1, %v1373_v35  ;;  %v1377_v14 = vmul.f32 %v6261_v57, %v8144_v16  ;;  %v6263_v30 = vpop.eup %6262  ;;  %v8150_v35 = vld [vmem:[#allocation10_spill] sm:$0xff] }
 0x580   : > { %5685 = vmatpush3.bf16.msra.mxu1 %v5682_v50  ;;  %5152 = vmatprep.mubr.msk.f32.mxu1 %vm855_vm1, %v1374_v49  ;;  %v1380_v48 = vmul.f32 %v6263_v30, %v8146_v10  ;;  %v6079_v0 = vpop.permute.xlu0 %6078  ;;  %v6265_v53 = vpop.eup %6264  ;;  %v8149_v50 = vld [vmem:[#allocation11_spill] sm:$0xff]  ;;  %v8158_v10 = vld [vmem:[#allocation17_spill] sm:$0xff] }
 0x581   : > { %5687 = vmatprep.subr.bf16.mxu1 %v5686_v38  ;;  %v6081_v46 = vunpack.i.h.bf16 %v6079_v0  ;;  %v6080_v5 = vunpack.i.l.bf16 %v6079_v0  ;;  %v1384_v31 = vmul.f32 %v6265_v53, %v8149_v50  ;;  %v6394_v53 = vld [vmem:[#allocation3 + $0x38] sm:$0xff]  ;;  %v8161_v50 = vld [vmem:[#allocation16_spill] sm:$0xff] }
 0x583   : > { %5153 = vmatmul.mubr.msk.f32.gmra.mrb[52].mxu1 %vm855_vm1, %v1375_v47  ;;  %v5706_v25 = vpack.c.bf16 %v6081_v46, %v6080_v5  ;;  %v8153_v47 = vld [vmem:[#allocation31_spill] sm:$0xff]  ;;  %v8159_v5 = vld [vmem:[#allocation24_spill] sm:$0xff] }
 0x584   : > { %5689 = vmatpush3.bf16.msra.mxu1 %v5686_v38  ;;  %5155 = vmatprep.mubr.msk.f32.mxu1 %vm855_vm1, %v1376_v3  ;;  %v8155_v3 = vld [vmem:[#allocation30_spill] sm:$0xff] }
 0x585   : > { %5691 = vmatprep.subr.bf16.mxu1 %v5690_v45 }
 0x587   : > { %5156 = vmatmul.mubr.msk.f32.gmra.mrb[54].mxu1 %vm855_vm1, %v1377_v14 }
 0x588   : > { %5693 = vmatpush3.bf16.msra.mxu1 %v5690_v45  ;;  %5158 = vmatprep.mubr.msk.f32.mxu1 %vm855_vm1, %v1378_v20  ;;  %v8156_v20 = vld [vmem:[#allocation13_spill] sm:$0xff] }
 0x589   : > { %5695 = vmatprep.subr.bf16.mxu1 %v5694_v61 }
 0x58b   : > { %5159 = vmatmul.mubr.msk.f32.gmra.mrb[56].mxu1 %vm855_vm1, %v7542_v41  ;;  %v6267_v41 = vpop.eup %6266 }
 0x58c   : > { %5697 = vmatpush3.bf16.msra.mxu1 %v5694_v61  ;;  %5161 = vmatprep.mubr.msk.f32.mxu1 %vm855_vm1, %v1380_v48  ;;  %v1385_v49 = vmul.f32 %v6267_v41, %v8150_v35  ;;  %v7821_v48 = vadd.f32 %v8158_v10, %v8119_v7  ;;  %v8163_v35 = vld [vmem:[#allocation21_spill] sm:$0xff] }
 0x58d   : > { %5699 = vmatprep.subr.bf16.mxu1 %v5698_v19 }
 0x58e   : > { %6093 = vrot.lane.b32.xlu1 %v8147_v6, %s6423_s11 }
 0x58f   : > { %5162 = vmatmul.mubr.msk.f32.gmra.mrb[58].mxu1 %vm855_vm1, %v7545_v2  ;;  %6088 = vrot.lane.b32.xlu0 %v8148_v43, %s6423_s11  ;;  %v2713_v2 = vsub.f32 %v7530_v51, %v7709_v1  ;;  %v2717_v1 = vsub.f32 %v7579_v21, %v2698_v62  ;;  %v8157_v62 = vld [vmem:[#allocation15_spill] sm:$0xff]  ;;  %v8160_v43 = vld [vmem:[#allocation14_spill] sm:$0xff] }
 0x590   : > { %5701 = vmatpush3.bf16.msra.mxu1 %v5698_v19  ;;  %5164 = vmatprep.mubr.msk.f32.mxu1 %vm855_vm1, %v7548_v37  ;;  %v3010_v37 = vld [vmem:[%s8075_s4 + $0x10] sm:$0xff]  ;;  %v7809_v30 = vadd.f32 %v8157_v62, %v8119_v7  ;;  %v7836_v41 = vadd.f32 %v8160_v43, %v8119_v7 }
 0x591   : > { %5703 = vmatprep.subr.bf16.mxu1 %v5702_v18  ;;  %v2737_v59 = vmul.f32 1.442695, %v2713_v2 }
 0x593   : > { %5165 = vmatmul.mubr.msk.f32.gmra.mrb[60].mxu1 %vm855_vm1, %v7564_v24  ;;  %v2715_v24 = vsub.f32 %v7573_v23, %v7745_v29  ;;  %6268 = vpow2.f32 %v2737_v59  ;;  %v2745_v23 = vmul.f32 1.442695, %v2717_v1  ;;  %v8152_v29 = vld [vmem:[#allocation29_spill] sm:$0xff] }
 0x594   : > { %5705 = vmatpush3.bf16.msra.mxu1 %v5702_v18  ;;  %5167 = vmatprep.mubr.msk.f32.mxu1 %vm855_vm1, %v1384_v31  ;;  %v6395_v18 = vld [vmem:[#allocation3 + $0x30] sm:$0xff]  ;;  %v7841_v31 = vadd.f32 %v8161_v50, %v8119_v7 }
 0x595   : > { %5707 = vmatprep.subr.bf16.mxu1 %v5706_v25  ;;  %v2741_v51 = vmul.f32 1.442695, %v2715_v24  ;;  %v6097_v46 = vpack.i.bf16 %v6394_v53, %v6395_v18  ;;  %v8169_v18 = vld [vmem:[#allocation27_spill] sm:$0xff] }
 0x597   : > { %5168 = vmatmul.mubr.msk.f32.gmra.mrb[62].mxu1 %vm855_vm1, %v1385_v49  ;;  %6270 = vpow2.f32 %v2741_v51  ;;  %v7851_v49 = vadd.f32 %v8163_v35, %v8119_v7 }
 0x598   : > { %5709 = vmatpush3.bf16.msra.mxu1 %v5706_v25  ;;  %5258 = vmatprep.mubr.f32.mxu1 %v7629_v13  ;;  %v8162_v25 = vld [vmem:[#allocation19_spill] sm:$0xff] }
 0x599   : > { %5282 = vmatprep.subr.mxu1 %v3010_v37  ;;  %v7845_v2 = vadd.f32 %v8162_v25, %v8119_v7 }
 0x59b   : > { %5259 = vmatmul.mubr.f32.vlgmr.msra.gmra.mrb[64].mxu1 %v7635_v32  ;;  %v8151_v32 = vld [vmem:[#allocation28_spill] sm:$0xff] }
 0x59c   : > { %5261 = vmatprep.mubr.f32.mxu1 %v7638_v55  ;;  %5283 = vmatpush3.msra.mxu1 %v3010_v37 }
 0x59d   : > { %v2696_v60 = vpop.xlane.xlu1 %2695  ;;  %v6269_v54 = vpop.eup %6268 }
 0x59e   : > { %v2716_v4 = vsub.f32 %v7608_v17, %v2696_v60 }
 0x59f   : > { %5262 = vmatmul.mubr.f32.gmra.mrb[66].mxu1 %v7643_v22 }
 0x5a0   : > { %v2743_v13 = vmul.f32 1.442695, %v2716_v4  ;;  %5264 = vmatprep.mubr.f32.mxu1 %v7648_v27  ;;  %v8164_v4 = vld [vmem:[#allocation26_spill] sm:$0xff] }
 0x5a1   : > { %v2700_v38 = vpop.xlane.xlu1 %2699  ;;  %v2702_v34 = vpop.xlane.xlu0 %2701 }
 0x5a2   : > { %6272 = vpow2.f32 %v2743_v13  ;;  %v2718_v55 = vsub.f32 %v8151_v32, %v2700_v38  ;;  %v2719_v56 = vsub.f32 %v8152_v29, %v2702_v34  ;;  %v6271_v63 = vpop.eup %6270 }
 0x5a3   : > { %5265 = vmatmul.mubr.f32.gmra.mrb[68].mxu1 %v8153_v47  ;;  %6274 = vpow2.f32 %v2745_v23 }
 0x5a4   : > { %v2747_v21 = vmul.f32 1.442695, %v2718_v55  ;;  %5267 = vmatprep.mubr.f32.mxu1 %v8154_v11  ;;  %v2749_v17 = vmul.f32 1.442695, %v2719_v56 }
 0x5a5   : > { %v2704_v22 = vpop.xlane.xlu1 %2703 }
 0x5a6   : > { %6276 = vpow2.f32 %v2747_v21  ;;  %v2720_v27 = vsub.f32 %v8155_v3, %v2704_v22  ;;  %v8166_v22 = vld [vmem:[#allocation23_spill] sm:$0xff] }
 0x5a7   : > { %5268 = vmatmul.mubr.f32.gmra.mrb[70].mxu1 %v7703_v52  ;;  %6278 = vpow2.f32 %v2749_v17  ;;  %v7805_v52 = vadd.f32 %v8156_v20, %v8119_v7  ;;  %v7876_v3 = vadd.f32 %v8166_v22, %v8119_v7 }
 0x5a8   : > { %v2751_v45 = vmul.f32 1.442695, %v2720_v27  ;;  %5270 = vmatprep.mubr.f32.mxu1 %v6269_v54 }
 0x5a9   : > { %v7798_v28 = vpop.xlane.xlu1 %2753 }
 0x5aa   : > { %6280 = vpow2.f32 %v2751_v45  ;;  %v8167_v45 = vld [vmem:[#allocation18_spill] sm:$0xff] }
 0x5ab   : > { %5271 = vmatmul.mubr.f32.gmra.mrb[72].mxu1 %v7713_v15 }
 0x5ac   : > { %v6273_v57 = vpop.eup %6272  ;;  %5273 = vmatprep.mubr.f32.mxu1 %v6271_v63 }
 0x5ad   : > { %v7801_v16 = vpop.xlane.xlu1 %2755  ;;  %v6275_v14 = vpop.eup %6274 }
 0x5ae   : > { %2769 = vadd.xlane.f32.xlu0 %v6269_v54 }
 0x5af   : > { %5274 = vmatmul.mubr.f32.gmra.mrb[74].mxu1 %v6273_v57 }
 0x5b0   : > { %v6277_v12 = vpop.eup %6276  ;;  %5276 = vmatprep.mubr.f32.mxu1 %v6275_v14 }
 0x5b1   : > { %v7811_v61 = vpop.xlane.xlu1 %2757  ;;  %v6279_v15 = vpop.eup %6278 }
 0x5b2   : > { %3501 = vmax.xlane.f32.xlu1 %v7809_v30  ;;  %3499 = vmax.xlane.f32.xlu0 %v7805_v52 }
 0x5b3   : > { %5277 = vmatmul.mubr.f32.gmra.mrb[76].mxu1 %v6277_v12 }
 0x5b4   : > { %v6281_v33 = vpop.eup %6280  ;;  %5279 = vmatprep.mubr.f32.mxu1 %v6279_v15 }
 0x5b5   : > { %v7815_v9 = vpop.xlane.xlu1 %2759 }
 0x5b6   : > { %2773 = vadd.xlane.f32.xlu0 %v6271_v63  ;;  %2777 = vadd.xlane.f32.xlu1 %v6275_v14  ;;  %v7882_v63 = vadd.f32 %v8167_v45, %v8119_v7  ;;  %v8168_v14 = vld [vmem:[#allocation20_spill] sm:$0xff] }
 0x5b7   : > { %5280 = vmatmul.mubr.f32.gmra.mrb[78].mxu1 %v6281_v33 }
 0x5b9   : > { %v7817_v44 = vpop.xlane.xlu1 %2761 }
 0x5ba   : > { %2775 = vadd.xlane.f32.xlu0 %v6273_v57  ;;  %2779 = vadd.xlane.f32.xlu1 %v6277_v12  ;;  %v7886_v57 = vadd.f32 %v7691_v26, %v8119_v7  ;;  %v7892_v12 = vadd.f32 %v8168_v14, %v8119_v7 }
 0x5bd   : > { %v7823_v19 = vpop.xlane.xlu1 %2763 }
 0x5be   : > { %3505 = vmax.xlane.f32.xlu1 %v7821_v48 }
 0x5c1   : > { %v6084_v58 = vpop.permute.xlu1 %6083 }
 0x5c2   : > { %v6086_v8 = vunpack.i.h.bf16 %v6084_v58  ;;  %v6085_v0 = vunpack.i.l.bf16 %v6084_v58 }
 0x5c4   : > { %v7826_v6 = vpack.c.bf16 %v6086_v8, %v6085_v0 }
 0x5c6   : > { %5759 = vmatprep.subr.bf16.mxu0 %v7826_v6  ;;  %5790 = vmatprep.subr.bf16.mxu1 %v7826_v6 }
 0x5c7   : > { %5761 = vmatpush3.bf16.msra.mxu0 %v7826_v6 }
 0x5cc   : > { %v7854_v37 = vpop.xlane.xlu0 %2765 }
 0x5cf   : > { %6103 = vrot.lane.b32.xlu1 %v8159_v5, %s6423_s11 }
 0x5d0   : > { %6098 = vrot.lane.b32.xlu0 %v6097_v46, %s6423_s11 }
 0x5ef   : > { %3503 = vmax.xlane.f32.xlu0 %v7836_v41 }
 0x5f2   : > { %v3496_v59 = vpop.xlane.xlu1 %3495 }
 0x5f3   : > { %3507 = vmax.xlane.f32.xlu0 %v7841_v31  ;;  %3509 = vmax.xlane.f32.xlu1 %v7845_v2  ;;  %v3526_v17 = vsub.f32 %v7680_v40, %v3496_v59 }
 0x5f5   : > { %v3543_v27 = vmul.f32 1.442695, %v3526_v17 }
 0x5f7   : > { %3513 = vmax.xlane.f32.xlu1 %v7851_v49  ;;  %2781 = vadd.xlane.f32.xlu0 %v6279_v15 }
 0x5fb   : > { %2783 = vadd.xlane.f32.xlu0 %v6281_v33 }
 0x601   : > { %v7856_v24 = vpop.xlane.xlu0 %2767 }
 0x605   : > { %v7858_v51 = vpop.xlane.xlu1 %2771 }
 0x606   : > { %v3494_v1 = vpop.xlane.xlu0 %3493 }
 0x607   : > { %v3525_v60 = vsub.f32 %v7717_v36, %v3494_v1  ;;  %v8165_v36 = vld [vmem:[#allocation25_spill] sm:$0xff] }
 0x608   : > { %6113 = vrot.lane.b32.xlu1 %v8164_v4, %s6423_s11 }
 0x609   : > { %v3541_v13 = vmul.f32 1.442695, %v3525_v60 }
 0x60a   : > { %v3498_v23 = vpop.xlane.xlu1 %3497  ;;  %v6089_v38 = vpop.permute.xlu0 %6088 }
 0x60b   : > { %6282 = vpow2.f32 %v3541_v13  ;;  %v6091_v34 = vunpack.i.h.bf16 %v6089_v38  ;;  %v6090_v32 = vunpack.i.l.bf16 %v6089_v38  ;;  %v3527_v54 = vsub.f32 %v7731_v39, %v3498_v23 }
 0x60c   : > { %6284 = vpow2.f32 %v3543_v27  ;;  %v7896_v39 = vadd.f32 %v7687_v42, %v8119_v7 }
 0x60d   : > { %v7863_v55 = vpack.c.bf16 %v6091_v34, %v6090_v32  ;;  %v3545_v40 = vmul.f32 1.442695, %v3527_v54  ;;  %v8170_v34 = vld [vmem:[#allocation22_spill] sm:$0xff] }
 0x60e   : > { %v6094_v29 = vpop.permute.xlu1 %6093  ;;  %v7939_v32 = vadd.f32 %v8170_v34, %v8119_v7 }
 0x60f   : > { %v6096_v56 = vunpack.i.h.bf16 %v6094_v29  ;;  %v6095_v47 = vunpack.i.l.bf16 %v6094_v29  ;;  %5763 = vmatprep.subr.bf16.mxu0 %v7863_v55  ;;  %6286 = vpow2.f32 %v3545_v40 }
 0x610   : > { %5765 = vmatpush3.bf16.msra.mxu0 %v7863_v55 }
 0x611   : > { %v7867_v21 = vpack.c.bf16 %v6096_v56, %v6095_v47  ;;  %6108 = vrot.lane.b32.xlu0 %v8165_v36, %s6423_s11 }
 0x613   : > { %5767 = vmatprep.subr.bf16.mxu0 %v7867_v21 }
 0x614   : > { %5769 = vmatpush3.bf16.msra.mxu0 %v7867_v21 }
 0x615   : > { %v6283_v11 = vpop.eup %6282 }
 0x616   : > { %5396 = vmatprep.mubr.f32.mxu0 %v6283_v11  ;;  %v7900_v26 = vpop.eup %6284 }
 0x619   : > { %v7905_v62 = vpop.eup %6286 }
 0x62c   : > { %3517 = vmax.xlane.f32.xlu1 %v7876_v3 }
 0x630   : > { %3521 = vmax.xlane.f32.xlu1 %v7886_v57  ;;  %3511 = vmax.xlane.f32.xlu0 %v7882_v63 }
 0x634   : > { %3523 = vmax.xlane.f32.xlu1 %v7896_v39  ;;  %3515 = vmax.xlane.f32.xlu0 %v7892_v12 }
 0x638   : > { %3573 = vadd.xlane.f32.xlu1 %v6283_v11 }
 0x63b   : > { %v7902_v20 = vpop.xlane.xlu0 %2769 }
 0x63c   : > { %3575 = vadd.xlane.f32.xlu1 %v7900_v26 }
 0x63f   : > { %v3502_v15 = vpop.xlane.xlu1 %3501  ;;  %v3500_v33 = vpop.xlane.xlu0 %3499 }
 0x640   : > { %v3529_v10 = vsub.f32 %v7809_v30, %v3502_v15  ;;  %3577 = vadd.xlane.f32.xlu1 %v7905_v62  ;;  %v3528_v23 = vsub.f32 %v7805_v52, %v3500_v33 }
 0x642   : > { %v3549_v42 = vmul.f32 1.442695, %v3529_v10  ;;  %v3547_v38 = vmul.f32 1.442695, %v3528_v23 }
 0x643   : > { %v7909_v58 = vpop.xlane.xlu1 %2777  ;;  %v7911_v8 = vpop.xlane.xlu0 %2773 }
 0x644   : > { %6288 = vpow2.f32 %v3549_v42 }
 0x647   : > { %v7913_v0 = vpop.xlane.xlu1 %2779  ;;  %v7915_v53 = vpop.xlane.xlu0 %2775 }
 0x64a   : > { %6118 = vrot.lane.b32.xlu0 %v8169_v18, %s6423_s11 }
 0x64b   : > { %v3506_v46 = vpop.xlane.xlu1 %3505  ;;  %v6099_v5 = vpop.permute.xlu0 %6098 }
 0x64c   : > { %v3531_v43 = vsub.f32 %v7821_v48, %v3506_v46  ;;  %v6101_v30 = vunpack.i.h.bf16 %v6099_v5  ;;  %v6100_v50 = vunpack.i.l.bf16 %v6099_v5 }
 0x64e   : > { %v7920_v25 = vpop.eup %6288  ;;  %v3553_v35 = vmul.f32 1.442695, %v3531_v43  ;;  %v7922_v59 = vpack.c.bf16 %v6101_v30, %v6100_v50 }
 0x64f   : > { %v6104_v1 = vpop.permute.xlu1 %6103  ;;  %3581 = vadd.xlane.f32.xlu1 %v7920_v25 }
 0x650   : > { %6290 = vpow2.f32 %v3553_v35  ;;  %v6106_v60 = vunpack.i.h.bf16 %v6104_v1  ;;  %v6105_v4 = vunpack.i.l.bf16 %v6104_v1  ;;  %5771 = vmatprep.subr.bf16.mxu0 %v7922_v59 }
 0x651   : > { %5773 = vmatpush3.bf16.msra.mxu0 %v7922_v59  ;;  %6292 = vpow2.f32 %v3547_v38 }
 0x652   : > { %v7927_v13 = vpack.c.bf16 %v6106_v60, %v6105_v4  ;;  %6294 = vrcp.f32 %v7801_v16 }
 0x653   : > { %6296 = vrcp.f32 %v7798_v28 }
 0x654   : > { %5775 = vmatprep.subr.bf16.mxu0 %v7927_v13  ;;  %6298 = vrcp.f32 %v7815_v9 }
 0x655   : > { %5777 = vmatpush3.bf16.msra.mxu0 %v7927_v13  ;;  %6300 = vrcp.f32 %v7811_v61 }
 0x656   : > { %6302 = vrcp.f32 %v7823_v19 }
 0x657   : > { %6304 = vrcp.f32 %v7817_v44 }
 0x658   : > { %6306 = vrcp.f32 %v7856_v24 }
 0x659   : > { %6308 = vrcp.f32 %v7854_v37 }
 0x65a   : > { %v7931_v48 = vpop.eup %6290  ;;  %6310 = vrcp.f32 %v7858_v51 }
 0x65b   : > { %3585 = vadd.xlane.f32.xlu1 %v7931_v48  ;;  %v7944_v29 = vpop.eup %6292  ;;  %6312 = vrcp.f32 %v7902_v20 }
 0x65c   : > { %v6295_v16 = vpop.eup %6294  ;;  %6314 = vrcp.f32 %v7911_v8 }
 0x65d   : > { %v6297_v52 = vpop.eup %6296  ;;  %6316 = vrcp.f32 %v7915_v53 }
 0x65e   : > { %v6299_v61 = vpop.eup %6298  ;;  %6318 = vrcp.f32 %v7909_v58 }
 0x65f   : > { %v6301_v36 = vpop.eup %6300  ;;  %6320 = vrcp.f32 %v7913_v0 }
 0x660   : > { %v6303_v24 = vpop.eup %6302 }
 0x661   : > { %v6305_v17 = vpop.eup %6304 }
 0x669   : > { %3519 = vmax.xlane.f32.xlu0 %v7939_v32 }
 0x66d   : > { %3579 = vadd.xlane.f32.xlu0 %v7944_v29 }
 0x66e   : > { %v5260_v28 = vpop.f32.mrb[64].mxu1 }
 0x66f   : > { %v2995_v56 = vmul.f32 %v6295_v16, %v5260_v28  ;;  %v2899_v7 = vpop.f32.mrb[65].mxu1 }
 0x670   : > { %v2994_v9 = vmul.f32 %v6297_v52, %v2899_v7 }
 0x672   : > { %v5263_v47 = vpop.f32.mrb[66].mxu1  ;;  %5284 = vmatprep.mubr.msk.f32.mxu1 %vm855_vm1, %v2994_v9 }
 0x673   : > { %v2997_v19 = vmul.f32 %v6299_v61, %v5263_v47  ;;  %v2909_v11 = vpop.f32.mrb[67].mxu1  ;;  %5285 = vmatmul.mubr.msk.f32.vlgmr.msra.gmra.mrb[48].mxu1 %vm855_vm1, %v2995_v56 }
 0x674   : > { %v2996_v44 = vmul.f32 %v6301_v36, %v2909_v11  ;;  %5798 = vmatpush3.bf16.msra.mxu1 %v7826_v6  ;;  %v6307_v6 = vpop.eup %6306 }
 0x675   : > { %5791 = vmatprep.subr.bf16.mxu1 %v7863_v55  ;;  %v6309_v45 = vpop.eup %6308 }
 0x676   : > { %v5266_v37 = vpop.f32.mrb[68].mxu1  ;;  %5287 = vmatprep.mubr.msk.f32.mxu1 %vm855_vm1, %v2996_v44  ;;  %v6311_v33 = vpop.eup %6310 }
 0x677   : > { %v2999_v22 = vmul.f32 %v6303_v24, %v5266_v37  ;;  %v2919_v27 = vpop.f32.mrb[69].mxu1  ;;  %5288 = vmatmul.mubr.msk.f32.gmra.mrb[50].mxu1 %vm855_vm1, %v2997_v19  ;;  %v6313_v42 = vpop.eup %6312 }
 0x678   : > { %v2998_v54 = vmul.f32 %v6305_v17, %v2919_v27  ;;  %5799 = vmatpush3.bf16.msra.mxu1 %v7863_v55  ;;  %v6315_v43 = vpop.eup %6314 }
 0x679   : > { %5792 = vmatprep.subr.bf16.mxu1 %v7867_v21  ;;  %v6317_v1 = vpop.eup %6316 }
 0x67a   : > { %v5269_v51 = vpop.f32.mrb[70].mxu1  ;;  %5290 = vmatprep.mubr.msk.f32.mxu1 %vm855_vm1, %v2998_v54  ;;  %v6319_v38 = vpop.eup %6318 }
 0x67b   : > { %v3001_v40 = vmul.f32 %v6307_v6, %v5269_v51  ;;  %v2929_v14 = vpop.f32.mrb[71].mxu1  ;;  %5291 = vmatmul.mubr.msk.f32.gmra.mrb[52].mxu1 %vm855_vm1, %v2999_v22  ;;  %v6321_v28 = vpop.eup %6320 }
 0x67c   : > { %v3000_v20 = vmul.f32 %v6309_v45, %v2929_v14  ;;  %5800 = vmatpush3.bf16.msra.mxu1 %v7867_v21  ;;  %v3504_v15 = vpop.xlane.xlu0 %3503 }
 0x67d   : > { %v3530_v55 = vsub.f32 %v7836_v41, %v3504_v15  ;;  %5793 = vmatprep.subr.bf16.mxu1 %v7922_v59 }
 0x67e   : > { %v5272_v10 = vpop.f32.mrb[72].mxu1  ;;  %5293 = vmatprep.mubr.msk.f32.mxu1 %vm855_vm1, %v3000_v20 }
 0x67f   : > { %v3551_v8 = vmul.f32 1.442695, %v3530_v55  ;;  %v3003_v53 = vmul.f32 %v6311_v33, %v5272_v10  ;;  %v2939_v18 = vpop.f32.mrb[73].mxu1  ;;  %5294 = vmatmul.mubr.msk.f32.gmra.mrb[54].mxu1 %vm855_vm1, %v3001_v40 }
 0x680   : > { %v3002_v21 = vmul.f32 %v6313_v42, %v2939_v18  ;;  %5801 = vmatpush3.bf16.msra.mxu1 %v7922_v59  ;;  %v3510_v58 = vpop.xlane.xlu1 %3509  ;;  %v3508_v46 = vpop.xlane.xlu0 %3507 }
 0x681   : > { %6322 = vpow2.f32 %v3551_v8  ;;  %v3533_v41 = vsub.f32 %v7845_v2, %v3510_v58  ;;  %v3532_v5 = vsub.f32 %v7841_v31, %v3508_v46  ;;  %5794 = vmatprep.subr.bf16.mxu1 %v7927_v13 }
 0x682   : > { %v5275_v0 = vpop.f32.mrb[74].mxu1  ;;  %5296 = vmatprep.mubr.msk.f32.mxu1 %vm855_vm1, %v3002_v21 }
 0x683   : > { %v3557_v30 = vmul.f32 1.442695, %v3533_v41  ;;  %v3555_v50 = vmul.f32 1.442695, %v3532_v5  ;;  %v2949_v35 = vpop.f32.mrb[75].mxu1  ;;  %5297 = vmatmul.mubr.msk.f32.gmra.mrb[56].mxu1 %vm855_vm1, %v3003_v53  ;;  %v3005_v2 = vmul.f32 %v6317_v1, %v5275_v0 }
 0x684   : > { %v3004_v59 = vmul.f32 %v6315_v43, %v2949_v35  ;;  %5802 = vmatpush3.bf16.msra.mxu1 %v7927_v13  ;;  %v3514_v60 = vpop.xlane.xlu1 %3513  ;;  %v2782_v4 = vpop.xlane.xlu0 %2781 }
 0x685   : > { %6324 = vpow2.f32 %v3557_v30  ;;  %v3535_v31 = vsub.f32 %v7851_v49, %v3514_v60 }
 0x686   : > { %6326 = vpow2.f32 %v3555_v50  ;;  %v5278_v23 = vpop.f32.mrb[76].mxu1  ;;  %5299 = vmatprep.mubr.msk.f32.mxu1 %vm855_vm1, %v3004_v59 }
 0x687   : > { %v3561_v34 = vmul.f32 1.442695, %v3535_v31  ;;  %6328 = vrcp.f32 %v2782_v4  ;;  %v2959_v16 = vpop.f32.mrb[77].mxu1  ;;  %5300 = vmatmul.mubr.msk.f32.gmra.mrb[58].mxu1 %vm855_vm1, %v3005_v2  ;;  %v3007_v13 = vmul.f32 %v6321_v28, %v5278_v23 }
 0x688   : > { %v3006_v52 = vmul.f32 %v6319_v38, %v2959_v16  ;;  %v2784_v56 = vpop.xlane.xlu0 %2783  ;;  %v6114_v7 = vpop.permute.xlu1 %6113 }
 0x689   : > { %6330 = vpow2.f32 %v3561_v34  ;;  %v6116_v36 = vunpack.i.h.bf16 %v6114_v7  ;;  %v6115_v19 = vunpack.i.l.bf16 %v6114_v7 }
 0x68a   : > { %6332 = vrcp.f32 %v2784_v56  ;;  %v5281_v9 = vpop.f32.mrb[78].mxu1  ;;  %5302 = vmatprep.mubr.msk.f32.mxu1 %vm855_vm1, %v3006_v52 }
 0x68b   : > { %v7983_v49 = vpop.eup %6322  ;;  %v2969_v61 = vpop.f32.mrb[79].mxu1  ;;  %5303 = vmatmul.mubr.msk.f32.gmra.mrb[60].mxu1 %vm855_vm1, %v3007_v13  ;;  %v5782_v27 = vpack.c.bf16 %v6116_v36, %v6115_v19 }
 0x68c   : > { %3583 = vadd.xlane.f32.xlu0 %v7983_v49  ;;  %v6109_v47 = vpop.permute.xlu0 %6108 }
 0x68d   : > { %v6111_v11 = vunpack.i.h.bf16 %v6109_v47  ;;  %v6110_v44 = vunpack.i.l.bf16 %v6109_v47 }
 0x68f   : > { %v6325_v24 = vpop.eup %6324  ;;  %v5778_v37 = vpack.c.bf16 %v6111_v11, %v6110_v44 }
 0x690   : > { %v6327_v17 = vpop.eup %6326  ;;  %3589 = vadd.xlane.f32.xlu1 %v6325_v24 }
 0x691   : > { %v6329_v22 = vpop.eup %6328  ;;  %3587 = vadd.xlane.f32.xlu0 %v6327_v17  ;;  %5779 = vmatprep.subr.bf16.mxu0 %v5778_v37 }
 0x692   : > { %v3008_v54 = vmul.f32 %v6329_v22, %v2969_v61  ;;  %5795 = vmatprep.subr.bf16.mxu1 %v5778_v37  ;;  %5781 = vmatpush3.bf16.msra.mxu0 %v5778_v37 }
 0x693   : > { %v6331_v6 = vpop.eup %6330  ;;  %5803 = vmatpush3.bf16.msra.mxu1 %v5778_v37  ;;  %5783 = vmatprep.subr.bf16.mxu0 %v5782_v27 }
 0x694   : > { %v6333_v51 = vpop.eup %6332  ;;  %5305 = vmatprep.mubr.msk.f32.mxu1 %vm855_vm1, %v3008_v54  ;;  %5796 = vmatprep.subr.bf16.mxu1 %v5782_v27 }
 0x695   : > { %v3009_v45 = vmul.f32 %v6333_v51, %v5281_v9  ;;  %3593 = vadd.xlane.f32.xlu1 %v6331_v6 }
 0x696   : > { %5785 = vmatpush3.bf16.msra.mxu0 %v5782_v27 }
 0x697   : > { %5306 = vmatmul.mubr.msk.f32.gmra.mrb[62].mxu1 %vm855_vm1, %v3009_v45 }
 0x698   : > { %5804 = vmatpush3.bf16.msra.mxu1 %v5782_v27  ;;  %5408 = vmatprep.mubr.f32.mxu1 %v6325_v24 }
 0x6b9   : > { %v3518_v40 = vpop.xlane.xlu1 %3517 }
 0x6ba   : > { %v3537_v14 = vsub.f32 %v7876_v3, %v3518_v40 }
 0x6bc   : > { %v3565_v20 = vmul.f32 1.442695, %v3537_v14 }
 0x6bd   : > { %v3522_v15 = vpop.xlane.xlu1 %3521  ;;  %v3512_v55 = vpop.xlane.xlu0 %3511 }
 0x6be   : > { %6334 = vpow2.f32 %v3565_v20  ;;  %v3539_v33 = vsub.f32 %v7886_v57, %v3522_v15  ;;  %v3534_v10 = vsub.f32 %v7882_v63, %v3512_v55 }
 0x6c0   : > { %v3569_v42 = vmul.f32 1.442695, %v3539_v33  ;;  %v3559_v8 = vmul.f32 1.442695, %v3534_v10 }
 0x6c1   : > { %v3516_v53 = vpop.xlane.xlu0 %3515  ;;  %v3524_v0 = vpop.xlane.xlu1 %3523 }
 0x6c2   : > { %6336 = vpow2.f32 %v3569_v42  ;;  %v3536_v18 = vsub.f32 %v7892_v12, %v3516_v53 }
 0x6c3   : > { %6338 = vpow2.f32 %v3559_v8 }
 0x6c4   : > { %v3563_v21 = vmul.f32 1.442695, %v3536_v18 }
 0x6c5   : > { %v6119_v58 = vpop.permute.xlu0 %6118 }
 0x6c6   : > { %v6121_v46 = vunpack.i.h.bf16 %v6119_v58  ;;  %v6120_v41 = vunpack.i.l.bf16 %v6119_v58  ;;  %6340 = vpow2.f32 %v3563_v21 }
 0x6c8   : > { %v6335_v3 = vpop.eup %6334  ;;  %v5786_v5 = vpack.c.bf16 %v6121_v46, %v6120_v41 }
 0x6c9   : > { %3597 = vadd.xlane.f32.xlu1 %v6335_v3 }
 0x6ca   : > { %5787 = vmatprep.subr.bf16.mxu0 %v5786_v5  ;;  %5797 = vmatprep.subr.bf16.mxu1 %v5786_v5 }
 0x6cb   : > { %5789 = vmatpush3.bf16.msra.mxu0 %v5786_v5  ;;  %5805 = vmatpush3.bf16.msra.mxu1 %v5786_v5 }
 0x6cc   : > { %v6337_v63 = vpop.eup %6336 }
 0x6cd   : > { %v6339_v57 = vpop.eup %6338  ;;  %3601 = vadd.xlane.f32.xlu1 %v6337_v63 }
 0x6ce   : > { %3591 = vadd.xlane.f32.xlu0 %v6339_v57  ;;  %5397 = vmatmul.mubr.f32.vlgmr.msra.gmra.mrb[96].mxu0 %v7900_v26  ;;  %v3540_v26 = vsub.f32 %v7896_v39, %v3524_v0  ;;  %v3574_v39 = vpop.xlane.xlu1 %3573 }
 0x6cf   : > { %5409 = vmatmul.mubr.f32.vlgmr.msra.gmra.mrb[80].mxu1 %v6339_v57  ;;  %5399 = vmatprep.mubr.f32.mxu0 %v7905_v62 }
 0x6d0   : > { %5411 = vmatprep.mubr.f32.mxu1 %v6331_v6  ;;  %v6341_v12 = vpop.eup %6340  ;;  %v3571_v50 = vmul.f32 1.442695, %v3540_v26 }
 0x6d2   : > { %3595 = vadd.xlane.f32.xlu0 %v6341_v12  ;;  %5400 = vmatmul.mubr.f32.gmra.mrb[98].mxu0 %v7944_v29  ;;  %v3576_v35 = vpop.xlane.xlu1 %3575 }
 0x6d3   : > { %5412 = vmatmul.mubr.f32.gmra.mrb[82].mxu1 %v6341_v12  ;;  %5402 = vmatprep.mubr.f32.mxu0 %v7920_v25 }
 0x6d4   : > { %5414 = vmatprep.mubr.f32.mxu1 %v6335_v3 }
 0x6d6   : > { %5403 = vmatmul.mubr.f32.gmra.mrb[100].mxu0 %v7983_v49 }
 0x6d7   : > { %5405 = vmatprep.mubr.f32.mxu0 %v7931_v48  ;;  %v3830_v48 = vld [vmem:[%s8075_s4 + $0x18] sm:$0xff] }
 0x6d8   : > { %5420 = vmatprep.subr.mxu1 %v3830_v48 }
 0x6d9   : > { %5421 = vmatpush3.msra.mxu1 %v3830_v48 }
 0x6da   : > { %5406 = vmatmul.mubr.f32.gmra.mrb[102].mxu0 %v6327_v17 }
 0x6f6   : > { %v3520_v43 = vpop.xlane.xlu0 %3519 }
 0x6f7   : > { %v3538_v62 = vsub.f32 %v7939_v32, %v3520_v43  ;;  %v3578_v32 = vpop.xlane.xlu1 %3577 }
 0x6f9   : > { %v3567_v30 = vmul.f32 1.442695, %v3538_v62 }
 0x6fa   : > { %v3580_v1 = vpop.xlane.xlu0 %3579 }
 0x6fb   : > { %6342 = vpow2.f32 %v3567_v30  ;;  %v3582_v59 = vpop.xlane.xlu1 %3581 }
 0x6fc   : > { %6344 = vpow2.f32 %v3571_v50 }
 0x6fd   : > { %6346 = vrcp.f32 %v3574_v39  ;;  %v4409_v39 = vld [vmem:[%s8076_s5] ss:$0 sm:$0xff] }
 0x6fe   : > { %6348 = vrcp.f32 %v3576_v35 }
 0x6ff   : > { %6350 = vrcp.f32 %v3578_v32  ;;  %v3586_v4 = vpop.xlane.xlu1 %3585 }
 0x700   : > { %6352 = vrcp.f32 %v3580_v1 }
 0x701   : > { %6354 = vrcp.f32 %v3582_v59 }
 0x705   : > { %v6343_v29 = vpop.eup %6342 }
 0x706   : > { %3599 = vadd.xlane.f32.xlu0 %v6343_v29  ;;  %5415 = vmatmul.mubr.f32.gmra.mrb[84].mxu1 %v6343_v29  ;;  %v6345_v25 = vpop.eup %6344 }
 0x707   : > { %5417 = vmatprep.mubr.f32.mxu1 %v6337_v63  ;;  %v6347_v38 = vpop.eup %6346 }
 0x708   : > { %v6349_v28 = vpop.eup %6348 }
 0x709   : > { %v6351_v49 = vpop.eup %6350 }
 0x70a   : > { %3603 = vadd.xlane.f32.xlu0 %v6345_v25  ;;  %5418 = vmatmul.mubr.f32.gmra.mrb[86].mxu1 %v6345_v25  ;;  %v6353_v36 = vpop.eup %6352 }
 0x70b   : > { %v6355_v17 = vpop.eup %6354 }
 0x719   : > { %v3584_v60 = vpop.xlane.xlu0 %3583 }
 0x71a   : > { %6356 = vrcp.f32 %v3584_v60 }
 0x71b   : > { %6358 = vrcp.f32 %v3586_v4 }
 0x71d   : > { %v3590_v31 = vpop.xlane.xlu1 %3589 }
 0x71e   : > { %v3588_v2 = vpop.xlane.xlu0 %3587 }
 0x71f   : > { %6360 = vrcp.f32 %v3588_v2 }
 0x720   : > { %6362 = vrcp.f32 %v3590_v31 }
 0x722   : > { %v3594_v19 = vpop.xlane.xlu1 %3593 }
 0x724   : > { %v6357_v54 = vpop.eup %6356 }
 0x725   : > { %v6359_v40 = vpop.eup %6358 }
 0x729   : > { %v6361_v20 = vpop.eup %6360 }
 0x72a   : > { %v6363_v55 = vpop.eup %6362 }
 0x756   : > { %v3598_v46 = vpop.xlane.xlu1 %3597 }
 0x75a   : > { %v3602_v3 = vpop.xlane.xlu1 %3601 }
 0x75b   : > { %v3592_v13 = vpop.xlane.xlu0 %3591 }
 0x75c   : > { %6364 = vrcp.f32 %v3592_v13 }
 0x75d   : > { %6366 = vrcp.f32 %v3594_v19 }
 0x75f   : > { %v3596_v22 = vpop.xlane.xlu0 %3595 }
 0x760   : > { %6368 = vrcp.f32 %v3596_v22 }
 0x761   : > { %6370 = vrcp.f32 %v3598_v46 }
 0x766   : > { %v6365_v42 = vpop.eup %6364 }
 0x767   : > { %v6367_v8 = vpop.eup %6366 }
 0x76a   : > { %v6369_v21 = vpop.eup %6368 }
 0x76b   : > { %v6371_v57 = vpop.eup %6370 }
 0x793   : > { %v3600_v41 = vpop.xlane.xlu0 %3599 }
 0x794   : > { %6372 = vrcp.f32 %v3600_v41 }
 0x795   : > { %6374 = vrcp.f32 %v3602_v3 }
 0x797   : > { %v3604_v5 = vpop.xlane.xlu0 %3603 }
 0x798   : > { %6376 = vrcp.f32 %v3604_v5 }
 0x79e   : > { %v6373_v0 = vpop.eup %6372 }
 0x79f   : > { %v6375_v30 = vpop.eup %6374 }
 0x7a1   : > { %v5398_v23 = vpop.f32.mrb[96].mxu0 }
 0x7a2   : > { %v5410_v34 = vpop.f32.mrb[80].mxu1  ;;  %v3719_v16 = vpop.f32.mrb[97].mxu0  ;;  %v3815_v7 = vmul.f32 %v6349_v28, %v5398_v23 }
 0x7a3   : > { %v3814_v52 = vmul.f32 %v6347_v38, %v3719_v16  ;;  %v3759_v56 = vpop.f32.mrb[81].mxu1  ;;  %v3823_v53 = vmul.f32 %v6365_v42, %v5410_v34  ;;  %v6377_v29 = vpop.eup %6376 }
 0x7a4   : > { %v3822_v10 = vmul.f32 %v6363_v55, %v3759_v56 }
 0x7a5   : > { %v5401_v9 = vpop.f32.mrb[98].mxu0  ;;  %5422 = vmatprep.mubr.msk.f32.mxu1 %vm855_vm1, %v3814_v52 }
 0x7a6   : > { %v5413_v61 = vpop.f32.mrb[82].mxu1  ;;  %v3729_v47 = vpop.f32.mrb[99].mxu0  ;;  %5423 = vmatmul.mubr.msk.f32.vlgmr.msra.gmra.mrb[48].mxu1 %vm855_vm1, %v3815_v7  ;;  %v3817_v24 = vmul.f32 %v6353_v36, %v5401_v9 }
 0x7a7   : > { %v3816_v11 = vmul.f32 %v6351_v49, %v3729_v47  ;;  %v3769_v44 = vpop.f32.mrb[83].mxu1  ;;  %v3825_v58 = vmul.f32 %v6369_v21, %v5413_v61 }
 0x7a8   : > { %v3824_v18 = vmul.f32 %v6367_v8, %v3769_v44 }
 0x7a9   : > { %v5404_v37 = vpop.f32.mrb[100].mxu0  ;;  %5425 = vmatprep.mubr.msk.f32.mxu1 %vm855_vm1, %v3816_v11 }
 0x7aa   : > { %v3739_v27 = vpop.f32.mrb[101].mxu0  ;;  %5426 = vmatmul.mubr.msk.f32.gmra.mrb[50].mxu1 %vm855_vm1, %v3817_v24  ;;  %v3819_v51 = vmul.f32 %v6357_v54, %v5404_v37 }
 0x7ab   : > { %v3818_v6 = vmul.f32 %v6355_v17, %v3739_v27 }
 0x7ad   : > { %v5407_v45 = vpop.f32.mrb[102].mxu0  ;;  %5428 = vmatprep.mubr.msk.f32.mxu1 %vm855_vm1, %v3818_v6 }
 0x7ae   : > { %v3749_v14 = vpop.f32.mrb[103].mxu0  ;;  %5429 = vmatmul.mubr.msk.f32.gmra.mrb[52].mxu1 %vm855_vm1, %v3819_v51  ;;  %v3821_v33 = vmul.f32 %v6361_v20, %v5407_v45 }
 0x7af   : > { %v3820_v15 = vmul.f32 %v6359_v40, %v3749_v14 }
 0x7b1   : > { %5431 = vmatprep.mubr.msk.f32.mxu1 %vm855_vm1, %v3820_v15 }
 0x7b2   : > { %5432 = vmatmul.mubr.msk.f32.gmra.mrb[54].mxu1 %vm855_vm1, %v3821_v33 }
 0x7b3   : > { %5434 = vmatprep.mubr.msk.f32.mxu1 %vm855_vm1, %v3822_v10 }
 0x7b6   : > { %5435 = vmatmul.mubr.msk.f32.gmra.mrb[56].mxu1 %vm855_vm1, %v3823_v53 }
 0x7b7   : > { %5437 = vmatprep.mubr.msk.f32.mxu1 %vm855_vm1, %v3824_v18 }
 0x7ba   : > { %5438 = vmatmul.mubr.msk.f32.gmra.mrb[58].mxu1 %vm855_vm1, %v3825_v58 }
 0x7d9   : > { %v5416_v63 = vpop.f32.mrb[84].mxu1 }
 0x7da   : > { %v3779_v12 = vpop.f32.mrb[85].mxu1  ;;  %v3827_v26 = vmul.f32 %v6373_v0, %v5416_v63 }
 0x7db   : > { %v3826_v43 = vmul.f32 %v6371_v57, %v3779_v12 }
 0x7dd   : > { %v5419_v62 = vpop.f32.mrb[86].mxu1  ;;  %5440 = vmatprep.mubr.msk.f32.mxu1 %vm855_vm1, %v3826_v43 }
 0x7de   : > { %v3789_v50 = vpop.f32.mrb[87].mxu1  ;;  %5441 = vmatmul.mubr.msk.f32.gmra.mrb[60].mxu1 %vm855_vm1, %v3827_v26  ;;  %v3829_v48 = vmul.f32 %v6377_v29, %v5419_v62 }
 0x7df   : > { %v3828_v25 = vmul.f32 %v6375_v30, %v3789_v50 }
 0x7e1   : > { %5443 = vmatprep.mubr.msk.f32.mxu1 %vm855_vm1, %v3828_v25 }
 0x7e2   : > { %5444 = vmatmul.mubr.msk.f32.gmra.mrb[62].mxu1 %vm855_vm1, %v3829_v48 }
 0x879   : > { %v5424_v35 = vpop.f32.mrb[48].mxu1 }
 0x87a   : > { %v4048_v32 = vadd.f32 %v5424_v35, %v4409_v39  ;;  %v3945_v1 = vpop.f32.mrb[49].mxu1 }
 0x87b   : > { %v4047_v59 = vadd.f32 %v4409_v39, %v3945_v1 }
 0x87c   : > { %4064 = vst.msk [vmem:[%s8028_s29 + $0x8] sm:$0xff] %vm299_vm0, %v4048_v32 }
 0x87d   : > { %4063 = vst.msk [vmem:[%s8028_s29] sm:$0xff] %vm299_vm0, %v4047_v59  ;;  %v5427_v60 = vpop.f32.mrb[50].mxu1 }
 0x87e   : > { %v4050_v4 = vadd.f32 %v5427_v60, %v4409_v39  ;;  %v3955_v2 = vpop.f32.mrb[51].mxu1 }
 0x87f   : > { %v4049_v31 = vadd.f32 %v4409_v39, %v3955_v2 }
 0x880   : > { %4066 = vst.msk [vmem:[%s8028_s29 + $0x18] sm:$0xff] %vm299_vm0, %v4050_v4 }
 0x881   : > { %4065 = vst.msk [vmem:[%s8028_s29 + $0x10] sm:$0xff] %vm299_vm0, %v4049_v31  ;;  %v5430_v23 = vpop.f32.mrb[52].mxu1 }
 0x882   : > { %v4052_v38 = vadd.f32 %v5430_v23, %v4409_v39  ;;  %v3965_v34 = vpop.f32.mrb[53].mxu1 }
 0x883   : > { %v4051_v16 = vadd.f32 %v4409_v39, %v3965_v34 }
 0x884   : > { %4068 = vst.msk [vmem:[%s8028_s29 + $0x28] sm:$0xff] %vm299_vm0, %v4052_v38 }
 0x885   : > { %4067 = vst.msk [vmem:[%s8028_s29 + $0x20] sm:$0xff] %vm299_vm0, %v4051_v16  ;;  %v5433_v28 = vpop.f32.mrb[54].mxu1 }
 0x886   : > { %v4054_v52 = vadd.f32 %v5433_v28, %v4409_v39  ;;  %v3975_v56 = vpop.f32.mrb[55].mxu1 }
 0x887   : > { %v4053_v13 = vadd.f32 %v4409_v39, %v3975_v56 }
 0x888   : > { %4070 = vst.msk [vmem:[%s8028_s29 + $0x38] sm:$0xff] %vm299_vm0, %v4054_v52 }
 0x889   : > { %4069 = vst.msk [vmem:[%s8028_s29 + $0x30] sm:$0xff] %vm299_vm0, %v4053_v13  ;;  %v5436_v7 = vpop.f32.mrb[56].mxu1 }
 0x88a   : > { %v4056_v9 = vadd.f32 %v5436_v7, %v4409_v39  ;;  %v3985_v49 = vpop.f32.mrb[57].mxu1 }
 0x88b   : > { %v4055_v61 = vadd.f32 %v4409_v39, %v3985_v49 }
 0x88c   : > { %4072 = vst.msk [vmem:[%s8028_s29 + $0x48] sm:$0xff] %vm299_vm0, %v4056_v9 }
 0x88d   : > { %4071 = vst.msk [vmem:[%s8028_s29 + $0x40] sm:$0xff] %vm299_vm0, %v4055_v61  ;;  %v5439_v47 = vpop.f32.mrb[58].mxu1 }
 0x88e   : > { %v4058_v36 = vadd.f32 %v5439_v47, %v4409_v39  ;;  %v3995_v19 = vpop.f32.mrb[59].mxu1 }
 0x88f   : > { %v4057_v11 = vadd.f32 %v4409_v39, %v3995_v19 }
 0x890   : > { %4074 = vst.msk [vmem:[%s8028_s29 + $0x58] sm:$0xff] %vm299_vm0, %v4058_v36 }
 0x891   : > { %4073 = vst.msk [vmem:[%s8028_s29 + $0x50] sm:$0xff] %vm299_vm0, %v4057_v11 }
 0x8b1   : > { %v5442_v44 = vpop.f32.mrb[60].mxu1 }
 0x8b2   : > { %v4060_v24 = vadd.f32 %v5442_v44, %v4409_v39  ;;  %v4005_v37 = vpop.f32.mrb[61].mxu1 }
 0x8b3   : > { %v4059_v17 = vadd.f32 %v4409_v39, %v4005_v37 }
 0x8b4   : > { %4076 = vst.msk [vmem:[%s8028_s29 + $0x68] sm:$0xff] %vm299_vm0, %v4060_v24 }
 0x8b5   : > { %4075 = vst.msk [vmem:[%s8028_s29 + $0x60] sm:$0xff] %vm299_vm0, %v4059_v17  ;;  %v5445_v22 = vpop.f32.mrb[62].mxu1 }
 0x8b6   : > { %v4062_v27 = vadd.f32 %v5445_v22, %v4409_v39  ;;  %v4015_v54 = vpop.f32.mrb[63].mxu1 }
 0x8b7   : > { %v4061_v6 = vadd.f32 %v4409_v39, %v4015_v54 }
 0x8b8   : > { %4078 = vst.msk [vmem:[%s8028_s29 + $0x78] sm:$0xff] %vm299_vm0, %v4062_v27 }
 0x8b9   : > { %4077 = vst.msk [vmem:[%s8028_s29 + $0x70] sm:$0xff] %vm299_vm0, %v4061_v6 }
 0x8ba PF: > { %s16_s23 = sadd.s32 1, %s6418_s23   ;;  %s8171_s21 = smov %s6414_s22 }
 0x8bb   : > { %p13_p5 = scmp.ge.s32.totalorder %s16_s23, 4   ;;  %s8172_s22 = smov %s8174_s24 }
 0x8bd   :  { %15 = sbr.rel (!%p13_p5) target bundleno = 2 (0x2), region = 74 }

</bundles_post_ra>
